<compile_context>
chip_gen: v5e
topology: v5e:2x2
jax: 0.10.0
libtpu: 0.0.40
codegen_flags: <defaults>
</compile_context>

<pallas_src>
import functools
import math

import jax
import jax.numpy as jnp
from jax.experimental import pallas as pl
from jax.experimental.pallas import tpu as pltpu


# ---------------- Fused decoder kernel (grid = (batch_blocks, layers)) -------

def _decoder_kernel(x_ref, e_ref, sbias_ref, cbias_ref,
                    n1a_ref, n1b_ref, wqkv1_ref, bqkv1_ref, wo1_ref, bo1_ref,
                    n2a_ref, n2b_ref, wq2_ref, bq2_ref, wkv2_ref, bkv2_ref,
                    wo2_ref, bo2_ref,
                    n3a_ref, n3b_ref, fw1_ref, fb1_ref, fw2_ref, fb2_ref,
                    nfa_ref, nfb_ref,
                    o_ref, x_sc, *, block_b, num_h, d_k, eps):
    f32 = jnp.float32
    bf16 = jnp.bfloat16
    l = pl.program_id(1)
    n_layers = pl.num_programs(1)

    M, D = x_sc.shape                      # M = block_b * S (flattened rows)
    S = M // block_b
    Ssrc = e_ref.shape[0] // block_b
    scale = 1.0 / math.sqrt(d_k)

    # Residual stream carried across the layer grid axis in VMEM scratch.
    @pl.when(l == 0)
    def _():
        x_sc[...] = x_ref[...]

    x = x_sc[...]                          # [M, D] f32

    def norm(z, a, b):
        mean = jnp.mean(z, axis=-1, keepdims=True)
        diff = z - mean
        # torch.std default is unbiased (ddof=1); eps added to std, not var.
        var = jnp.sum(diff * diff, axis=-1, keepdims=True) * (1.0 / (D - 1))
        inv = pl.reciprocal(jnp.sqrt(var) + eps, approx=True)
        return a * diff * inv + b

    def softmax(s):
        m = jnp.max(s, axis=-1, keepdims=True)
        p = jnp.exp(s - m)
        return p * pl.reciprocal(jnp.sum(p, axis=-1, keepdims=True),
                                 approx=True)

    def attend_project(q_all, k_all, v_all, bias_ref, Sk, wo):
        # q_all: [M, D] bf16; k_all/v_all: [block_b*Sk, D] bf16
        # bias_ref[bi]: additive mask bias broadcastable to [S, Sk]
        # wo: [D, D] bf16.  Each head output is projected through the matching
        # row slice of wo and accumulated (no lane-axis concatenate).
        rows = []
        for bi in range(block_b):
            q = q_all[bi * S:(bi + 1) * S]
            k = k_all[bi * Sk:(bi + 1) * Sk]
            v = v_all[bi * Sk:(bi + 1) * Sk]
            bias = bias_ref[bi]
            acc = jnp.zeros((S, D), f32)
            for h in range(num_h):
                sl = slice(h * d_k, (h + 1) * d_k)
                s = jax.lax.dot_general(
                    q[:, sl], k[:, sl],
                    dimension_numbers=(((1,), (1,)), ((), ())),
                    preferred_element_type=f32) * scale + bias
                p = softmax(s)
                out_h = jnp.dot(p.astype(bf16), v[:, sl],
                                preferred_element_type=f32)
                acc = acc + jnp.dot(out_h.astype(bf16), wo[sl, :],
                                    preferred_element_type=f32)
            rows.append(acc)
        return jnp.concatenate(rows, axis=0) if block_b > 1 else rows[0]

    # ----- self-attention block (norm -> fused QKV -> attn -> proj + residual)
    x2 = norm(x, n1a_ref[0], n1b_ref[0]).astype(bf16)
    qkv = (jnp.dot(x2, wqkv1_ref[0], preferred_element_type=f32)
           + bqkv1_ref[0]).astype(bf16)                        # [M, 3D]
    q, k, v = qkv[:, :D], qkv[:, D:2 * D], qkv[:, 2 * D:]
    x = x + attend_project(q, k, v, sbias_ref, S, wo1_ref[0]) + bo1_ref[0]

    # ----- cross-attention block (K/V from encoder output)
    x2 = norm(x, n2a_ref[0], n2b_ref[0]).astype(bf16)
    q = (jnp.dot(x2, wq2_ref[0], preferred_element_type=f32)
         + bq2_ref[0]).astype(bf16)                            # [M, D]
    kv = (jnp.dot(e_ref[...], wkv2_ref[0], preferred_element_type=f32)
          + bkv2_ref[0]).astype(bf16)                          # [block_b*Ssrc, 2D]
    k, v = kv[:, :D], kv[:, D:]
    x = x + attend_project(q, k, v, cbias_ref, Ssrc, wo2_ref[0]) + bo2_ref[0]

    # ----- feed-forward block
    x2 = norm(x, n3a_ref[0], n3b_ref[0]).astype(bf16)
    h1 = jnp.maximum(
        jnp.dot(x2, fw1_ref[0], preferred_element_type=f32) + fb1_ref[0],
        0.0).astype(bf16)
    x = x + jnp.dot(h1, fw2_ref[0], preferred_element_type=f32) + fb2_ref[0]

    x_sc[...] = x

    # final norm + store only on the last layer step
    @pl.when(l == n_layers - 1)
    def _():
        o_ref[...] = norm(x, nfa_ref[...], nfb_ref[...]).astype(o_ref.dtype)


_LAYER_PARAM_ORDER = (
    "n1a", "n1b", "wqkv1", "bqkv1", "wo1", "bo1",
    "n2a", "n2b", "wq2", "bq2", "wkv2", "bkv2", "wo2", "bo2",
    "n3a", "n3b", "fw1", "fb1", "fw2", "fb2",
)
_BF16_WEIGHTS = frozenset({"wqkv1", "wo1", "wq2", "wkv2", "wo2", "fw1", "fw2"})


def decoder_forward(params, trg, e_outputs, src_mask, trg_mask, num_h,
                    block_b=None):
    # TODO(synk): embedding gather kept as jnp.take (data-dependent gather; not
    # worth a manual in-kernel DMA gather at this size).
    x = jnp.take(params["embed"], trg, axis=0)                 # [B, S, D]
    B, S, D = x.shape
    Ssrc = e_outputs.shape[1]
    lp = params["layers"]
    n_layers = lp["wqkv1"].shape[0]
    d_k = D // num_h

    if block_b is None:
        # Target ~128 matmul rows per grid step (MXU fill), capped at B.
        # On v7x pass block_b=B//2 so >=2 "parallel" steps cover both cores.
        block_b = max(1, min(B, 128 // max(S, 1)))
        while B % block_b:
            block_b -= 1
    nb = B // block_b

    # Flatten batch into the matmul M dimension; bf16 for matmul-only inputs.
    x_flat = x.reshape(B * S, D)
    e_flat = e_outputs.reshape(B * Ssrc, D).astype(jnp.bfloat16)

    # Precomputed additive mask biases (one add per score tile in-kernel).
    neg = jnp.float32(-1e9)
    self_bias = (jnp.broadcast_to(trg_mask, (B, S, S)) == 0
                 ).astype(jnp.float32) * neg                   # [B, S, S]
    cross_bias = (jnp.broadcast_to(src_mask, (B, 1, Ssrc)) == 0
                  ).astype(jnp.float32) * neg                  # [B, 1, Ssrc]

    layer_args = [lp[name] for name in _LAYER_PARAM_ORDER]

    def wspec(arr):
        # Per-layer streamed block: auto-pipeline prefetches layer l+1 weights
        # while layer l computes; only ~2 layers of weights resident in VMEM.
        return pl.BlockSpec((1,) + arr.shape[1:], lambda b, l: (l, 0, 0))

    in_specs = ([
        pl.BlockSpec((block_b * S, D), lambda b, l: (b, 0)),
        pl.BlockSpec((block_b * Ssrc, D), lambda b, l: (b, 0)),
        pl.BlockSpec((block_b, S, S), lambda b, l: (b, 0, 0)),
        pl.BlockSpec((block_b, 1, Ssrc), lambda b, l: (b, 0, 0)),
    ] + [wspec(a) for a in layer_args]
      + [pl.BlockSpec(params["norm_a"].shape, lambda b, l: (0, 0)),
         pl.BlockSpec(params["norm_b"].shape, lambda b, l: (0, 0))])

    kernel = functools.partial(_decoder_kernel, block_b=block_b,
                               num_h=num_h, d_k=d_k, eps=1e-6)

    grid_spec = pltpu.PrefetchScalarGridSpec(
        num_scalar_prefetch=0,
        grid=(nb, n_layers),
        in_specs=in_specs,
        out_specs=pl.BlockSpec((block_b * S, D), lambda b, l: (b, 0)),
        scratch_shapes=[pltpu.VMEM((block_b * S, D), jnp.float32)],
    )

    out = pl.pallas_call(
        kernel,
        out_shape=jax.ShapeDtypeStruct((B * S, D), jnp.float32),
        grid_spec=grid_spec,
        compiler_params=pltpu.CompilerParams(
            dimension_semantics=("parallel", "arbitrary"),
            vmem_limit_bytes=32 * 1024 * 1024),
    )(x_flat, e_flat, self_bias, cross_bias, *layer_args,
      params["norm_a"], params["norm_b"])

    return out.reshape(B, S, D)


# ---------------- Deterministic parameter init ----------------

def _init_linear(key, d_in, d_out):
    k1, k2 = jax.random.split(key)
    bound = 1.0 / math.sqrt(d_in)
    w = jax.random.uniform(k1, (d_in, d_out), jnp.float32, -bound, bound)
    b = jax.random.uniform(k2, (1, d_out), jnp.float32, -bound, bound)
    return w, b


def _init_mha(key, d):
    ks = jax.random.split(key, 4)
    wq, bq = _init_linear(ks[0], d, d)
    wk, bk = _init_linear(ks[1], d, d)
    wv, bv = _init_linear(ks[2], d, d)
    wo, bo = _init_linear(ks[3], d, d)
    return dict(wq=wq, bq=bq, wk=wk, bk=bk, wv=wv, bv=bv, wo=wo, bo=bo)


def init_decoder_params(key, vocab_size, emb_dim, n_layers, d_ff):
    keys = jax.random.split(key, n_layers + 1)
    ones = jnp.ones((1, emb_dim), jnp.float32)
    zeros = jnp.zeros((1, emb_dim), jnp.float32)
    layers = []
    for li in range(n_layers):
        lk = jax.random.split(keys[1 + li], 4)
        a1 = _init_mha(lk[0], emb_dim)
        a2 = _init_mha(lk[1], emb_dim)
        w1, b1 = _init_linear(lk[2], emb_dim, d_ff)
        w2, b2 = _init_linear(lk[3], d_ff, emb_dim)
        layers.append(dict(
            n1a=ones, n1b=zeros,
            wqkv1=jnp.concatenate([a1["wq"], a1["wk"], a1["wv"]], axis=1),
            bqkv1=jnp.concatenate([a1["bq"], a1["bk"], a1["bv"]], axis=1),
            wo1=a1["wo"], bo1=a1["bo"],
            n2a=ones, n2b=zeros,
            wq2=a2["wq"], bq2=a2["bq"],
            wkv2=jnp.concatenate([a2["wk"], a2["wv"]], axis=1),
            bkv2=jnp.concatenate([a2["bk"], a2["bv"]], axis=1),
            wo2=a2["wo"], bo2=a2["bo"],
            n3a=ones, n3b=zeros,
            fw1=w1, fb1=b1, fw2=w2, fb2=b2,
        ))
    stacked = {}
    for k in _LAYER_PARAM_ORDER:
        arr = jnp.stack([lyr[k] for lyr in layers], axis=0)
        if k in _BF16_WEIGHTS:
            arr = arr.astype(jnp.bfloat16)   # bf16 weights: MXU-native, half DMA/VMEM
        stacked[k] = arr
    return dict(
        embed=jax.random.normal(keys[0], (vocab_size, emb_dim), jnp.float32) * 0.02,
        norm_a=ones, norm_b=zeros,
        layers=stacked,
    )


if __name__ == "__main__":
    vocab_size = 50
    emb_dim = 128      # multiple of 128 -> lane-dense activations/stores
    n_layers = 2
    num_h = 4          # d_k = 32
    d_ff = 256
    B = 2
    S_trg = 8
    S_src = 8

    root = jax.random.PRNGKey(0)
    k_par, k_trg, k_enc = jax.random.split(root, 3)

    params = init_decoder_params(k_par, vocab_size, emb_dim, n_layers, d_ff)

    trg = jax.random.randint(k_trg, (B, S_trg), 0, vocab_size, dtype=jnp.int32)
    e_outputs = jax.random.normal(k_enc, (B, S_src, emb_dim), jnp.float32)

    # causal mask for the target side: [B, S_trg, S_trg]
    trg_mask = jnp.broadcast_to(
        jnp.tril(jnp.ones((S_trg, S_trg), jnp.float32))[None], (B, S_trg, S_trg))
    # padding mask for the source side: [B, 1, S_src] (last 2 positions of batch 1 padded)
    src_mask = jnp.ones((B, 1, S_src), jnp.float32).at[1, 0, -2:].set(0.0)

    out = decoder_forward(params, trg, e_outputs, src_mask, trg_mask, num_h)
    out = jax.block_until_ready(out)
    assert out.shape == (B, S_trg, emb_dim), out.shape
    assert bool(jnp.all(jnp.isfinite(out)))
    print("KERNEL_OK")
</pallas_src>

<mosaic_0001>
module attributes {stable_mosaic.version = 11 : i64} {
  func.func @_decoder_kernel(%arg0: i32, %arg1: i32, %arg2: memref<16x128xf32, #tpu.memory_space<vmem>>, %arg3: memref<16x128xbf16, #tpu.memory_space<vmem>>, %arg4: memref<2x8x8xf32, #tpu.memory_space<vmem>>, %arg5: memref<2x1x8xf32, #tpu.memory_space<vmem>>, %arg6: memref<1x1x128xf32, #tpu.memory_space<vmem>>, %arg7: memref<1x1x128xf32, #tpu.memory_space<vmem>>, %arg8: memref<1x128x384xbf16, #tpu.memory_space<vmem>>, %arg9: memref<1x1x384xf32, #tpu.memory_space<vmem>>, %arg10: memref<1x128x128xbf16, #tpu.memory_space<vmem>>, %arg11: memref<1x1x128xf32, #tpu.memory_space<vmem>>, %arg12: memref<1x1x128xf32, #tpu.memory_space<vmem>>, %arg13: memref<1x1x128xf32, #tpu.memory_space<vmem>>, %arg14: memref<1x128x128xbf16, #tpu.memory_space<vmem>>, %arg15: memref<1x1x128xf32, #tpu.memory_space<vmem>>, %arg16: memref<1x128x256xbf16, #tpu.memory_space<vmem>>, %arg17: memref<1x1x256xf32, #tpu.memory_space<vmem>>, %arg18: memref<1x128x128xbf16, #tpu.memory_space<vmem>>, %arg19: memref<1x1x128xf32, #tpu.memory_space<vmem>>, %arg20: memref<1x1x128xf32, #tpu.memory_space<vmem>>, %arg21: memref<1x1x128xf32, #tpu.memory_space<vmem>>, %arg22: memref<1x128x256xbf16, #tpu.memory_space<vmem>>, %arg23: memref<1x1x256xf32, #tpu.memory_space<vmem>>, %arg24: memref<1x256x128xbf16, #tpu.memory_space<vmem>>, %arg25: memref<1x1x128xf32, #tpu.memory_space<vmem>>, %arg26: memref<1x128xf32, #tpu.memory_space<vmem>>, %arg27: memref<1x128xf32, #tpu.memory_space<vmem>>, %arg28: memref<16x128xf32, #tpu.memory_space<vmem>>, %arg29: memref<16x128xf32, #tpu.memory_space<vmem>>) attributes {dimension_semantics = [#tpu.dimension_semantics<parallel>, #tpu.dimension_semantics<arbitrary>], iteration_bounds = array<i64: 1, 2>, scalar_prefetch = 0 : i64, scratch_operands = 1 : i64, tpu.core_type = #tpu.core_type<tc>, window_params = [{transform_indices = @transform_0, window_bounds = array<i64: 16, 128>}, {transform_indices = @transform_1, window_bounds = array<i64: 16, 128>}, {transform_indices = @transform_2, window_bounds = array<i64: 2, 8, 8>}, {transform_indices = @transform_3, window_bounds = array<i64: 2, 1, 8>}, {transform_indices = @transform_4, window_bounds = array<i64: 1, 1, 128>}, {transform_indices = @transform_5, window_bounds = array<i64: 1, 1, 128>}, {transform_indices = @transform_6, window_bounds = array<i64: 1, 128, 384>}, {transform_indices = @transform_7, window_bounds = array<i64: 1, 1, 384>}, {transform_indices = @transform_8, window_bounds = array<i64: 1, 128, 128>}, {transform_indices = @transform_9, window_bounds = array<i64: 1, 1, 128>}, {transform_indices = @transform_10, window_bounds = array<i64: 1, 1, 128>}, {transform_indices = @transform_11, window_bounds = array<i64: 1, 1, 128>}, {transform_indices = @transform_12, window_bounds = array<i64: 1, 128, 128>}, {transform_indices = @transform_13, window_bounds = array<i64: 1, 1, 128>}, {transform_indices = @transform_14, window_bounds = array<i64: 1, 128, 256>}, {transform_indices = @transform_15, window_bounds = array<i64: 1, 1, 256>}, {transform_indices = @transform_16, window_bounds = array<i64: 1, 128, 128>}, {transform_indices = @transform_17, window_bounds = array<i64: 1, 1, 128>}, {transform_indices = @transform_18, window_bounds = array<i64: 1, 1, 128>}, {transform_indices = @transform_19, window_bounds = array<i64: 1, 1, 128>}, {transform_indices = @transform_20, window_bounds = array<i64: 1, 128, 256>}, {transform_indices = @transform_21, window_bounds = array<i64: 1, 1, 256>}, {transform_indices = @transform_22, window_bounds = array<i64: 1, 256, 128>}, {transform_indices = @transform_23, window_bounds = array<i64: 1, 1, 128>}, {pipeline_mode = #tpu.pipeline_mode<synchronous>, transform_indices = @transform_24, window_bounds = array<i64: 1, 128>}, {pipeline_mode = #tpu.pipeline_mode<synchronous>, transform_indices = @transform_25, window_bounds = array<i64: 1, 128>}, {transform_indices = @transform_26, window_bounds = array<i64: 16, 128>}]} {
    %c0_i32 = arith.constant 0 : i32
    %0 = arith.cmpi eq, %arg1, %c0_i32 : i32
    %1 = arith.extui %0 : i1 to i32
    %c0_i32_0 = arith.constant 0 : i32
    %2 = arith.cmpi ne, %1, %c0_i32_0 : i32
    scf.if %2 {
      %c0_198 = arith.constant 0 : index
      %c0_199 = arith.constant 0 : index
      %550 = vector.load %arg2[%c0_198, %c0_199] : memref<16x128xf32, #tpu.memory_space<vmem>>, vector<16x128xf32>
      %c0_200 = arith.constant 0 : index
      %c0_201 = arith.constant 0 : index
      %551 = vector.load %arg29[%c0_200, %c0_201] : memref<16x128xf32, #tpu.memory_space<vmem>>, vector<16x128xf32>
      tpu.vector_store %arg29[%c0_200, %c0_201], %550 {strides = array<i32>} : memref<16x128xf32, #tpu.memory_space<vmem>>, vector<16x128xf32>,
    } else {
    }
    %c0 = arith.constant 0 : index
    %c0_1 = arith.constant 0 : index
    %3 = vector.load %arg29[%c0, %c0_1] : memref<16x128xf32, #tpu.memory_space<vmem>>, vector<16x128xf32>
    %c0_2 = arith.constant 0 : index
    %c0_3 = arith.constant 0 : index
    %c0_4 = arith.constant 0 : index
    %4 = vector.load %arg6[%c0_2, %c0_3, %c0_4] : memref<1x1x128xf32, #tpu.memory_space<vmem>>, vector<1x1x128xf32>
    %5 = vector.shape_cast %4 : vector<1x1x128xf32> to vector<1x128xf32>
    %c0_5 = arith.constant 0 : index
    %c0_6 = arith.constant 0 : index
    %c0_7 = arith.constant 0 : index
    %6 = vector.load %arg7[%c0_5, %c0_6, %c0_7] : memref<1x1x128xf32, #tpu.memory_space<vmem>>, vector<1x1x128xf32>
    %7 = vector.shape_cast %6 : vector<1x1x128xf32> to vector<1x128xf32>
    %cst = arith.constant dense<0.000000e+00> : vector<16xf32>
    %8 = vector.multi_reduction <add>, %3, %cst [1] : vector<16x128xf32> to vector<16xf32>
    %9 = vector.shape_cast %8 : vector<16xf32> to vector<16x1xf32>
    %cst_8 = arith.constant 1.280000e+02 : f32
    %10 = vector.broadcast %cst_8 : f32 to vector<16x1xf32>
    %11 = arith.divf %9, %10 : vector<16x1xf32>
    %12 = vector.broadcast %11 : vector<16x1xf32> to vector<16x128xf32>
    %13 = arith.subf %3, %12 : vector<16x128xf32>
    %14 = arith.mulf %13, %13 : vector<16x128xf32>
    %cst_9 = arith.constant dense<0.000000e+00> : vector<16xf32>
    %15 = vector.multi_reduction <add>, %14, %cst_9 [1] : vector<16x128xf32> to vector<16xf32>
    %16 = vector.shape_cast %15 : vector<16xf32> to vector<16x1xf32>
    %cst_10 = arith.constant 0.00787401571 : f32
    %17 = vector.broadcast %cst_10 : f32 to vector<16x1xf32>
    %18 = arith.mulf %16, %17 : vector<16x1xf32>
    %19 = math.sqrt %18 : vector<16x1xf32>
    %cst_11 = arith.constant 9.99999997E-7 : f32
    %20 = vector.broadcast %cst_11 : f32 to vector<16x1xf32>
    %21 = arith.addf %19, %20 : vector<16x1xf32>
    %22 = tpu.reciprocal %21 {approx = true} : vector<16x1xf32> -> vector<16x1xf32>
    %23 = vector.broadcast %5 : vector<1x128xf32> to vector<16x128xf32>
    %24 = arith.mulf %23, %13 : vector<16x128xf32>
    %25 = vector.broadcast %22 : vector<16x1xf32> to vector<16x128xf32>
    %26 = arith.mulf %24, %25 : vector<16x128xf32>
    %27 = vector.broadcast %7 : vector<1x128xf32> to vector<16x128xf32>
    %28 = arith.addf %26, %27 : vector<16x128xf32>
    %29 = arith.truncf %28 : vector<16x128xf32> to vector<16x128xbf16>
    %c0_12 = arith.constant 0 : index
    %c0_13 = arith.constant 0 : index
    %c0_14 = arith.constant 0 : index
    %30 = vector.load %arg8[%c0_12, %c0_13, %c0_14] : memref<1x128x384xbf16, #tpu.memory_space<vmem>>, vector<1x128x384xbf16>
    %31 = vector.shape_cast %30 : vector<1x128x384xbf16> to vector<128x384xbf16>
    %cst_15 = arith.constant dense<0.000000e+00> : vector<16x384xf32>
    %32 = tpu.matmul %29, %31, %cst_15 {dimension_numbers = #tpu.dot_dimension_numbers<[1], [0], [0], [1], [0, 0, 1, 1], [], []>} : vector<16x128xbf16>, vector<128x384xbf16>, vector<16x384xf32> -> vector<16x384xf32>
    %c0_16 = arith.constant 0 : index
    %c0_17 = arith.constant 0 : index
    %c0_18 = arith.constant 0 : index
    %33 = vector.load %arg9[%c0_16, %c0_17, %c0_18] : memref<1x1x384xf32, #tpu.memory_space<vmem>>, vector<1x1x384xf32>
    %34 = vector.shape_cast %33 : vector<1x1x384xf32> to vector<1x384xf32>
    %35 = vector.broadcast %34 : vector<1x384xf32> to vector<16x384xf32>
    %36 = arith.addf %32, %35 : vector<16x384xf32>
    %37 = arith.truncf %36 : vector<16x384xf32> to vector<16x384xbf16>
    %38 = vector.extract_strided_slice %37 {offsets = [0, 0], sizes = [16, 128], strides = [1, 1]} : vector<16x384xbf16> to vector<16x128xbf16>
    %39 = vector.extract_strided_slice %37 {offsets = [0, 128], sizes = [16, 128], strides = [1, 1]} : vector<16x384xbf16> to vector<16x128xbf16>
    %40 = vector.extract_strided_slice %37 {offsets = [0, 256], sizes = [16, 128], strides = [1, 1]} : vector<16x384xbf16> to vector<16x128xbf16>
    %c0_19 = arith.constant 0 : index
    %c0_20 = arith.constant 0 : index
    %c0_21 = arith.constant 0 : index
    %41 = vector.load %arg10[%c0_19, %c0_20, %c0_21] : memref<1x128x128xbf16, #tpu.memory_space<vmem>>, vector<1x128x128xbf16>
    %42 = vector.shape_cast %41 : vector<1x128x128xbf16> to vector<128x128xbf16>
    %43 = vector.extract_strided_slice %38 {offsets = [0, 0], sizes = [8, 128], strides = [1, 1]} : vector<16x128xbf16> to vector<8x128xbf16>
    %44 = vector.extract_strided_slice %39 {offsets = [0, 0], sizes = [8, 128], strides = [1, 1]} : vector<16x128xbf16> to vector<8x128xbf16>
    %45 = vector.extract_strided_slice %40 {offsets = [0, 0], sizes = [8, 128], strides = [1, 1]} : vector<16x128xbf16> to vector<8x128xbf16>
    %c0_22 = arith.constant 0 : index
    %c0_23 = arith.constant 0 : index
    %c0_24 = arith.constant 0 : index
    %46 = vector.load %arg4[%c0_22, %c0_23, %c0_24] : memref<2x8x8xf32, #tpu.memory_space<vmem>>, vector<1x8x8xf32>
    %47 = vector.shape_cast %46 : vector<1x8x8xf32> to vector<8x8xf32>
    %cst_25 = arith.constant 0.000000e+00 : f32
    %48 = vector.broadcast %cst_25 : f32 to vector<8x128xf32>
    %49 = vector.extract_strided_slice %43 {offsets = [0, 0], sizes = [8, 32], strides = [1, 1]} : vector<8x128xbf16> to vector<8x32xbf16>
    %50 = vector.extract_strided_slice %44 {offsets = [0, 0], sizes = [8, 32], strides = [1, 1]} : vector<8x128xbf16> to vector<8x32xbf16>
    %cst_26 = arith.constant dense<0.000000e+00> : vector<8x8xf32>
    %51 = tpu.matmul %49, %50, %cst_26 {dimension_numbers = #tpu.dot_dimension_numbers<[1], [1], [0], [0], [0, 0, 1, 0], [], []>} : vector<8x32xbf16>, vector<8x32xbf16>, vector<8x8xf32> -> vector<8x8xf32>
    %cst_27 = arith.constant 0.176776692 : f32
    %52 = vector.broadcast %cst_27 : f32 to vector<8x8xf32>
    %53 = arith.mulf %51, %52 : vector<8x8xf32>
    %54 = arith.addf %53, %47 : vector<8x8xf32>
    %cst_28 = arith.constant dense<0xFF800000> : vector<8xf32>
    %55 = vector.multi_reduction <maximumf>, %54, %cst_28 [1] : vector<8x8xf32> to vector<8xf32>
    %56 = vector.shape_cast %55 : vector<8xf32> to vector<8x1xf32>
    %57 = vector.broadcast %56 : vector<8x1xf32> to vector<8x8xf32>
    %58 = arith.subf %54, %57 : vector<8x8xf32>
    %59 = math.exp %58 : vector<8x8xf32>
    %cst_29 = arith.constant dense<0.000000e+00> : vector<8xf32>
    %60 = vector.multi_reduction <add>, %59, %cst_29 [1] : vector<8x8xf32> to vector<8xf32>
    %61 = vector.shape_cast %60 : vector<8xf32> to vector<8x1xf32>
    %62 = tpu.reciprocal %61 {approx = true} : vector<8x1xf32> -> vector<8x1xf32>
    %63 = vector.broadcast %62 : vector<8x1xf32> to vector<8x8xf32>
    %64 = arith.mulf %59, %63 : vector<8x8xf32>
    %65 = arith.truncf %64 : vector<8x8xf32> to vector<8x8xbf16>
    %66 = vector.extract_strided_slice %45 {offsets = [0, 0], sizes = [8, 32], strides = [1, 1]} : vector<8x128xbf16> to vector<8x32xbf16>
    %cst_30 = arith.constant dense<0.000000e+00> : vector<8x32xf32>
    %67 = tpu.matmul %65, %66, %cst_30 {dimension_numbers = #tpu.dot_dimension_numbers<[1], [0], [0], [1], [0, 0, 1, 1], [], []>} : vector<8x8xbf16>, vector<8x32xbf16>, vector<8x32xf32> -> vector<8x32xf32>
    %68 = arith.truncf %67 : vector<8x32xf32> to vector<8x32xbf16>
    %69 = vector.extract_strided_slice %42 {offsets = [0, 0], sizes = [32, 128], strides = [1, 1]} : vector<128x128xbf16> to vector<32x128xbf16>
    %cst_31 = arith.constant dense<0.000000e+00> : vector<8x128xf32>
    %70 = tpu.matmul %68, %69, %cst_31 {dimension_numbers = #tpu.dot_dimension_numbers<[1], [0], [0], [1], [0, 0, 1, 1], [], []>} : vector<8x32xbf16>, vector<32x128xbf16>, vector<8x128xf32> -> vector<8x128xf32>
    %71 = arith.addf %48, %70 : vector<8x128xf32>
    %72 = vector.extract_strided_slice %43 {offsets = [0, 32], sizes = [8, 32], strides = [1, 1]} : vector<8x128xbf16> to vector<8x32xbf16>
    %73 = vector.extract_strided_slice %44 {offsets = [0, 32], sizes = [8, 32], strides = [1, 1]} : vector<8x128xbf16> to vector<8x32xbf16>
    %cst_32 = arith.constant dense<0.000000e+00> : vector<8x8xf32>
    %74 = tpu.matmul %72, %73, %cst_32 {dimension_numbers = #tpu.dot_dimension_numbers<[1], [1], [0], [0], [0, 0, 1, 0], [], []>} : vector<8x32xbf16>, vector<8x32xbf16>, vector<8x8xf32> -> vector<8x8xf32>
    %cst_33 = arith.constant 0.176776692 : f32
    %75 = vector.broadcast %cst_33 : f32 to vector<8x8xf32>
    %76 = arith.mulf %74, %75 : vector<8x8xf32>
    %77 = arith.addf %76, %47 : vector<8x8xf32>
    %cst_34 = arith.constant dense<0xFF800000> : vector<8xf32>
    %78 = vector.multi_reduction <maximumf>, %77, %cst_34 [1] : vector<8x8xf32> to vector<8xf32>
    %79 = vector.shape_cast %78 : vector<8xf32> to vector<8x1xf32>
    %80 = vector.broadcast %79 : vector<8x1xf32> to vector<8x8xf32>
    %81 = arith.subf %77, %80 : vector<8x8xf32>
    %82 = math.exp %81 : vector<8x8xf32>
    %cst_35 = arith.constant dense<0.000000e+00> : vector<8xf32>
    %83 = vector.multi_reduction <add>, %82, %cst_35 [1] : vector<8x8xf32> to vector<8xf32>
    %84 = vector.shape_cast %83 : vector<8xf32> to vector<8x1xf32>
    %85 = tpu.reciprocal %84 {approx = true} : vector<8x1xf32> -> vector<8x1xf32>
    %86 = vector.broadcast %85 : vector<8x1xf32> to vector<8x8xf32>
    %87 = arith.mulf %82, %86 : vector<8x8xf32>
    %88 = arith.truncf %87 : vector<8x8xf32> to vector<8x8xbf16>
    %89 = vector.extract_strided_slice %45 {offsets = [0, 32], sizes = [8, 32], strides = [1, 1]} : vector<8x128xbf16> to vector<8x32xbf16>
    %cst_36 = arith.constant dense<0.000000e+00> : vector<8x32xf32>
    %90 = tpu.matmul %88, %89, %cst_36 {dimension_numbers = #tpu.dot_dimension_numbers<[1], [0], [0], [1], [0, 0, 1, 1], [], []>} : vector<8x8xbf16>, vector<8x32xbf16>, vector<8x32xf32> -> vector<8x32xf32>
    %91 = arith.truncf %90 : vector<8x32xf32> to vector<8x32xbf16>
    %92 = vector.extract_strided_slice %42 {offsets = [32, 0], sizes = [32, 128], strides = [1, 1]} : vector<128x128xbf16> to vector<32x128xbf16>
    %cst_37 = arith.constant dense<0.000000e+00> : vector<8x128xf32>
    %93 = tpu.matmul %91, %92, %cst_37 {dimension_numbers = #tpu.dot_dimension_numbers<[1], [0], [0], [1], [0, 0, 1, 1], [], []>} : vector<8x32xbf16>, vector<32x128xbf16>, vector<8x128xf32> -> vector<8x128xf32>
    %94 = arith.addf %71, %93 : vector<8x128xf32>
    %95 = vector.extract_strided_slice %43 {offsets = [0, 64], sizes = [8, 32], strides = [1, 1]} : vector<8x128xbf16> to vector<8x32xbf16>
    %96 = vector.extract_strided_slice %44 {offsets = [0, 64], sizes = [8, 32], strides = [1, 1]} : vector<8x128xbf16> to vector<8x32xbf16>
    %cst_38 = arith.constant dense<0.000000e+00> : vector<8x8xf32>
    %97 = tpu.matmul %95, %96, %cst_38 {dimension_numbers = #tpu.dot_dimension_numbers<[1], [1], [0], [0], [0, 0, 1, 0], [], []>} : vector<8x32xbf16>, vector<8x32xbf16>, vector<8x8xf32> -> vector<8x8xf32>
    %cst_39 = arith.constant 0.176776692 : f32
    %98 = vector.broadcast %cst_39 : f32 to vector<8x8xf32>
    %99 = arith.mulf %97, %98 : vector<8x8xf32>
    %100 = arith.addf %99, %47 : vector<8x8xf32>
    %cst_40 = arith.constant dense<0xFF800000> : vector<8xf32>
    %101 = vector.multi_reduction <maximumf>, %100, %cst_40 [1] : vector<8x8xf32> to vector<8xf32>
    %102 = vector.shape_cast %101 : vector<8xf32> to vector<8x1xf32>
    %103 = vector.broadcast %102 : vector<8x1xf32> to vector<8x8xf32>
    %104 = arith.subf %100, %103 : vector<8x8xf32>
    %105 = math.exp %104 : vector<8x8xf32>
    %cst_41 = arith.constant dense<0.000000e+00> : vector<8xf32>
    %106 = vector.multi_reduction <add>, %105, %cst_41 [1] : vector<8x8xf32> to vector<8xf32>
    %107 = vector.shape_cast %106 : vector<8xf32> to vector<8x1xf32>
    %108 = tpu.reciprocal %107 {approx = true} : vector<8x1xf32> -> vector<8x1xf32>
    %109 = vector.broadcast %108 : vector<8x1xf32> to vector<8x8xf32>
    %110 = arith.mulf %105, %109 : vector<8x8xf32>
    %111 = arith.truncf %110 : vector<8x8xf32> to vector<8x8xbf16>
    %112 = vector.extract_strided_slice %45 {offsets = [0, 64], sizes = [8, 32], strides = [1, 1]} : vector<8x128xbf16> to vector<8x32xbf16>
    %cst_42 = arith.constant dense<0.000000e+00> : vector<8x32xf32>
    %113 = tpu.matmul %111, %112, %cst_42 {dimension_numbers = #tpu.dot_dimension_numbers<[1], [0], [0], [1], [0, 0, 1, 1], [], []>} : vector<8x8xbf16>, vector<8x32xbf16>, vector<8x32xf32> -> vector<8x32xf32>
    %114 = arith.truncf %113 : vector<8x32xf32> to vector<8x32xbf16>
    %115 = vector.extract_strided_slice %42 {offsets = [64, 0], sizes = [32, 128], strides = [1, 1]} : vector<128x128xbf16> to vector<32x128xbf16>
    %cst_43 = arith.constant dense<0.000000e+00> : vector<8x128xf32>
    %116 = tpu.matmul %114, %115, %cst_43 {dimension_numbers = #tpu.dot_dimension_numbers<[1], [0], [0], [1], [0, 0, 1, 1], [], []>} : vector<8x32xbf16>, vector<32x128xbf16>, vector<8x128xf32> -> vector<8x128xf32>
    %117 = arith.addf %94, %116 : vector<8x128xf32>
    %118 = vector.extract_strided_slice %43 {offsets = [0, 96], sizes = [8, 32], strides = [1, 1]} : vector<8x128xbf16> to vector<8x32xbf16>
    %119 = vector.extract_strided_slice %44 {offsets = [0, 96], sizes = [8, 32], strides = [1, 1]} : vector<8x128xbf16> to vector<8x32xbf16>
    %cst_44 = arith.constant dense<0.000000e+00> : vector<8x8xf32>
    %120 = tpu.matmul %118, %119, %cst_44 {dimension_numbers = #tpu.dot_dimension_numbers<[1], [1], [0], [0], [0, 0, 1, 0], [], []>} : vector<8x32xbf16>, vector<8x32xbf16>, vector<8x8xf32> -> vector<8x8xf32>
    %cst_45 = arith.constant 0.176776692 : f32
    %121 = vector.broadcast %cst_45 : f32 to vector<8x8xf32>
    %122 = arith.mulf %120, %121 : vector<8x8xf32>
    %123 = arith.addf %122, %47 : vector<8x8xf32>
    %cst_46 = arith.constant dense<0xFF800000> : vector<8xf32>
    %124 = vector.multi_reduction <maximumf>, %123, %cst_46 [1] : vector<8x8xf32> to vector<8xf32>
    %125 = vector.shape_cast %124 : vector<8xf32> to vector<8x1xf32>
    %126 = vector.broadcast %125 : vector<8x1xf32> to vector<8x8xf32>
    %127 = arith.subf %123, %126 : vector<8x8xf32>
    %128 = math.exp %127 : vector<8x8xf32>
    %cst_47 = arith.constant dense<0.000000e+00> : vector<8xf32>
    %129 = vector.multi_reduction <add>, %128, %cst_47 [1] : vector<8x8xf32> to vector<8xf32>
    %130 = vector.shape_cast %129 : vector<8xf32> to vector<8x1xf32>
    %131 = tpu.reciprocal %130 {approx = true} : vector<8x1xf32> -> vector<8x1xf32>
    %132 = vector.broadcast %131 : vector<8x1xf32> to vector<8x8xf32>
    %133 = arith.mulf %128, %132 : vector<8x8xf32>
    %134 = arith.truncf %133 : vector<8x8xf32> to vector<8x8xbf16>
    %135 = vector.extract_strided_slice %45 {offsets = [0, 96], sizes = [8, 32], strides = [1, 1]} : vector<8x128xbf16> to vector<8x32xbf16>
    %cst_48 = arith.constant dense<0.000000e+00> : vector<8x32xf32>
    %136 = tpu.matmul %134, %135, %cst_48 {dimension_numbers = #tpu.dot_dimension_numbers<[1], [0], [0], [1], [0, 0, 1, 1], [], []>} : vector<8x8xbf16>, vector<8x32xbf16>, vector<8x32xf32> -> vector<8x32xf32>
    %137 = arith.truncf %136 : vector<8x32xf32> to vector<8x32xbf16>
    %138 = vector.extract_strided_slice %42 {offsets = [96, 0], sizes = [32, 128], strides = [1, 1]} : vector<128x128xbf16> to vector<32x128xbf16>
    %cst_49 = arith.constant dense<0.000000e+00> : vector<8x128xf32>
    %139 = tpu.matmul %137, %138, %cst_49 {dimension_numbers = #tpu.dot_dimension_numbers<[1], [0], [0], [1], [0, 0, 1, 1], [], []>} : vector<8x32xbf16>, vector<32x128xbf16>, vector<8x128xf32> -> vector<8x128xf32>
    %140 = arith.addf %117, %139 : vector<8x128xf32>
    %141 = vector.extract_strided_slice %38 {offsets = [8, 0], sizes = [8, 128], strides = [1, 1]} : vector<16x128xbf16> to vector<8x128xbf16>
    %142 = vector.extract_strided_slice %39 {offsets = [8, 0], sizes = [8, 128], strides = [1, 1]} : vector<16x128xbf16> to vector<8x128xbf16>
    %143 = vector.extract_strided_slice %40 {offsets = [8, 0], sizes = [8, 128], strides = [1, 1]} : vector<16x128xbf16> to vector<8x128xbf16>
    %c1 = arith.constant 1 : index
    %c0_50 = arith.constant 0 : index
    %c0_51 = arith.constant 0 : index
    %144 = vector.load %arg4[%c1, %c0_50, %c0_51] : memref<2x8x8xf32, #tpu.memory_space<vmem>>, vector<1x8x8xf32>
    %145 = vector.shape_cast %144 : vector<1x8x8xf32> to vector<8x8xf32>
    %cst_52 = arith.constant 0.000000e+00 : f32
    %146 = vector.broadcast %cst_52 : f32 to vector<8x128xf32>
    %147 = vector.extract_strided_slice %141 {offsets = [0, 0], sizes = [8, 32], strides = [1, 1]} : vector<8x128xbf16> to vector<8x32xbf16>
    %148 = vector.extract_strided_slice %142 {offsets = [0, 0], sizes = [8, 32], strides = [1, 1]} : vector<8x128xbf16> to vector<8x32xbf16>
    %cst_53 = arith.constant dense<0.000000e+00> : vector<8x8xf32>
    %149 = tpu.matmul %147, %148, %cst_53 {dimension_numbers = #tpu.dot_dimension_numbers<[1], [1], [0], [0], [0, 0, 1, 0], [], []>} : vector<8x32xbf16>, vector<8x32xbf16>, vector<8x8xf32> -> vector<8x8xf32>
    %cst_54 = arith.constant 0.176776692 : f32
    %150 = vector.broadcast %cst_54 : f32 to vector<8x8xf32>
    %151 = arith.mulf %149, %150 : vector<8x8xf32>
    %152 = arith.addf %151, %145 : vector<8x8xf32>
    %cst_55 = arith.constant dense<0xFF800000> : vector<8xf32>
    %153 = vector.multi_reduction <maximumf>, %152, %cst_55 [1] : vector<8x8xf32> to vector<8xf32>
    %154 = vector.shape_cast %153 : vector<8xf32> to vector<8x1xf32>
    %155 = vector.broadcast %154 : vector<8x1xf32> to vector<8x8xf32>
    %156 = arith.subf %152, %155 : vector<8x8xf32>
    %157 = math.exp %156 : vector<8x8xf32>
    %cst_56 = arith.constant dense<0.000000e+00> : vector<8xf32>
    %158 = vector.multi_reduction <add>, %157, %cst_56 [1] : vector<8x8xf32> to vector<8xf32>
    %159 = vector.shape_cast %158 : vector<8xf32> to vector<8x1xf32>
    %160 = tpu.reciprocal %159 {approx = true} : vector<8x1xf32> -> vector<8x1xf32>
    %161 = vector.broadcast %160 : vector<8x1xf32> to vector<8x8xf32>
    %162 = arith.mulf %157, %161 : vector<8x8xf32>
    %163 = arith.truncf %162 : vector<8x8xf32> to vector<8x8xbf16>
    %164 = vector.extract_strided_slice %143 {offsets = [0, 0], sizes = [8, 32], strides = [1, 1]} : vector<8x128xbf16> to vector<8x32xbf16>
    %cst_57 = arith.constant dense<0.000000e+00> : vector<8x32xf32>
    %165 = tpu.matmul %163, %164, %cst_57 {dimension_numbers = #tpu.dot_dimension_numbers<[1], [0], [0], [1], [0, 0, 1, 1], [], []>} : vector<8x8xbf16>, vector<8x32xbf16>, vector<8x32xf32> -> vector<8x32xf32>
    %166 = arith.truncf %165 : vector<8x32xf32> to vector<8x32xbf16>
    %167 = vector.extract_strided_slice %42 {offsets = [0, 0], sizes = [32, 128], strides = [1, 1]} : vector<128x128xbf16> to vector<32x128xbf16>
    %cst_58 = arith.constant dense<0.000000e+00> : vector<8x128xf32>
    %168 = tpu.matmul %166, %167, %cst_58 {dimension_numbers = #tpu.dot_dimension_numbers<[1], [0], [0], [1], [0, 0, 1, 1], [], []>} : vector<8x32xbf16>, vector<32x128xbf16>, vector<8x128xf32> -> vector<8x128xf32>
    %169 = arith.addf %146, %168 : vector<8x128xf32>
    %170 = vector.extract_strided_slice %141 {offsets = [0, 32], sizes = [8, 32], strides = [1, 1]} : vector<8x128xbf16> to vector<8x32xbf16>
    %171 = vector.extract_strided_slice %142 {offsets = [0, 32], sizes = [8, 32], strides = [1, 1]} : vector<8x128xbf16> to vector<8x32xbf16>
    %cst_59 = arith.constant dense<0.000000e+00> : vector<8x8xf32>
    %172 = tpu.matmul %170, %171, %cst_59 {dimension_numbers = #tpu.dot_dimension_numbers<[1], [1], [0], [0], [0, 0, 1, 0], [], []>} : vector<8x32xbf16>, vector<8x32xbf16>, vector<8x8xf32> -> vector<8x8xf32>
    %cst_60 = arith.constant 0.176776692 : f32
    %173 = vector.broadcast %cst_60 : f32 to vector<8x8xf32>
    %174 = arith.mulf %172, %173 : vector<8x8xf32>
    %175 = arith.addf %174, %145 : vector<8x8xf32>
    %cst_61 = arith.constant dense<0xFF800000> : vector<8xf32>
    %176 = vector.multi_reduction <maximumf>, %175, %cst_61 [1] : vector<8x8xf32> to vector<8xf32>
    %177 = vector.shape_cast %176 : vector<8xf32> to vector<8x1xf32>
    %178 = vector.broadcast %177 : vector<8x1xf32> to vector<8x8xf32>
    %179 = arith.subf %175, %178 : vector<8x8xf32>
    %180 = math.exp %179 : vector<8x8xf32>
    %cst_62 = arith.constant dense<0.000000e+00> : vector<8xf32>
    %181 = vector.multi_reduction <add>, %180, %cst_62 [1] : vector<8x8xf32> to vector<8xf32>
    %182 = vector.shape_cast %181 : vector<8xf32> to vector<8x1xf32>
    %183 = tpu.reciprocal %182 {approx = true} : vector<8x1xf32> -> vector<8x1xf32>
    %184 = vector.broadcast %183 : vector<8x1xf32> to vector<8x8xf32>
    %185 = arith.mulf %180, %184 : vector<8x8xf32>
    %186 = arith.truncf %185 : vector<8x8xf32> to vector<8x8xbf16>
    %187 = vector.extract_strided_slice %143 {offsets = [0, 32], sizes = [8, 32], strides = [1, 1]} : vector<8x128xbf16> to vector<8x32xbf16>
    %cst_63 = arith.constant dense<0.000000e+00> : vector<8x32xf32>
    %188 = tpu.matmul %186, %187, %cst_63 {dimension_numbers = #tpu.dot_dimension_numbers<[1], [0], [0], [1], [0, 0, 1, 1], [], []>} : vector<8x8xbf16>, vector<8x32xbf16>, vector<8x32xf32> -> vector<8x32xf32>
    %189 = arith.truncf %188 : vector<8x32xf32> to vector<8x32xbf16>
    %190 = vector.extract_strided_slice %42 {offsets = [32, 0], sizes = [32, 128], strides = [1, 1]} : vector<128x128xbf16> to vector<32x128xbf16>
    %cst_64 = arith.constant dense<0.000000e+00> : vector<8x128xf32>
    %191 = tpu.matmul %189, %190, %cst_64 {dimension_numbers = #tpu.dot_dimension_numbers<[1], [0], [0], [1], [0, 0, 1, 1], [], []>} : vector<8x32xbf16>, vector<32x128xbf16>, vector<8x128xf32> -> vector<8x128xf32>
    %192 = arith.addf %169, %191 : vector<8x128xf32>
    %193 = vector.extract_strided_slice %141 {offsets = [0, 64], sizes = [8, 32], strides = [1, 1]} : vector<8x128xbf16> to vector<8x32xbf16>
    %194 = vector.extract_strided_slice %142 {offsets = [0, 64], sizes = [8, 32], strides = [1, 1]} : vector<8x128xbf16> to vector<8x32xbf16>
    %cst_65 = arith.constant dense<0.000000e+00> : vector<8x8xf32>
    %195 = tpu.matmul %193, %194, %cst_65 {dimension_numbers = #tpu.dot_dimension_numbers<[1], [1], [0], [0], [0, 0, 1, 0], [], []>} : vector<8x32xbf16>, vector<8x32xbf16>, vector<8x8xf32> -> vector<8x8xf32>
    %cst_66 = arith.constant 0.176776692 : f32
    %196 = vector.broadcast %cst_66 : f32 to vector<8x8xf32>
    %197 = arith.mulf %195, %196 : vector<8x8xf32>
    %198 = arith.addf %197, %145 : vector<8x8xf32>
    %cst_67 = arith.constant dense<0xFF800000> : vector<8xf32>
    %199 = vector.multi_reduction <maximumf>, %198, %cst_67 [1] : vector<8x8xf32> to vector<8xf32>
    %200 = vector.shape_cast %199 : vector<8xf32> to vector<8x1xf32>
    %201 = vector.broadcast %200 : vector<8x1xf32> to vector<8x8xf32>
    %202 = arith.subf %198, %201 : vector<8x8xf32>
    %203 = math.exp %202 : vector<8x8xf32>
    %cst_68 = arith.constant dense<0.000000e+00> : vector<8xf32>
    %204 = vector.multi_reduction <add>, %203, %cst_68 [1] : vector<8x8xf32> to vector<8xf32>
    %205 = vector.shape_cast %204 : vector<8xf32> to vector<8x1xf32>
    %206 = tpu.reciprocal %205 {approx = true} : vector<8x1xf32> -> vector<8x1xf32>
    %207 = vector.broadcast %206 : vector<8x1xf32> to vector<8x8xf32>
    %208 = arith.mulf %203, %207 : vector<8x8xf32>
    %209 = arith.truncf %208 : vector<8x8xf32> to vector<8x8xbf16>
    %210 = vector.extract_strided_slice %143 {offsets = [0, 64], sizes = [8, 32], strides = [1, 1]} : vector<8x128xbf16> to vector<8x32xbf16>
    %cst_69 = arith.constant dense<0.000000e+00> : vector<8x32xf32>
    %211 = tpu.matmul %209, %210, %cst_69 {dimension_numbers = #tpu.dot_dimension_numbers<[1], [0], [0], [1], [0, 0, 1, 1], [], []>} : vector<8x8xbf16>, vector<8x32xbf16>, vector<8x32xf32> -> vector<8x32xf32>
    %212 = arith.truncf %211 : vector<8x32xf32> to vector<8x32xbf16>
    %213 = vector.extract_strided_slice %42 {offsets = [64, 0], sizes = [32, 128], strides = [1, 1]} : vector<128x128xbf16> to vector<32x128xbf16>
    %cst_70 = arith.constant dense<0.000000e+00> : vector<8x128xf32>
    %214 = tpu.matmul %212, %213, %cst_70 {dimension_numbers = #tpu.dot_dimension_numbers<[1], [0], [0], [1], [0, 0, 1, 1], [], []>} : vector<8x32xbf16>, vector<32x128xbf16>, vector<8x128xf32> -> vector<8x128xf32>
    %215 = arith.addf %192, %214 : vector<8x128xf32>
    %216 = vector.extract_strided_slice %141 {offsets = [0, 96], sizes = [8, 32], strides = [1, 1]} : vector<8x128xbf16> to vector<8x32xbf16>
    %217 = vector.extract_strided_slice %142 {offsets = [0, 96], sizes = [8, 32], strides = [1, 1]} : vector<8x128xbf16> to vector<8x32xbf16>
    %cst_71 = arith.constant dense<0.000000e+00> : vector<8x8xf32>
    %218 = tpu.matmul %216, %217, %cst_71 {dimension_numbers = #tpu.dot_dimension_numbers<[1], [1], [0], [0], [0, 0, 1, 0], [], []>} : vector<8x32xbf16>, vector<8x32xbf16>, vector<8x8xf32> -> vector<8x8xf32>
    %cst_72 = arith.constant 0.176776692 : f32
    %219 = vector.broadcast %cst_72 : f32 to vector<8x8xf32>
    %220 = arith.mulf %218, %219 : vector<8x8xf32>
    %221 = arith.addf %220, %145 : vector<8x8xf32>
    %cst_73 = arith.constant dense<0xFF800000> : vector<8xf32>
    %222 = vector.multi_reduction <maximumf>, %221, %cst_73 [1] : vector<8x8xf32> to vector<8xf32>
    %223 = vector.shape_cast %222 : vector<8xf32> to vector<8x1xf32>
    %224 = vector.broadcast %223 : vector<8x1xf32> to vector<8x8xf32>
    %225 = arith.subf %221, %224 : vector<8x8xf32>
    %226 = math.exp %225 : vector<8x8xf32>
    %cst_74 = arith.constant dense<0.000000e+00> : vector<8xf32>
    %227 = vector.multi_reduction <add>, %226, %cst_74 [1] : vector<8x8xf32> to vector<8xf32>
    %228 = vector.shape_cast %227 : vector<8xf32> to vector<8x1xf32>
    %229 = tpu.reciprocal %228 {approx = true} : vector<8x1xf32> -> vector<8x1xf32>
    %230 = vector.broadcast %229 : vector<8x1xf32> to vector<8x8xf32>
    %231 = arith.mulf %226, %230 : vector<8x8xf32>
    %232 = arith.truncf %231 : vector<8x8xf32> to vector<8x8xbf16>
    %233 = vector.extract_strided_slice %143 {offsets = [0, 96], sizes = [8, 32], strides = [1, 1]} : vector<8x128xbf16> to vector<8x32xbf16>
    %cst_75 = arith.constant dense<0.000000e+00> : vector<8x32xf32>
    %234 = tpu.matmul %232, %233, %cst_75 {dimension_numbers = #tpu.dot_dimension_numbers<[1], [0], [0], [1], [0, 0, 1, 1], [], []>} : vector<8x8xbf16>, vector<8x32xbf16>, vector<8x32xf32> -> vector<8x32xf32>
    %235 = arith.truncf %234 : vector<8x32xf32> to vector<8x32xbf16>
    %236 = vector.extract_strided_slice %42 {offsets = [96, 0], sizes = [32, 128], strides = [1, 1]} : vector<128x128xbf16> to vector<32x128xbf16>
    %cst_76 = arith.constant dense<0.000000e+00> : vector<8x128xf32>
    %237 = tpu.matmul %235, %236, %cst_76 {dimension_numbers = #tpu.dot_dimension_numbers<[1], [0], [0], [1], [0, 0, 1, 1], [], []>} : vector<8x32xbf16>, vector<32x128xbf16>, vector<8x128xf32> -> vector<8x128xf32>
    %238 = arith.addf %215, %237 : vector<8x128xf32>
    %239 = tpu.concatenate %140, %238 in 0 : vector<8x128xf32>, vector<8x128xf32> -> vector<16x128xf32>
    %240 = arith.addf %3, %239 : vector<16x128xf32>
    %c0_77 = arith.constant 0 : index
    %c0_78 = arith.constant 0 : index
    %c0_79 = arith.constant 0 : index
    %241 = vector.load %arg11[%c0_77, %c0_78, %c0_79] : memref<1x1x128xf32, #tpu.memory_space<vmem>>, vector<1x1x128xf32>
    %242 = vector.shape_cast %241 : vector<1x1x128xf32> to vector<1x128xf32>
    %243 = vector.broadcast %242 : vector<1x128xf32> to vector<16x128xf32>
    %244 = arith.addf %240, %243 : vector<16x128xf32>
    %c0_80 = arith.constant 0 : index
    %c0_81 = arith.constant 0 : index
    %c0_82 = arith.constant 0 : index
    %245 = vector.load %arg12[%c0_80, %c0_81, %c0_82] : memref<1x1x128xf32, #tpu.memory_space<vmem>>, vector<1x1x128xf32>
    %246 = vector.shape_cast %245 : vector<1x1x128xf32> to vector<1x128xf32>
    %c0_83 = arith.constant 0 : index
    %c0_84 = arith.constant 0 : index
    %c0_85 = arith.constant 0 : index
    %247 = vector.load %arg13[%c0_83, %c0_84, %c0_85] : memref<1x1x128xf32, #tpu.memory_space<vmem>>, vector<1x1x128xf32>
    %248 = vector.shape_cast %247 : vector<1x1x128xf32> to vector<1x128xf32>
    %cst_86 = arith.constant dense<0.000000e+00> : vector<16xf32>
    %249 = vector.multi_reduction <add>, %244, %cst_86 [1] : vector<16x128xf32> to vector<16xf32>
    %250 = vector.shape_cast %249 : vector<16xf32> to vector<16x1xf32>
    %cst_87 = arith.constant 1.280000e+02 : f32
    %251 = vector.broadcast %cst_87 : f32 to vector<16x1xf32>
    %252 = arith.divf %250, %251 : vector<16x1xf32>
    %253 = vector.broadcast %252 : vector<16x1xf32> to vector<16x128xf32>
    %254 = arith.subf %244, %253 : vector<16x128xf32>
    %255 = arith.mulf %254, %254 : vector<16x128xf32>
    %cst_88 = arith.constant dense<0.000000e+00> : vector<16xf32>
    %256 = vector.multi_reduction <add>, %255, %cst_88 [1] : vector<16x128xf32> to vector<16xf32>
    %257 = vector.shape_cast %256 : vector<16xf32> to vector<16x1xf32>
    %cst_89 = arith.constant 0.00787401571 : f32
    %258 = vector.broadcast %cst_89 : f32 to vector<16x1xf32>
    %259 = arith.mulf %257, %258 : vector<16x1xf32>
    %260 = math.sqrt %259 : vector<16x1xf32>
    %cst_90 = arith.constant 9.99999997E-7 : f32
    %261 = vector.broadcast %cst_90 : f32 to vector<16x1xf32>
    %262 = arith.addf %260, %261 : vector<16x1xf32>
    %263 = tpu.reciprocal %262 {approx = true} : vector<16x1xf32> -> vector<16x1xf32>
    %264 = vector.broadcast %246 : vector<1x128xf32> to vector<16x128xf32>
    %265 = arith.mulf %264, %254 : vector<16x128xf32>
    %266 = vector.broadcast %263 : vector<16x1xf32> to vector<16x128xf32>
    %267 = arith.mulf %265, %266 : vector<16x128xf32>
    %268 = vector.broadcast %248 : vector<1x128xf32> to vector<16x128xf32>
    %269 = arith.addf %267, %268 : vector<16x128xf32>
    %270 = arith.truncf %269 : vector<16x128xf32> to vector<16x128xbf16>
    %c0_91 = arith.constant 0 : index
    %c0_92 = arith.constant 0 : index
    %c0_93 = arith.constant 0 : index
    %271 = vector.load %arg14[%c0_91, %c0_92, %c0_93] : memref<1x128x128xbf16, #tpu.memory_space<vmem>>, vector<1x128x128xbf16>
    %272 = vector.shape_cast %271 : vector<1x128x128xbf16> to vector<128x128xbf16>
    %cst_94 = arith.constant dense<0.000000e+00> : vector<16x128xf32>
    %273 = tpu.matmul %270, %272, %cst_94 {dimension_numbers = #tpu.dot_dimension_numbers<[1], [0], [0], [1], [0, 0, 1, 1], [], []>} : vector<16x128xbf16>, vector<128x128xbf16>, vector<16x128xf32> -> vector<16x128xf32>
    %c0_95 = arith.constant 0 : index
    %c0_96 = arith.constant 0 : index
    %c0_97 = arith.constant 0 : index
    %274 = vector.load %arg15[%c0_95, %c0_96, %c0_97] : memref<1x1x128xf32, #tpu.memory_space<vmem>>, vector<1x1x128xf32>
    %275 = vector.shape_cast %274 : vector<1x1x128xf32> to vector<1x128xf32>
    %276 = vector.broadcast %275 : vector<1x128xf32> to vector<16x128xf32>
    %277 = arith.addf %273, %276 : vector<16x128xf32>
    %278 = arith.truncf %277 : vector<16x128xf32> to vector<16x128xbf16>
    %c0_98 = arith.constant 0 : index
    %c0_99 = arith.constant 0 : index
    %279 = vector.load %arg3[%c0_98, %c0_99] : memref<16x128xbf16, #tpu.memory_space<vmem>>, vector<16x128xbf16>
    %c0_100 = arith.constant 0 : index
    %c0_101 = arith.constant 0 : index
    %c0_102 = arith.constant 0 : index
    %280 = vector.load %arg16[%c0_100, %c0_101, %c0_102] : memref<1x128x256xbf16, #tpu.memory_space<vmem>>, vector<1x128x256xbf16>
    %281 = vector.shape_cast %280 : vector<1x128x256xbf16> to vector<128x256xbf16>
    %cst_103 = arith.constant dense<0.000000e+00> : vector<16x256xf32>
    %282 = tpu.matmul %279, %281, %cst_103 {dimension_numbers = #tpu.dot_dimension_numbers<[1], [0], [0], [1], [0, 0, 1, 1], [], []>} : vector<16x128xbf16>, vector<128x256xbf16>, vector<16x256xf32> -> vector<16x256xf32>
    %c0_104 = arith.constant 0 : index
    %c0_105 = arith.constant 0 : index
    %c0_106 = arith.constant 0 : index
    %283 = vector.load %arg17[%c0_104, %c0_105, %c0_106] : memref<1x1x256xf32, #tpu.memory_space<vmem>>, vector<1x1x256xf32>
    %284 = vector.shape_cast %283 : vector<1x1x256xf32> to vector<1x256xf32>
    %285 = vector.broadcast %284 : vector<1x256xf32> to vector<16x256xf32>
    %286 = arith.addf %282, %285 : vector<16x256xf32>
    %287 = arith.truncf %286 : vector<16x256xf32> to vector<16x256xbf16>
    %288 = vector.extract_strided_slice %287 {offsets = [0, 0], sizes = [16, 128], strides = [1, 1]} : vector<16x256xbf16> to vector<16x128xbf16>
    %289 = vector.extract_strided_slice %287 {offsets = [0, 128], sizes = [16, 128], strides = [1, 1]} : vector<16x256xbf16> to vector<16x128xbf16>
    %c0_107 = arith.constant 0 : index
    %c0_108 = arith.constant 0 : index
    %c0_109 = arith.constant 0 : index
    %290 = vector.load %arg18[%c0_107, %c0_108, %c0_109] : memref<1x128x128xbf16, #tpu.memory_space<vmem>>, vector<1x128x128xbf16>
    %291 = vector.shape_cast %290 : vector<1x128x128xbf16> to vector<128x128xbf16>
    %292 = vector.extract_strided_slice %278 {offsets = [0, 0], sizes = [8, 128], strides = [1, 1]} : vector<16x128xbf16> to vector<8x128xbf16>
    %293 = vector.extract_strided_slice %288 {offsets = [0, 0], sizes = [8, 128], strides = [1, 1]} : vector<16x128xbf16> to vector<8x128xbf16>
    %294 = vector.extract_strided_slice %289 {offsets = [0, 0], sizes = [8, 128], strides = [1, 1]} : vector<16x128xbf16> to vector<8x128xbf16>
    %c0_110 = arith.constant 0 : index
    %c0_111 = arith.constant 0 : index
    %c0_112 = arith.constant 0 : index
    %295 = vector.load %arg5[%c0_110, %c0_111, %c0_112] : memref<2x1x8xf32, #tpu.memory_space<vmem>>, vector<1x1x8xf32>
    %296 = vector.shape_cast %295 : vector<1x1x8xf32> to vector<1x8xf32>
    %cst_113 = arith.constant 0.000000e+00 : f32
    %297 = vector.broadcast %cst_113 : f32 to vector<8x128xf32>
    %298 = vector.extract_strided_slice %292 {offsets = [0, 0], sizes = [8, 32], strides = [1, 1]} : vector<8x128xbf16> to vector<8x32xbf16>
    %299 = vector.extract_strided_slice %293 {offsets = [0, 0], sizes = [8, 32], strides = [1, 1]} : vector<8x128xbf16> to vector<8x32xbf16>
    %cst_114 = arith.constant dense<0.000000e+00> : vector<8x8xf32>
    %300 = tpu.matmul %298, %299, %cst_114 {dimension_numbers = #tpu.dot_dimension_numbers<[1], [1], [0], [0], [0, 0, 1, 0], [], []>} : vector<8x32xbf16>, vector<8x32xbf16>, vector<8x8xf32> -> vector<8x8xf32>
    %cst_115 = arith.constant 0.176776692 : f32
    %301 = vector.broadcast %cst_115 : f32 to vector<8x8xf32>
    %302 = arith.mulf %300, %301 : vector<8x8xf32>
    %303 = vector.broadcast %296 : vector<1x8xf32> to vector<8x8xf32>
    %304 = arith.addf %302, %303 : vector<8x8xf32>
    %cst_116 = arith.constant dense<0xFF800000> : vector<8xf32>
    %305 = vector.multi_reduction <maximumf>, %304, %cst_116 [1] : vector<8x8xf32> to vector<8xf32>
    %306 = vector.shape_cast %305 : vector<8xf32> to vector<8x1xf32>
    %307 = vector.broadcast %306 : vector<8x1xf32> to vector<8x8xf32>
    %308 = arith.subf %304, %307 : vector<8x8xf32>
    %309 = math.exp %308 : vector<8x8xf32>
    %cst_117 = arith.constant dense<0.000000e+00> : vector<8xf32>
    %310 = vector.multi_reduction <add>, %309, %cst_117 [1] : vector<8x8xf32> to vector<8xf32>
    %311 = vector.shape_cast %310 : vector<8xf32> to vector<8x1xf32>
    %312 = tpu.reciprocal %311 {approx = true} : vector<8x1xf32> -> vector<8x1xf32>
    %313 = vector.broadcast %312 : vector<8x1xf32> to vector<8x8xf32>
    %314 = arith.mulf %309, %313 : vector<8x8xf32>
    %315 = arith.truncf %314 : vector<8x8xf32> to vector<8x8xbf16>
    %316 = vector.extract_strided_slice %294 {offsets = [0, 0], sizes = [8, 32], strides = [1, 1]} : vector<8x128xbf16> to vector<8x32xbf16>
    %cst_118 = arith.constant dense<0.000000e+00> : vector<8x32xf32>
    %317 = tpu.matmul %315, %316, %cst_118 {dimension_numbers = #tpu.dot_dimension_numbers<[1], [0], [0], [1], [0, 0, 1, 1], [], []>} : vector<8x8xbf16>, vector<8x32xbf16>, vector<8x32xf32> -> vector<8x32xf32>
    %318 = arith.truncf %317 : vector<8x32xf32> to vector<8x32xbf16>
    %319 = vector.extract_strided_slice %291 {offsets = [0, 0], sizes = [32, 128], strides = [1, 1]} : vector<128x128xbf16> to vector<32x128xbf16>
    %cst_119 = arith.constant dense<0.000000e+00> : vector<8x128xf32>
    %320 = tpu.matmul %318, %319, %cst_119 {dimension_numbers = #tpu.dot_dimension_numbers<[1], [0], [0], [1], [0, 0, 1, 1], [], []>} : vector<8x32xbf16>, vector<32x128xbf16>, vector<8x128xf32> -> vector<8x128xf32>
    %321 = arith.addf %297, %320 : vector<8x128xf32>
    %322 = vector.extract_strided_slice %292 {offsets = [0, 32], sizes = [8, 32], strides = [1, 1]} : vector<8x128xbf16> to vector<8x32xbf16>
    %323 = vector.extract_strided_slice %293 {offsets = [0, 32], sizes = [8, 32], strides = [1, 1]} : vector<8x128xbf16> to vector<8x32xbf16>
    %cst_120 = arith.constant dense<0.000000e+00> : vector<8x8xf32>
    %324 = tpu.matmul %322, %323, %cst_120 {dimension_numbers = #tpu.dot_dimension_numbers<[1], [1], [0], [0], [0, 0, 1, 0], [], []>} : vector<8x32xbf16>, vector<8x32xbf16>, vector<8x8xf32> -> vector<8x8xf32>
    %cst_121 = arith.constant 0.176776692 : f32
    %325 = vector.broadcast %cst_121 : f32 to vector<8x8xf32>
    %326 = arith.mulf %324, %325 : vector<8x8xf32>
    %327 = vector.broadcast %296 : vector<1x8xf32> to vector<8x8xf32>
    %328 = arith.addf %326, %327 : vector<8x8xf32>
    %cst_122 = arith.constant dense<0xFF800000> : vector<8xf32>
    %329 = vector.multi_reduction <maximumf>, %328, %cst_122 [1] : vector<8x8xf32> to vector<8xf32>
    %330 = vector.shape_cast %329 : vector<8xf32> to vector<8x1xf32>
    %331 = vector.broadcast %330 : vector<8x1xf32> to vector<8x8xf32>
    %332 = arith.subf %328, %331 : vector<8x8xf32>
    %333 = math.exp %332 : vector<8x8xf32>
    %cst_123 = arith.constant dense<0.000000e+00> : vector<8xf32>
    %334 = vector.multi_reduction <add>, %333, %cst_123 [1] : vector<8x8xf32> to vector<8xf32>
    %335 = vector.shape_cast %334 : vector<8xf32> to vector<8x1xf32>
    %336 = tpu.reciprocal %335 {approx = true} : vector<8x1xf32> -> vector<8x1xf32>
    %337 = vector.broadcast %336 : vector<8x1xf32> to vector<8x8xf32>
    %338 = arith.mulf %333, %337 : vector<8x8xf32>
    %339 = arith.truncf %338 : vector<8x8xf32> to vector<8x8xbf16>
    %340 = vector.extract_strided_slice %294 {offsets = [0, 32], sizes = [8, 32], strides = [1, 1]} : vector<8x128xbf16> to vector<8x32xbf16>
    %cst_124 = arith.constant dense<0.000000e+00> : vector<8x32xf32>
    %341 = tpu.matmul %339, %340, %cst_124 {dimension_numbers = #tpu.dot_dimension_numbers<[1], [0], [0], [1], [0, 0, 1, 1], [], []>} : vector<8x8xbf16>, vector<8x32xbf16>, vector<8x32xf32> -> vector<8x32xf32>
    %342 = arith.truncf %341 : vector<8x32xf32> to vector<8x32xbf16>
    %343 = vector.extract_strided_slice %291 {offsets = [32, 0], sizes = [32, 128], strides = [1, 1]} : vector<128x128xbf16> to vector<32x128xbf16>
    %cst_125 = arith.constant dense<0.000000e+00> : vector<8x128xf32>
    %344 = tpu.matmul %342, %343, %cst_125 {dimension_numbers = #tpu.dot_dimension_numbers<[1], [0], [0], [1], [0, 0, 1, 1], [], []>} : vector<8x32xbf16>, vector<32x128xbf16>, vector<8x128xf32> -> vector<8x128xf32>
    %345 = arith.addf %321, %344 : vector<8x128xf32>
    %346 = vector.extract_strided_slice %292 {offsets = [0, 64], sizes = [8, 32], strides = [1, 1]} : vector<8x128xbf16> to vector<8x32xbf16>
    %347 = vector.extract_strided_slice %293 {offsets = [0, 64], sizes = [8, 32], strides = [1, 1]} : vector<8x128xbf16> to vector<8x32xbf16>
    %cst_126 = arith.constant dense<0.000000e+00> : vector<8x8xf32>
    %348 = tpu.matmul %346, %347, %cst_126 {dimension_numbers = #tpu.dot_dimension_numbers<[1], [1], [0], [0], [0, 0, 1, 0], [], []>} : vector<8x32xbf16>, vector<8x32xbf16>, vector<8x8xf32> -> vector<8x8xf32>
    %cst_127 = arith.constant 0.176776692 : f32
    %349 = vector.broadcast %cst_127 : f32 to vector<8x8xf32>
    %350 = arith.mulf %348, %349 : vector<8x8xf32>
    %351 = vector.broadcast %296 : vector<1x8xf32> to vector<8x8xf32>
    %352 = arith.addf %350, %351 : vector<8x8xf32>
    %cst_128 = arith.constant dense<0xFF800000> : vector<8xf32>
    %353 = vector.multi_reduction <maximumf>, %352, %cst_128 [1] : vector<8x8xf32> to vector<8xf32>
    %354 = vector.shape_cast %353 : vector<8xf32> to vector<8x1xf32>
    %355 = vector.broadcast %354 : vector<8x1xf32> to vector<8x8xf32>
    %356 = arith.subf %352, %355 : vector<8x8xf32>
    %357 = math.exp %356 : vector<8x8xf32>
    %cst_129 = arith.constant dense<0.000000e+00> : vector<8xf32>
    %358 = vector.multi_reduction <add>, %357, %cst_129 [1] : vector<8x8xf32> to vector<8xf32>
    %359 = vector.shape_cast %358 : vector<8xf32> to vector<8x1xf32>
    %360 = tpu.reciprocal %359 {approx = true} : vector<8x1xf32> -> vector<8x1xf32>
    %361 = vector.broadcast %360 : vector<8x1xf32> to vector<8x8xf32>
    %362 = arith.mulf %357, %361 : vector<8x8xf32>
    %363 = arith.truncf %362 : vector<8x8xf32> to vector<8x8xbf16>
    %364 = vector.extract_strided_slice %294 {offsets = [0, 64], sizes = [8, 32], strides = [1, 1]} : vector<8x128xbf16> to vector<8x32xbf16>
    %cst_130 = arith.constant dense<0.000000e+00> : vector<8x32xf32>
    %365 = tpu.matmul %363, %364, %cst_130 {dimension_numbers = #tpu.dot_dimension_numbers<[1], [0], [0], [1], [0, 0, 1, 1], [], []>} : vector<8x8xbf16>, vector<8x32xbf16>, vector<8x32xf32> -> vector<8x32xf32>
    %366 = arith.truncf %365 : vector<8x32xf32> to vector<8x32xbf16>
    %367 = vector.extract_strided_slice %291 {offsets = [64, 0], sizes = [32, 128], strides = [1, 1]} : vector<128x128xbf16> to vector<32x128xbf16>
    %cst_131 = arith.constant dense<0.000000e+00> : vector<8x128xf32>
    %368 = tpu.matmul %366, %367, %cst_131 {dimension_numbers = #tpu.dot_dimension_numbers<[1], [0], [0], [1], [0, 0, 1, 1], [], []>} : vector<8x32xbf16>, vector<32x128xbf16>, vector<8x128xf32> -> vector<8x128xf32>
    %369 = arith.addf %345, %368 : vector<8x128xf32>
    %370 = vector.extract_strided_slice %292 {offsets = [0, 96], sizes = [8, 32], strides = [1, 1]} : vector<8x128xbf16> to vector<8x32xbf16>
    %371 = vector.extract_strided_slice %293 {offsets = [0, 96], sizes = [8, 32], strides = [1, 1]} : vector<8x128xbf16> to vector<8x32xbf16>
    %cst_132 = arith.constant dense<0.000000e+00> : vector<8x8xf32>
    %372 = tpu.matmul %370, %371, %cst_132 {dimension_numbers = #tpu.dot_dimension_numbers<[1], [1], [0], [0], [0, 0, 1, 0], [], []>} : vector<8x32xbf16>, vector<8x32xbf16>, vector<8x8xf32> -> vector<8x8xf32>
    %cst_133 = arith.constant 0.176776692 : f32
    %373 = vector.broadcast %cst_133 : f32 to vector<8x8xf32>
    %374 = arith.mulf %372, %373 : vector<8x8xf32>
    %375 = vector.broadcast %296 : vector<1x8xf32> to vector<8x8xf32>
    %376 = arith.addf %374, %375 : vector<8x8xf32>
    %cst_134 = arith.constant dense<0xFF800000> : vector<8xf32>
    %377 = vector.multi_reduction <maximumf>, %376, %cst_134 [1] : vector<8x8xf32> to vector<8xf32>
    %378 = vector.shape_cast %377 : vector<8xf32> to vector<8x1xf32>
    %379 = vector.broadcast %378 : vector<8x1xf32> to vector<8x8xf32>
    %380 = arith.subf %376, %379 : vector<8x8xf32>
    %381 = math.exp %380 : vector<8x8xf32>
    %cst_135 = arith.constant dense<0.000000e+00> : vector<8xf32>
    %382 = vector.multi_reduction <add>, %381, %cst_135 [1] : vector<8x8xf32> to vector<8xf32>
    %383 = vector.shape_cast %382 : vector<8xf32> to vector<8x1xf32>
    %384 = tpu.reciprocal %383 {approx = true} : vector<8x1xf32> -> vector<8x1xf32>
    %385 = vector.broadcast %384 : vector<8x1xf32> to vector<8x8xf32>
    %386 = arith.mulf %381, %385 : vector<8x8xf32>
    %387 = arith.truncf %386 : vector<8x8xf32> to vector<8x8xbf16>
    %388 = vector.extract_strided_slice %294 {offsets = [0, 96], sizes = [8, 32], strides = [1, 1]} : vector<8x128xbf16> to vector<8x32xbf16>
    %cst_136 = arith.constant dense<0.000000e+00> : vector<8x32xf32>
    %389 = tpu.matmul %387, %388, %cst_136 {dimension_numbers = #tpu.dot_dimension_numbers<[1], [0], [0], [1], [0, 0, 1, 1], [], []>} : vector<8x8xbf16>, vector<8x32xbf16>, vector<8x32xf32> -> vector<8x32xf32>
    %390 = arith.truncf %389 : vector<8x32xf32> to vector<8x32xbf16>
    %391 = vector.extract_strided_slice %291 {offsets = [96, 0], sizes = [32, 128], strides = [1, 1]} : vector<128x128xbf16> to vector<32x128xbf16>
    %cst_137 = arith.constant dense<0.000000e+00> : vector<8x128xf32>
    %392 = tpu.matmul %390, %391, %cst_137 {dimension_numbers = #tpu.dot_dimension_numbers<[1], [0], [0], [1], [0, 0, 1, 1], [], []>} : vector<8x32xbf16>, vector<32x128xbf16>, vector<8x128xf32> -> vector<8x128xf32>
    %393 = arith.addf %369, %392 : vector<8x128xf32>
    %394 = vector.extract_strided_slice %278 {offsets = [8, 0], sizes = [8, 128], strides = [1, 1]} : vector<16x128xbf16> to vector<8x128xbf16>
    %395 = vector.extract_strided_slice %288 {offsets = [8, 0], sizes = [8, 128], strides = [1, 1]} : vector<16x128xbf16> to vector<8x128xbf16>
    %396 = vector.extract_strided_slice %289 {offsets = [8, 0], sizes = [8, 128], strides = [1, 1]} : vector<16x128xbf16> to vector<8x128xbf16>
    %c1_138 = arith.constant 1 : index
    %c0_139 = arith.constant 0 : index
    %c0_140 = arith.constant 0 : index
    %397 = vector.load %arg5[%c1_138, %c0_139, %c0_140] : memref<2x1x8xf32, #tpu.memory_space<vmem>>, vector<1x1x8xf32>
    %398 = vector.shape_cast %397 : vector<1x1x8xf32> to vector<1x8xf32>
    %cst_141 = arith.constant 0.000000e+00 : f32
    %399 = vector.broadcast %cst_141 : f32 to vector<8x128xf32>
    %400 = vector.extract_strided_slice %394 {offsets = [0, 0], sizes = [8, 32], strides = [1, 1]} : vector<8x128xbf16> to vector<8x32xbf16>
    %401 = vector.extract_strided_slice %395 {offsets = [0, 0], sizes = [8, 32], strides = [1, 1]} : vector<8x128xbf16> to vector<8x32xbf16>
    %cst_142 = arith.constant dense<0.000000e+00> : vector<8x8xf32>
    %402 = tpu.matmul %400, %401, %cst_142 {dimension_numbers = #tpu.dot_dimension_numbers<[1], [1], [0], [0], [0, 0, 1, 0], [], []>} : vector<8x32xbf16>, vector<8x32xbf16>, vector<8x8xf32> -> vector<8x8xf32>
    %cst_143 = arith.constant 0.176776692 : f32
    %403 = vector.broadcast %cst_143 : f32 to vector<8x8xf32>
    %404 = arith.mulf %402, %403 : vector<8x8xf32>
    %405 = vector.broadcast %398 : vector<1x8xf32> to vector<8x8xf32>
    %406 = arith.addf %404, %405 : vector<8x8xf32>
    %cst_144 = arith.constant dense<0xFF800000> : vector<8xf32>
    %407 = vector.multi_reduction <maximumf>, %406, %cst_144 [1] : vector<8x8xf32> to vector<8xf32>
    %408 = vector.shape_cast %407 : vector<8xf32> to vector<8x1xf32>
    %409 = vector.broadcast %408 : vector<8x1xf32> to vector<8x8xf32>
    %410 = arith.subf %406, %409 : vector<8x8xf32>
    %411 = math.exp %410 : vector<8x8xf32>
    %cst_145 = arith.constant dense<0.000000e+00> : vector<8xf32>
    %412 = vector.multi_reduction <add>, %411, %cst_145 [1] : vector<8x8xf32> to vector<8xf32>
    %413 = vector.shape_cast %412 : vector<8xf32> to vector<8x1xf32>
    %414 = tpu.reciprocal %413 {approx = true} : vector<8x1xf32> -> vector<8x1xf32>
    %415 = vector.broadcast %414 : vector<8x1xf32> to vector<8x8xf32>
    %416 = arith.mulf %411, %415 : vector<8x8xf32>
    %417 = arith.truncf %416 : vector<8x8xf32> to vector<8x8xbf16>
    %418 = vector.extract_strided_slice %396 {offsets = [0, 0], sizes = [8, 32], strides = [1, 1]} : vector<8x128xbf16> to vector<8x32xbf16>
    %cst_146 = arith.constant dense<0.000000e+00> : vector<8x32xf32>
    %419 = tpu.matmul %417, %418, %cst_146 {dimension_numbers = #tpu.dot_dimension_numbers<[1], [0], [0], [1], [0, 0, 1, 1], [], []>} : vector<8x8xbf16>, vector<8x32xbf16>, vector<8x32xf32> -> vector<8x32xf32>
    %420 = arith.truncf %419 : vector<8x32xf32> to vector<8x32xbf16>
    %421 = vector.extract_strided_slice %291 {offsets = [0, 0], sizes = [32, 128], strides = [1, 1]} : vector<128x128xbf16> to vector<32x128xbf16>
    %cst_147 = arith.constant dense<0.000000e+00> : vector<8x128xf32>
    %422 = tpu.matmul %420, %421, %cst_147 {dimension_numbers = #tpu.dot_dimension_numbers<[1], [0], [0], [1], [0, 0, 1, 1], [], []>} : vector<8x32xbf16>, vector<32x128xbf16>, vector<8x128xf32> -> vector<8x128xf32>
    %423 = arith.addf %399, %422 : vector<8x128xf32>
    %424 = vector.extract_strided_slice %394 {offsets = [0, 32], sizes = [8, 32], strides = [1, 1]} : vector<8x128xbf16> to vector<8x32xbf16>
    %425 = vector.extract_strided_slice %395 {offsets = [0, 32], sizes = [8, 32], strides = [1, 1]} : vector<8x128xbf16> to vector<8x32xbf16>
    %cst_148 = arith.constant dense<0.000000e+00> : vector<8x8xf32>
    %426 = tpu.matmul %424, %425, %cst_148 {dimension_numbers = #tpu.dot_dimension_numbers<[1], [1], [0], [0], [0, 0, 1, 0], [], []>} : vector<8x32xbf16>, vector<8x32xbf16>, vector<8x8xf32> -> vector<8x8xf32>
    %cst_149 = arith.constant 0.176776692 : f32
    %427 = vector.broadcast %cst_149 : f32 to vector<8x8xf32>
    %428 = arith.mulf %426, %427 : vector<8x8xf32>
    %429 = vector.broadcast %398 : vector<1x8xf32> to vector<8x8xf32>
    %430 = arith.addf %428, %429 : vector<8x8xf32>
    %cst_150 = arith.constant dense<0xFF800000> : vector<8xf32>
    %431 = vector.multi_reduction <maximumf>, %430, %cst_150 [1] : vector<8x8xf32> to vector<8xf32>
    %432 = vector.shape_cast %431 : vector<8xf32> to vector<8x1xf32>
    %433 = vector.broadcast %432 : vector<8x1xf32> to vector<8x8xf32>
    %434 = arith.subf %430, %433 : vector<8x8xf32>
    %435 = math.exp %434 : vector<8x8xf32>
    %cst_151 = arith.constant dense<0.000000e+00> : vector<8xf32>
    %436 = vector.multi_reduction <add>, %435, %cst_151 [1] : vector<8x8xf32> to vector<8xf32>
    %437 = vector.shape_cast %436 : vector<8xf32> to vector<8x1xf32>
    %438 = tpu.reciprocal %437 {approx = true} : vector<8x1xf32> -> vector<8x1xf32>
    %439 = vector.broadcast %438 : vector<8x1xf32> to vector<8x8xf32>
    %440 = arith.mulf %435, %439 : vector<8x8xf32>
    %441 = arith.truncf %440 : vector<8x8xf32> to vector<8x8xbf16>
    %442 = vector.extract_strided_slice %396 {offsets = [0, 32], sizes = [8, 32], strides = [1, 1]} : vector<8x128xbf16> to vector<8x32xbf16>
    %cst_152 = arith.constant dense<0.000000e+00> : vector<8x32xf32>
    %443 = tpu.matmul %441, %442, %cst_152 {dimension_numbers = #tpu.dot_dimension_numbers<[1], [0], [0], [1], [0, 0, 1, 1], [], []>} : vector<8x8xbf16>, vector<8x32xbf16>, vector<8x32xf32> -> vector<8x32xf32>
    %444 = arith.truncf %443 : vector<8x32xf32> to vector<8x32xbf16>
    %445 = vector.extract_strided_slice %291 {offsets = [32, 0], sizes = [32, 128], strides = [1, 1]} : vector<128x128xbf16> to vector<32x128xbf16>
    %cst_153 = arith.constant dense<0.000000e+00> : vector<8x128xf32>
    %446 = tpu.matmul %444, %445, %cst_153 {dimension_numbers = #tpu.dot_dimension_numbers<[1], [0], [0], [1], [0, 0, 1, 1], [], []>} : vector<8x32xbf16>, vector<32x128xbf16>, vector<8x128xf32> -> vector<8x128xf32>
    %447 = arith.addf %423, %446 : vector<8x128xf32>
    %448 = vector.extract_strided_slice %394 {offsets = [0, 64], sizes = [8, 32], strides = [1, 1]} : vector<8x128xbf16> to vector<8x32xbf16>
    %449 = vector.extract_strided_slice %395 {offsets = [0, 64], sizes = [8, 32], strides = [1, 1]} : vector<8x128xbf16> to vector<8x32xbf16>
    %cst_154 = arith.constant dense<0.000000e+00> : vector<8x8xf32>
    %450 = tpu.matmul %448, %449, %cst_154 {dimension_numbers = #tpu.dot_dimension_numbers<[1], [1], [0], [0], [0, 0, 1, 0], [], []>} : vector<8x32xbf16>, vector<8x32xbf16>, vector<8x8xf32> -> vector<8x8xf32>
    %cst_155 = arith.constant 0.176776692 : f32
    %451 = vector.broadcast %cst_155 : f32 to vector<8x8xf32>
    %452 = arith.mulf %450, %451 : vector<8x8xf32>
    %453 = vector.broadcast %398 : vector<1x8xf32> to vector<8x8xf32>
    %454 = arith.addf %452, %453 : vector<8x8xf32>
    %cst_156 = arith.constant dense<0xFF800000> : vector<8xf32>
    %455 = vector.multi_reduction <maximumf>, %454, %cst_156 [1] : vector<8x8xf32> to vector<8xf32>
    %456 = vector.shape_cast %455 : vector<8xf32> to vector<8x1xf32>
    %457 = vector.broadcast %456 : vector<8x1xf32> to vector<8x8xf32>
    %458 = arith.subf %454, %457 : vector<8x8xf32>
    %459 = math.exp %458 : vector<8x8xf32>
    %cst_157 = arith.constant dense<0.000000e+00> : vector<8xf32>
    %460 = vector.multi_reduction <add>, %459, %cst_157 [1] : vector<8x8xf32> to vector<8xf32>
    %461 = vector.shape_cast %460 : vector<8xf32> to vector<8x1xf32>
    %462 = tpu.reciprocal %461 {approx = true} : vector<8x1xf32> -> vector<8x1xf32>
    %463 = vector.broadcast %462 : vector<8x1xf32> to vector<8x8xf32>
    %464 = arith.mulf %459, %463 : vector<8x8xf32>
    %465 = arith.truncf %464 : vector<8x8xf32> to vector<8x8xbf16>
    %466 = vector.extract_strided_slice %396 {offsets = [0, 64], sizes = [8, 32], strides = [1, 1]} : vector<8x128xbf16> to vector<8x32xbf16>
    %cst_158 = arith.constant dense<0.000000e+00> : vector<8x32xf32>
    %467 = tpu.matmul %465, %466, %cst_158 {dimension_numbers = #tpu.dot_dimension_numbers<[1], [0], [0], [1], [0, 0, 1, 1], [], []>} : vector<8x8xbf16>, vector<8x32xbf16>, vector<8x32xf32> -> vector<8x32xf32>
    %468 = arith.truncf %467 : vector<8x32xf32> to vector<8x32xbf16>
    %469 = vector.extract_strided_slice %291 {offsets = [64, 0], sizes = [32, 128], strides = [1, 1]} : vector<128x128xbf16> to vector<32x128xbf16>
    %cst_159 = arith.constant dense<0.000000e+00> : vector<8x128xf32>
    %470 = tpu.matmul %468, %469, %cst_159 {dimension_numbers = #tpu.dot_dimension_numbers<[1], [0], [0], [1], [0, 0, 1, 1], [], []>} : vector<8x32xbf16>, vector<32x128xbf16>, vector<8x128xf32> -> vector<8x128xf32>
    %471 = arith.addf %447, %470 : vector<8x128xf32>
    %472 = vector.extract_strided_slice %394 {offsets = [0, 96], sizes = [8, 32], strides = [1, 1]} : vector<8x128xbf16> to vector<8x32xbf16>
    %473 = vector.extract_strided_slice %395 {offsets = [0, 96], sizes = [8, 32], strides = [1, 1]} : vector<8x128xbf16> to vector<8x32xbf16>
    %cst_160 = arith.constant dense<0.000000e+00> : vector<8x8xf32>
    %474 = tpu.matmul %472, %473, %cst_160 {dimension_numbers = #tpu.dot_dimension_numbers<[1], [1], [0], [0], [0, 0, 1, 0], [], []>} : vector<8x32xbf16>, vector<8x32xbf16>, vector<8x8xf32> -> vector<8x8xf32>
    %cst_161 = arith.constant 0.176776692 : f32
    %475 = vector.broadcast %cst_161 : f32 to vector<8x8xf32>
    %476 = arith.mulf %474, %475 : vector<8x8xf32>
    %477 = vector.broadcast %398 : vector<1x8xf32> to vector<8x8xf32>
    %478 = arith.addf %476, %477 : vector<8x8xf32>
    %cst_162 = arith.constant dense<0xFF800000> : vector<8xf32>
    %479 = vector.multi_reduction <maximumf>, %478, %cst_162 [1] : vector<8x8xf32> to vector<8xf32>
    %480 = vector.shape_cast %479 : vector<8xf32> to vector<8x1xf32>
    %481 = vector.broadcast %480 : vector<8x1xf32> to vector<8x8xf32>
    %482 = arith.subf %478, %481 : vector<8x8xf32>
    %483 = math.exp %482 : vector<8x8xf32>
    %cst_163 = arith.constant dense<0.000000e+00> : vector<8xf32>
    %484 = vector.multi_reduction <add>, %483, %cst_163 [1] : vector<8x8xf32> to vector<8xf32>
    %485 = vector.shape_cast %484 : vector<8xf32> to vector<8x1xf32>
    %486 = tpu.reciprocal %485 {approx = true} : vector<8x1xf32> -> vector<8x1xf32>
    %487 = vector.broadcast %486 : vector<8x1xf32> to vector<8x8xf32>
    %488 = arith.mulf %483, %487 : vector<8x8xf32>
    %489 = arith.truncf %488 : vector<8x8xf32> to vector<8x8xbf16>
    %490 = vector.extract_strided_slice %396 {offsets = [0, 96], sizes = [8, 32], strides = [1, 1]} : vector<8x128xbf16> to vector<8x32xbf16>
    %cst_164 = arith.constant dense<0.000000e+00> : vector<8x32xf32>
    %491 = tpu.matmul %489, %490, %cst_164 {dimension_numbers = #tpu.dot_dimension_numbers<[1], [0], [0], [1], [0, 0, 1, 1], [], []>} : vector<8x8xbf16>, vector<8x32xbf16>, vector<8x32xf32> -> vector<8x32xf32>
    %492 = arith.truncf %491 : vector<8x32xf32> to vector<8x32xbf16>
    %493 = vector.extract_strided_slice %291 {offsets = [96, 0], sizes = [32, 128], strides = [1, 1]} : vector<128x128xbf16> to vector<32x128xbf16>
    %cst_165 = arith.constant dense<0.000000e+00> : vector<8x128xf32>
    %494 = tpu.matmul %492, %493, %cst_165 {dimension_numbers = #tpu.dot_dimension_numbers<[1], [0], [0], [1], [0, 0, 1, 1], [], []>} : vector<8x32xbf16>, vector<32x128xbf16>, vector<8x128xf32> -> vector<8x128xf32>
    %495 = arith.addf %471, %494 : vector<8x128xf32>
    %496 = tpu.concatenate %393, %495 in 0 : vector<8x128xf32>, vector<8x128xf32> -> vector<16x128xf32>
    %497 = arith.addf %244, %496 : vector<16x128xf32>
    %c0_166 = arith.constant 0 : index
    %c0_167 = arith.constant 0 : index
    %c0_168 = arith.constant 0 : index
    %498 = vector.load %arg19[%c0_166, %c0_167, %c0_168] : memref<1x1x128xf32, #tpu.memory_space<vmem>>, vector<1x1x128xf32>
    %499 = vector.shape_cast %498 : vector<1x1x128xf32> to vector<1x128xf32>
    %500 = vector.broadcast %499 : vector<1x128xf32> to vector<16x128xf32>
    %501 = arith.addf %497, %500 : vector<16x128xf32>
    %c0_169 = arith.constant 0 : index
    %c0_170 = arith.constant 0 : index
    %c0_171 = arith.constant 0 : index
    %502 = vector.load %arg20[%c0_169, %c0_170, %c0_171] : memref<1x1x128xf32, #tpu.memory_space<vmem>>, vector<1x1x128xf32>
    %503 = vector.shape_cast %502 : vector<1x1x128xf32> to vector<1x128xf32>
    %c0_172 = arith.constant 0 : index
    %c0_173 = arith.constant 0 : index
    %c0_174 = arith.constant 0 : index
    %504 = vector.load %arg21[%c0_172, %c0_173, %c0_174] : memref<1x1x128xf32, #tpu.memory_space<vmem>>, vector<1x1x128xf32>
    %505 = vector.shape_cast %504 : vector<1x1x128xf32> to vector<1x128xf32>
    %cst_175 = arith.constant dense<0.000000e+00> : vector<16xf32>
    %506 = vector.multi_reduction <add>, %501, %cst_175 [1] : vector<16x128xf32> to vector<16xf32>
    %507 = vector.shape_cast %506 : vector<16xf32> to vector<16x1xf32>
    %cst_176 = arith.constant 1.280000e+02 : f32
    %508 = vector.broadcast %cst_176 : f32 to vector<16x1xf32>
    %509 = arith.divf %507, %508 : vector<16x1xf32>
    %510 = vector.broadcast %509 : vector<16x1xf32> to vector<16x128xf32>
    %511 = arith.subf %501, %510 : vector<16x128xf32>
    %512 = arith.mulf %511, %511 : vector<16x128xf32>
    %cst_177 = arith.constant dense<0.000000e+00> : vector<16xf32>
    %513 = vector.multi_reduction <add>, %512, %cst_177 [1] : vector<16x128xf32> to vector<16xf32>
    %514 = vector.shape_cast %513 : vector<16xf32> to vector<16x1xf32>
    %cst_178 = arith.constant 0.00787401571 : f32
    %515 = vector.broadcast %cst_178 : f32 to vector<16x1xf32>
    %516 = arith.mulf %514, %515 : vector<16x1xf32>
    %517 = math.sqrt %516 : vector<16x1xf32>
    %cst_179 = arith.constant 9.99999997E-7 : f32
    %518 = vector.broadcast %cst_179 : f32 to vector<16x1xf32>
    %519 = arith.addf %517, %518 : vector<16x1xf32>
    %520 = tpu.reciprocal %519 {approx = true} : vector<16x1xf32> -> vector<16x1xf32>
    %521 = vector.broadcast %503 : vector<1x128xf32> to vector<16x128xf32>
    %522 = arith.mulf %521, %511 : vector<16x128xf32>
    %523 = vector.broadcast %520 : vector<16x1xf32> to vector<16x128xf32>
    %524 = arith.mulf %522, %523 : vector<16x128xf32>
    %525 = vector.broadcast %505 : vector<1x128xf32> to vector<16x128xf32>
    %526 = arith.addf %524, %525 : vector<16x128xf32>
    %527 = arith.truncf %526 : vector<16x128xf32> to vector<16x128xbf16>
    %c0_180 = arith.constant 0 : index
    %c0_181 = arith.constant 0 : index
    %c0_182 = arith.constant 0 : index
    %528 = vector.load %arg22[%c0_180, %c0_181, %c0_182] : memref<1x128x256xbf16, #tpu.memory_space<vmem>>, vector<1x128x256xbf16>
    %529 = vector.shape_cast %528 : vector<1x128x256xbf16> to vector<128x256xbf16>
    %cst_183 = arith.constant dense<0.000000e+00> : vector<16x256xf32>
    %530 = tpu.matmul %527, %529, %cst_183 {dimension_numbers = #tpu.dot_dimension_numbers<[1], [0], [0], [1], [0, 0, 1, 1], [], []>} : vector<16x128xbf16>, vector<128x256xbf16>, vector<16x256xf32> -> vector<16x256xf32>
    %c0_184 = arith.constant 0 : index
    %c0_185 = arith.constant 0 : index
    %c0_186 = arith.constant 0 : index
    %531 = vector.load %arg23[%c0_184, %c0_185, %c0_186] : memref<1x1x256xf32, #tpu.memory_space<vmem>>, vector<1x1x256xf32>
    %532 = vector.shape_cast %531 : vector<1x1x256xf32> to vector<1x256xf32>
    %533 = vector.broadcast %532 : vector<1x256xf32> to vector<16x256xf32>
    %534 = arith.addf %530, %533 : vector<16x256xf32>
    %cst_187 = arith.constant 0.000000e+00 : f32
    %535 = vector.broadcast %cst_187 : f32 to vector<16x256xf32>
    %536 = arith.maximumf %534, %535 : vector<16x256xf32>
    %537 = arith.truncf %536 : vector<16x256xf32> to vector<16x256xbf16>
    %c0_188 = arith.constant 0 : index
    %c0_189 = arith.constant 0 : index
    %c0_190 = arith.constant 0 : index
    %538 = vector.load %arg24[%c0_188, %c0_189, %c0_190] : memref<1x256x128xbf16, #tpu.memory_space<vmem>>, vector<1x256x128xbf16>
    %539 = vector.shape_cast %538 : vector<1x256x128xbf16> to vector<256x128xbf16>
    %cst_191 = arith.constant dense<0.000000e+00> : vector<16x128xf32>
    %540 = tpu.matmul %537, %539, %cst_191 {dimension_numbers = #tpu.dot_dimension_numbers<[1], [0], [0], [1], [0, 0, 1, 1], [], []>} : vector<16x256xbf16>, vector<256x128xbf16>, vector<16x128xf32> -> vector<16x128xf32>
    %541 = arith.addf %501, %540 : vector<16x128xf32>
    %c0_192 = arith.constant 0 : index
    %c0_193 = arith.constant 0 : index
    %c0_194 = arith.constant 0 : index
    %542 = vector.load %arg25[%c0_192, %c0_193, %c0_194] : memref<1x1x128xf32, #tpu.memory_space<vmem>>, vector<1x1x128xf32>
    %543 = vector.shape_cast %542 : vector<1x1x128xf32> to vector<1x128xf32>
    %544 = vector.broadcast %543 : vector<1x128xf32> to vector<16x128xf32>
    %545 = arith.addf %541, %544 : vector<16x128xf32>
    %c0_195 = arith.constant 0 : index
    %c0_196 = arith.constant 0 : index
    %546 = vector.load %arg29[%c0_195, %c0_196] : memref<16x128xf32, #tpu.memory_space<vmem>>, vector<16x128xf32>
    tpu.vector_store %arg29[%c0_195, %c0_196], %545 {strides = array<i32>} : memref<16x128xf32, #tpu.memory_space<vmem>>, vector<16x128xf32>,
    %c1_i32 = arith.constant 1 : i32
    %547 = arith.cmpi eq, %arg1, %c1_i32 : i32
    %548 = arith.extui %547 : i1 to i32
    %c0_i32_197 = arith.constant 0 : i32
    %549 = arith.cmpi ne, %548, %c0_i32_197 : i32
    scf.if %549 {
      %c0_198 = arith.constant 0 : index
      %c0_199 = arith.constant 0 : index
      %550 = vector.load %arg26[%c0_198, %c0_199] : memref<1x128xf32, #tpu.memory_space<vmem>>, vector<1x128xf32>
      %c0_200 = arith.constant 0 : index
      %c0_201 = arith.constant 0 : index
      %551 = vector.load %arg27[%c0_200, %c0_201] : memref<1x128xf32, #tpu.memory_space<vmem>>, vector<1x128xf32>
      %cst_202 = arith.constant dense<0.000000e+00> : vector<16xf32>
      %552 = vector.multi_reduction <add>, %545, %cst_202 [1] : vector<16x128xf32> to vector<16xf32>
      %553 = vector.shape_cast %552 : vector<16xf32> to vector<16x1xf32>
      %cst_203 = arith.constant 1.280000e+02 : f32
      %554 = vector.broadcast %cst_203 : f32 to vector<16x1xf32>
      %555 = arith.divf %553, %554 : vector<16x1xf32>
      %556 = vector.broadcast %555 : vector<16x1xf32> to vector<16x128xf32>
      %557 = arith.subf %545, %556 : vector<16x128xf32>
      %558 = arith.mulf %557, %557 : vector<16x128xf32>
      %cst_204 = arith.constant dense<0.000000e+00> : vector<16xf32>
      %559 = vector.multi_reduction <add>, %558, %cst_204 [1] : vector<16x128xf32> to vector<16xf32>
      %560 = vector.shape_cast %559 : vector<16xf32> to vector<16x1xf32>
      %cst_205 = arith.constant 0.00787401571 : f32
      %561 = vector.broadcast %cst_205 : f32 to vector<16x1xf32>
      %562 = arith.mulf %560, %561 : vector<16x1xf32>
      %563 = math.sqrt %562 : vector<16x1xf32>
      %cst_206 = arith.constant 9.99999997E-7 : f32
      %564 = vector.broadcast %cst_206 : f32 to vector<16x1xf32>
      %565 = arith.addf %563, %564 : vector<16x1xf32>
      %566 = tpu.reciprocal %565 {approx = true} : vector<16x1xf32> -> vector<16x1xf32>
      %567 = vector.broadcast %550 : vector<1x128xf32> to vector<16x128xf32>
      %568 = arith.mulf %567, %557 : vector<16x128xf32>
      %569 = vector.broadcast %566 : vector<16x1xf32> to vector<16x128xf32>
      %570 = arith.mulf %568, %569 : vector<16x128xf32>
      %571 = vector.broadcast %551 : vector<1x128xf32> to vector<16x128xf32>
      %572 = arith.addf %570, %571 : vector<16x128xf32>
      %c0_207 = arith.constant 0 : index
      %c0_208 = arith.constant 0 : index
      %573 = vector.load %arg28[%c0_207, %c0_208] : memref<16x128xf32, #tpu.memory_space<vmem>>, vector<16x128xf32>
      tpu.vector_store %arg28[%c0_207, %c0_208], %572 {strides = array<i32>} : memref<16x128xf32, #tpu.memory_space<vmem>>, vector<16x128xf32>,
    } else {
    }
    return
  }
  func.func @transform_0(%arg0: i32, %arg1: i32) -> (i32, i32) {
    %c0_i32 = arith.constant 0 : i32
    %c0_i32_0 = arith.constant 0 : i32
    return %arg0, %c0_i32 : i32, i32
  }
  func.func @transform_1(%arg0: i32, %arg1: i32) -> (i32, i32) {
    %c0_i32 = arith.constant 0 : i32
    %c0_i32_0 = arith.constant 0 : i32
    return %arg0, %c0_i32 : i32, i32
  }
  func.func @transform_2(%arg0: i32, %arg1: i32) -> (i32, i32, i32) {
    %c0_i32 = arith.constant 0 : i32
    %c0_i32_0 = arith.constant 0 : i32
    %c0_i32_1 = arith.constant 0 : i32
    return %arg0, %c0_i32, %c0_i32_0 : i32, i32, i32
  }
  func.func @transform_3(%arg0: i32, %arg1: i32) -> (i32, i32, i32) {
    %c0_i32 = arith.constant 0 : i32
    %c0_i32_0 = arith.constant 0 : i32
    %c0_i32_1 = arith.constant 0 : i32
    return %arg0, %c0_i32, %c0_i32_0 : i32, i32, i32
  }
  func.func @transform_4(%arg0: i32, %arg1: i32) -> (i32, i32, i32) {
    %c0_i32 = arith.constant 0 : i32
    %c0_i32_0 = arith.constant 0 : i32
    %c0_i32_1 = arith.constant 0 : i32
    return %arg1, %c0_i32, %c0_i32_0 : i32, i32, i32
  }
  func.func @transform_5(%arg0: i32, %arg1: i32) -> (i32, i32, i32) {
    %c0_i32 = arith.constant 0 : i32
    %c0_i32_0 = arith.constant 0 : i32
    %c0_i32_1 = arith.constant 0 : i32
    return %arg1, %c0_i32, %c0_i32_0 : i32, i32, i32
  }
  func.func @transform_6(%arg0: i32, %arg1: i32) -> (i32, i32, i32) {
    %c0_i32 = arith.constant 0 : i32
    %c0_i32_0 = arith.constant 0 : i32
    %c0_i32_1 = arith.constant 0 : i32
    return %arg1, %c0_i32, %c0_i32_0 : i32, i32, i32
  }
  func.func @transform_7(%arg0: i32, %arg1: i32) -> (i32, i32, i32) {
    %c0_i32 = arith.constant 0 : i32
    %c0_i32_0 = arith.constant 0 : i32
    %c0_i32_1 = arith.constant 0 : i32
    return %arg1, %c0_i32, %c0_i32_0 : i32, i32, i32
  }
  func.func @transform_8(%arg0: i32, %arg1: i32) -> (i32, i32, i32) {
    %c0_i32 = arith.constant 0 : i32
    %c0_i32_0 = arith.constant 0 : i32
    %c0_i32_1 = arith.constant 0 : i32
    return %arg1, %c0_i32, %c0_i32_0 : i32, i32, i32
  }
  func.func @transform_9(%arg0: i32, %arg1: i32) -> (i32, i32, i32) {
    %c0_i32 = arith.constant 0 : i32
    %c0_i32_0 = arith.constant 0 : i32
    %c0_i32_1 = arith.constant 0 : i32
    return %arg1, %c0_i32, %c0_i32_0 : i32, i32, i32
  }
  func.func @transform_10(%arg0: i32, %arg1: i32) -> (i32, i32, i32) {
    %c0_i32 = arith.constant 0 : i32
    %c0_i32_0 = arith.constant 0 : i32
    %c0_i32_1 = arith.constant 0 : i32
    return %arg1, %c0_i32, %c0_i32_0 : i32, i32, i32
  }
  func.func @transform_11(%arg0: i32, %arg1: i32) -> (i32, i32, i32) {
    %c0_i32 = arith.constant 0 : i32
    %c0_i32_0 = arith.constant 0 : i32
    %c0_i32_1 = arith.constant 0 : i32
    return %arg1, %c0_i32, %c0_i32_0 : i32, i32, i32
  }
  func.func @transform_12(%arg0: i32, %arg1: i32) -> (i32, i32, i32) {
    %c0_i32 = arith.constant 0 : i32
    %c0_i32_0 = arith.constant 0 : i32
    %c0_i32_1 = arith.constant 0 : i32
    return %arg1, %c0_i32, %c0_i32_0 : i32, i32, i32
  }
  func.func @transform_13(%arg0: i32, %arg1: i32) -> (i32, i32, i32) {
    %c0_i32 = arith.constant 0 : i32
    %c0_i32_0 = arith.constant 0 : i32
    %c0_i32_1 = arith.constant 0 : i32
    return %arg1, %c0_i32, %c0_i32_0 : i32, i32, i32
  }
  func.func @transform_14(%arg0: i32, %arg1: i32) -> (i32, i32, i32) {
    %c0_i32 = arith.constant 0 : i32
    %c0_i32_0 = arith.constant 0 : i32
    %c0_i32_1 = arith.constant 0 : i32
    return %arg1, %c0_i32, %c0_i32_0 : i32, i32, i32
  }
  func.func @transform_15(%arg0: i32, %arg1: i32) -> (i32, i32, i32) {
    %c0_i32 = arith.constant 0 : i32
    %c0_i32_0 = arith.constant 0 : i32
    %c0_i32_1 = arith.constant 0 : i32
    return %arg1, %c0_i32, %c0_i32_0 : i32, i32, i32
  }
  func.func @transform_16(%arg0: i32, %arg1: i32) -> (i32, i32, i32) {
    %c0_i32 = arith.constant 0 : i32
    %c0_i32_0 = arith.constant 0 : i32
    %c0_i32_1 = arith.constant 0 : i32
    return %arg1, %c0_i32, %c0_i32_0 : i32, i32, i32
  }
  func.func @transform_17(%arg0: i32, %arg1: i32) -> (i32, i32, i32) {
    %c0_i32 = arith.constant 0 : i32
    %c0_i32_0 = arith.constant 0 : i32
    %c0_i32_1 = arith.constant 0 : i32
    return %arg1, %c0_i32, %c0_i32_0 : i32, i32, i32
  }
  func.func @transform_18(%arg0: i32, %arg1: i32) -> (i32, i32, i32) {
    %c0_i32 = arith.constant 0 : i32
    %c0_i32_0 = arith.constant 0 : i32
    %c0_i32_1 = arith.constant 0 : i32
    return %arg1, %c0_i32, %c0_i32_0 : i32, i32, i32
  }
  func.func @transform_19(%arg0: i32, %arg1: i32) -> (i32, i32, i32) {
    %c0_i32 = arith.constant 0 : i32
    %c0_i32_0 = arith.constant 0 : i32
    %c0_i32_1 = arith.constant 0 : i32
    return %arg1, %c0_i32, %c0_i32_0 : i32, i32, i32
  }
  func.func @transform_20(%arg0: i32, %arg1: i32) -> (i32, i32, i32) {
    %c0_i32 = arith.constant 0 : i32
    %c0_i32_0 = arith.constant 0 : i32
    %c0_i32_1 = arith.constant 0 : i32
    return %arg1, %c0_i32, %c0_i32_0 : i32, i32, i32
  }
  func.func @transform_21(%arg0: i32, %arg1: i32) -> (i32, i32, i32) {
    %c0_i32 = arith.constant 0 : i32
    %c0_i32_0 = arith.constant 0 : i32
    %c0_i32_1 = arith.constant 0 : i32
    return %arg1, %c0_i32, %c0_i32_0 : i32, i32, i32
  }
  func.func @transform_22(%arg0: i32, %arg1: i32) -> (i32, i32, i32) {
    %c0_i32 = arith.constant 0 : i32
    %c0_i32_0 = arith.constant 0 : i32
    %c0_i32_1 = arith.constant 0 : i32
    return %arg1, %c0_i32, %c0_i32_0 : i32, i32, i32
  }
  func.func @transform_23(%arg0: i32, %arg1: i32) -> (i32, i32, i32) {
    %c0_i32 = arith.constant 0 : i32
    %c0_i32_0 = arith.constant 0 : i32
    %c0_i32_1 = arith.constant 0 : i32
    return %arg1, %c0_i32, %c0_i32_0 : i32, i32, i32
  }
  func.func @transform_24(%arg0: i32, %arg1: i32) -> (i32, i32) {
    %c0_i32 = arith.constant 0 : i32
    %c0_i32_0 = arith.constant 0 : i32
    %c0_i32_1 = arith.constant 0 : i32
    return %c0_i32, %c0_i32_0 : i32, i32
  }
  func.func @transform_25(%arg0: i32, %arg1: i32) -> (i32, i32) {
    %c0_i32 = arith.constant 0 : i32
    %c0_i32_0 = arith.constant 0 : i32
    %c0_i32_1 = arith.constant 0 : i32
    return %c0_i32, %c0_i32_0 : i32, i32
  }
  func.func @transform_26(%arg0: i32, %arg1: i32) -> (i32, i32) {
    %c0_i32 = arith.constant 0 : i32
    %c0_i32_0 = arith.constant 0 : i32
    return %arg0, %c0_i32 : i32, i32
  }
}

</mosaic_0001>

<bundles_post_ra>
// kernel: tpu_custom_call.1
= control target key start
LH: loop header
LB: loop body
LE: loop exit
PB: predicated region body
PF: predicated region fallthrough
CT: control target
= control target key end

     0   :  { %s6754_s0 = inlined_call_operand.hbm [shape: f32[16,128], index: 0, kind: input, shape index: {}]   ;;  %s6755_s1 = inlined_call_operand.hbm [shape: bf16[16,128], index: 1, kind: input, shape index: {}]   ;;  %s6756_s2 = inlined_call_operand.hbm [shape: f32[2,8,8], index: 2, kind: input, shape index: {}]   ;;  %s6757_s3 = inlined_call_operand.hbm [shape: f32[2,1,8], index: 3, kind: input, shape index: {}]   ;;  %s6758_s4 = inlined_call_operand.hbm [shape: f32[2,1,128], index: 4, kind: input, shape index: {}]   ;;  %s6759_s5 = inlined_call_operand.hbm [shape: f32[2,1,128], index: 5, kind: input, shape index: {}]   ;;  %s6760_s6 = inlined_call_operand.hbm [shape: bf16[2,128,384], index: 6, kind: input, shape index: {}]   ;;  %s6761_s7 = inlined_call_operand.vmem [shape: f32[2,1,384], index: 7, kind: input, shape index: {}]   ;;  %s6762_s8 = inlined_call_operand.hbm [shape: bf16[2,128,128], index: 8, kind: input, shape index: {}]   ;;  %s6763_s9 = inlined_call_operand.hbm [shape: f32[2,1,128], index: 9, kind: input, shape index: {}]   ;;  %s6764_s10 = inlined_call_operand.hbm [shape: f32[2,1,128], index: 10, kind: input, shape index: {}]   ;;  %s6765_s11 = inlined_call_operand.hbm [shape: f32[2,1,128], index: 11, kind: input, shape index: {}]   ;;  %s6766_s12 = inlined_call_operand.hbm [shape: bf16[2,128,128], index: 12, kind: input, shape index: {}]   ;;  %s6767_s13 = inlined_call_operand.hbm [shape: f32[2,1,128], index: 13, kind: input, shape index: {}]   ;;  %s6768_s14 = inlined_call_operand.hbm [shape: bf16[2,128,256], index: 14, kind: input, shape index: {}]   ;;  %s6769_s15 = inlined_call_operand.vmem [shape: f32[2,1,256], index: 15, kind: input, shape index: {}]   ;;  %s6770_s16 = inlined_call_operand.hbm [shape: bf16[2,128,128], index: 16, kind: input, shape index: {}]   ;;  %s6771_s17 = inlined_call_operand.vmem [shape: f32[2,1,128], index: 17, kind: input, shape index: {}]   ;;  %s6772_s18 = inlined_call_operand.hbm [shape: f32[2,1,128], index: 18, kind: input, shape index: {}]   ;;  %s6773_s19 = inlined_call_operand.vmem [shape: f32[2,1,128], index: 19, kind: input, shape index: {}]   ;;  %s6774_s20 = inlined_call_operand.hbm [shape: bf16[2,128,256], index: 20, kind: input, shape index: {}]   ;;  %s6775_s21 = inlined_call_operand.vmem [shape: f32[2,1,256], index: 21, kind: input, shape index: {}]   ;;  %s6776_s22 = inlined_call_operand.hbm [shape: bf16[2,256,128], index: 22, kind: input, shape index: {}]   ;;  %s6777_s23 = inlined_call_operand.vmem [shape: f32[2,1,128], index: 23, kind: input, shape index: {}]   ;;  %s6778_s24 = inlined_call_operand.vmem [shape: f32[1,128], index: 24, kind: input, shape index: {}]   ;;  %s6779_s25 = inlined_call_operand.vmem [shape: f32[1,128], index: 25, kind: input, shape index: {}]   ;;  %s6780_s26 = inlined_call_operand.hbm [shape: f32[16,128], index: 26, kind: output, shape index: {}]  }
   0x1   :  { %6791 = sst [smem:[#allocation37_spill]] %s6754_s0 }
   0x2   :  { %6792 = sst [smem:[#allocation38_spill]] %s6755_s1 }
   0x3   :  { %6793 = sst [smem:[#allocation39_spill]] %s6756_s2 }
   0x4   :  { %6794 = sst [smem:[#allocation40_spill]] %s6757_s3 }
   0x5   :  { %6795 = sst [smem:[#allocation41_spill]] %s6758_s4 }
   0x6   :  { %6796 = sst [smem:[#allocation42_spill]] %s6759_s5 }
   0x7   :  { %6797 = sst [smem:[#allocation43_spill]] %s6760_s6 }
   0x8   :  { %6798 = sst [smem:[#allocation44_spill]] %s6761_s7 }
   0x9   :  { %6799 = sst [smem:[#allocation45_spill]] %s6762_s8 }
   0xa   :  { %6800 = sst [smem:[#allocation46_spill]] %s6763_s9 }
   0xb   :  { %6801 = sst [smem:[#allocation47_spill]] %s6764_s10 }
   0xc   :  { %6802 = sst [smem:[#allocation48_spill]] %s6765_s11 }
   0xd   :  { %6803 = sst [smem:[#allocation49_spill]] %s6766_s12 }
   0xe   :  { %6804 = sst [smem:[#allocation50_spill]] %s6767_s13 }
   0xf   :  { %6805 = sst [smem:[#allocation51_spill]] %s6768_s14 }
  0x10   :  { %6806 = sst [smem:[#allocation52_spill]] %s6769_s15 }
  0x11   :  { %6807 = sst [smem:[#allocation53_spill]] %s6770_s16 }
  0x12   :  { %6808 = sst [smem:[#allocation54_spill]] %s6771_s17 }
  0x13   :  { %6809 = sst [smem:[#allocation55_spill]] %s6772_s18 }
  0x14   :  { %6810 = sst [smem:[#allocation56_spill]] %s6773_s19 }
  0x15   :  { %6811 = sst [smem:[#allocation57_spill]] %s6774_s20 }
  0x16   :  { %6812 = sst [smem:[#allocation58_spill]] %s6775_s21 }
  0x17   :  { %6813 = sst [smem:[#allocation59_spill]] %s6776_s22 }
  0x18   :  { %6814 = sst [smem:[#allocation60_spill]] %s6777_s23 }
  0x19   :  { %6815 = sst [smem:[#allocation61_spill]] %s6778_s24 }
  0x1a   :  { %6816 = sst [smem:[#allocation62_spill]] %s6779_s25 }
  0x1b   :  { %6817 = sst [smem:[#allocation63_spill]] %s6780_s26 }
  0x1c   :  { %31 = vsyncpa [#allocation4], 0 }
  0x1d   :  { %32 = vsyncpa [#allocation7], 0 }
  0x1e   :  { %33 = vsyncpa [#allocation10], 0 }
  0x1f   :  { %34 = vsyncpa [#allocation5], 0  ;;  %s5867_s27 = smov 0   ;;  %s5869_s3 = smov 0  }
  0x20   :  { %s5871_s7 = smov 0   ;;  %s5873_s28 = smov 0  }
  0x21   :  { %s5875_s8 = smov 0   ;;  %s5877_s4 = smov 0  }
  0x22 LB: > { %6818 = sst [smem:[#allocation31_spill]] %s5691_s3  ;;  %s5896_s29 = sadd.s32 4294967295, %s5707_s4   ;;  %s5707_s4 = sphi %s5877_s4, %s40_s4   ;;  %s5703_s8 = sphi %s5875_s8, %s6871_s8   ;;  %s5699_s28 = sphi %s5873_s28, %s6870_s28   ;;  %s5695_s7 = sphi %s5871_s7, %s6868_s7   ;;  %s5691_s3 = sphi %s5869_s3, %s6867_s3   ;;  %s5687_s27 = sphi %s5867_s27, %s6866_s27  }
  0x23   : > { %6819 = sst [smem:[#allocation32_spill]] %s5695_s7  ;;  %s49_s0 = sadd.s32 1, %s5703_s8 }
  0x24   : > { %6820 = sst [smem:[#allocation33_spill]] %s5699_s28  ;;  %p50_p0 = scmp.ge.s32.totalorder %s49_s0, 2 }
  0x25   : > { %s163_s9 = sadd.s32 1, %s5695_s7  ;;  %p170_p1 = scmp.ne.s32.totalorder %s5695_s7, %s5691_s3 }
  0x26   : > { %p171_p2 = scmp.eq.s32.totalorder %s5707_s4, 0  ;;  %s6873_s0 = smov (%p50_p0, %s49_s0), 0 }
  0x27   : > { %6821 = sst [smem:[#allocation34_spill]] %s6873_s0  ;;  %p176_p4 = scmp.ne.s32.totalorder %s5691_s3, %s5687_s27 }
  0x28   : > { %p5905_p3 = por %p171_p2, %p170_p1  ;;  %s160_s2 = ssub.s32 %s5703_s8, %s6873_s0 }
  0x29   : > { %p177_p5 = scmp.eq.s32.totalorder %s5896_s29, 0  ;;  %p161_p6 = scmp.eq.s32.totalorder %s160_s2, 0 }
  0x2a   : > { %p4259_p7 = scmp.ge.s32.totalorder %s5707_s4, 1  ;;  %p749_p9 = scmp.lt.s32.totalorder %s5707_s4, 3 }
  0x2b   : > { %p5916_p8 = por %p177_p5, %p176_p4  ;;  %s6827_s25 = sld [smem:[#allocation38_spill]] }
  0x2c   : > { %s5922_s10 = scalar_select %p161_p6, %s5695_s7, %s163_s9  }
  0x2d   : > { %s6823_s5 = scalar_select %p5916_p8, 1, 0 }
  0x2e   : > { %6825 = sst [smem:[#allocation36_spill]] %s5922_s10  ;;  %p5924_p10 = pnand %p4259_p7, %p749_p9 }
  0x2f   : > { %6824 = sst [smem:[#allocation35_spill]] %s6823_s5  ;;  %s5709_s2 = smov [#allocation6]  }
  0x30   : > { %p4894_p11 = pneg %p5924_p10  ;;  %s782_s0 = sshll.u32 %s5709_s2, 4  ;;  %s783_s0 = int_to_ptr.vmem [resolvable:$true] %s782_s0 }
  0x31   : > { %s780_s27 = sshll.u32 %s6827_s25, 4  ;;  %s5710_s9 = smov 64   ;;  %s781_s27 = int_to_ptr.hbm [resolvable:$true] %s780_s27 }
  0x32   : > { %p5935_p12 = pnand %p4894_p11, %p177_p5  ;;  %s5711_s10 = smov 4  }
  0x33   : > { %s6829_s25 = sld [smem:[#allocation37_spill]]  ;;  %s5712_s21 = smov [#allocation3]  }
  0x34   : > { %4900 = dma.hbm_to_vmem [thread:$0]  (!%p5935_p12), %s781_s27, 128, %s783_s0, [#allocation7], %s5710_s9, %s5710_s9, %s5711_s10  }
  0x35   : > { %s765_s2 = sshll.u32 %s5712_s21, 4  ;;  %s6830_s15 = sld [smem:[#allocation39_spill]]  ;;  %s766_s2 = int_to_ptr.vmem [resolvable:$true] %s765_s2 }
  0x36   : > { %s5713_s5 = smov 128   ;;  %s5714_s3 = smov 8  }
  0x37   : > { %s5715_s0 = smov [#allocation8]   ;;  %s6831_s26 = sld [smem:[#allocation40_spill]] }
  0x38   : > { %s799_s10 = sshll.u32 %s5715_s0, 4  ;;  %s5716_s21 = smov [#allocation9]   ;;  %s800_s10 = int_to_ptr.vmem [resolvable:$true] %s799_s10 }
  0x39   : > { %s763_s23 = sshll.u32 %s6829_s25, 4  ;;  %s815_s25 = sshll.u32 %s5716_s21, 4  ;;  %s764_s23 = int_to_ptr.hbm [resolvable:$true] %s763_s23  ;;  %s816_s25 = int_to_ptr.vmem [resolvable:$true] %s815_s25 }
  0x3a   : > { %4897 = dma.hbm_to_vmem [thread:$0]  (!%p5935_p12), %s764_s23, 256, %s766_s2, [#allocation4], %s5713_s5, %s5713_s5, %s5714_s3  }
  0x3b   : > { %s797_s28 = sshll.u32 %s6830_s15, 4  ;;  %s5717_s15 = smov 16   ;;  %s798_s28 = int_to_ptr.hbm [resolvable:$true] %s797_s28 }
  0x3c   : > { %4903 = dma.hbm_to_vmem [thread:$0]  (!%p5935_p12), %s798_s28, 256, %s800_s10, [#allocation7], %s5713_s5, %s5713_s5, %s5714_s3  }
  0x3d   : > { %s813_s1 = sshll.u32 %s6831_s26, 4  ;;  %s5718_s17 = smov 1   ;;  %s814_s1 = int_to_ptr.hbm [resolvable:$true] %s813_s1 }
  0x3e   : > { %4906 = dma.hbm_to_vmem [thread:$0]  (!%p5935_p12), %s814_s1, 32, %s816_s25, [#allocation10], %s5717_s15, %s5717_s15, %s5718_s17  }
  0x3f   : > { %p4264_p13 = scmp.ge.s32.totalorder %s5707_s4, 2 }
  0x40   : > { %s835_s19 = sand.u32 (!%p4264_p13), 1, %s5707_s4   ;;  %s5959_s23 = sand.u32 (!%p4264_p13), 1, %s5695_s7  }
  0x41   : > { %831 = sbr.rel (%p4264_p13) target bundleno = 122 (0x7a), region = 40  ;;  %s6832_s28 = sld [smem:[#allocation41_spill]] (!%p4264_p13) }
  0x42   : > { %s838_s5 = scalar_lea.vmem (!%p4264_p13), [#allocation11], %s5959_s23  ;;  %s5966_s27 = scalar_lea.sflag (!%p4264_p13), [#allocation4], %s835_s19 }
  0x43   : > { %s845_s0 = sshll.u32 (!%p4264_p13), %s838_s5, 4  ;;  %s6833_s1 = sld [smem:[#allocation42_spill]] (!%p4264_p13)  ;;  %s846_s0 = int_to_ptr.vmem [resolvable:$true] %s845_s0 }
  0x44   : > { %s855_s25 = scalar_lea.vmem (!%p4264_p13), [#allocation12], %s5959_s23  ;;  %s4842_s2 = smul.u32 (!%p4264_p13), 192, %s5959_s23 }
  0x45   : > { %s862_s15 = sshll.u32 (!%p4264_p13), %s855_s25, 4  ;;  %s4843_s19 = smul.u32 (!%p4264_p13), 192, %s5703_s8  ;;  %s863_s15 = int_to_ptr.vmem [resolvable:$true] %s862_s15 }
  0x46   : > { %s873_s3 = scalar_lea.vmem [#allocation13], %s4842_s2  ;;  %s5985_s26 = sshll.u32 %s5959_s23, 6 }
  0x47   : > { %s841_s24 = scalar_lea.hbm %s6832_s28, %s5703_s8  ;;  %s881_s28 = sshll.u32 %s873_s3, 4  ;;  %s882_s28 = int_to_ptr.vmem [resolvable:$true] %s881_s28 }
  0x48   : > { %s843_s10 = sshll.u32 %s841_s24, 4  ;;  %s5991_s25 = sshll.u32 %s5703_s8, 6  ;;  %s844_s10 = int_to_ptr.hbm [resolvable:$true] %s843_s10 }
  0x49   : > { %4854 = dma.hbm_to_vmem [thread:$0]  (%p5905_p3), %s844_s10, 16, %s846_s0, %s5966_s27  }
  0x4a   : > { %s858_s21 = scalar_lea.hbm %s6833_s1, %s5703_s8  ;;  %s6834_s0 = sld [smem:[#allocation43_spill]] }
  0x4b   : > { %s860_s17 = sshll.u32 %s858_s21, 4  ;;  %s5719_s1 = smov 192   ;;  %s861_s17 = int_to_ptr.hbm [resolvable:$true] %s860_s17 }
  0x4c   : > { %4855 = dma.hbm_to_vmem [thread:$0]  (%p5905_p3), %s861_s17, 16, %s863_s15, %s5966_s27  }
  0x4d   : > { %s5720_s21 = smov 12   ;;  %s6835_s2 = sld [smem:[#allocation45_spill]] }
  0x4e   : > { %s902_s3 = scalar_lea.vmem [#allocation14], %s5985_s26  ;;  %s923_s15 = scalar_lea.vmem [#allocation15], %s5959_s23 }
  0x4f   : > { %s910_s24 = sshll.u32 %s902_s3, 4  ;;  %s930_s17 = sshll.u32 %s923_s15, 4  ;;  %s911_s24 = int_to_ptr.vmem [resolvable:$true] %s910_s24  ;;  %s931_s17 = int_to_ptr.vmem [resolvable:$true] %s930_s17 }
  0x50   : > { %s878_s10 = scalar_lea.hbm %s6834_s0, %s4843_s19  ;;  %s6787_s0 = smov 64  }
  0x51   : > { %s879_s9 = sshll.u32 %s878_s10, 4  ;;  %s6837_s7 = sld [smem:[#allocation47_spill]]  ;;  %s880_s9 = int_to_ptr.hbm [resolvable:$true] %s879_s9 }
  0x52   : > { %4856 = dma.hbm_to_vmem [thread:$0]  (%p5905_p3), %s880_s9, 3072, %s882_s28, %s5966_s27, %s5719_s1, %s5719_s1, %s5720_s21  }
  0x53   : > { %s907_s19 = scalar_lea.hbm %s6835_s2, %s5991_s25  ;;  %s6789_s28 = smov 4  }
  0x54   : > { %s908_s5 = sshll.u32 %s907_s19, 4  ;;  %s6836_s1 = sld [smem:[#allocation46_spill]]  ;;  %s909_s5 = int_to_ptr.hbm [resolvable:$true] %s908_s5 }
  0x55   : > { %4857 = dma.hbm_to_vmem [thread:$0]  (%p5905_p3), %s909_s5, 1024, %s911_s24, %s5966_s27, %s6787_s0, %s6787_s0, %s6789_s28  }
  0x56   : > { %s940_s5 = scalar_lea.vmem [#allocation16], %s5959_s23  ;;  %s6838_s11 = sld [smem:[#allocation48_spill]] }
  0x57   : > { %s943_s24 = scalar_lea.hbm %s6837_s7, %s5703_s8  ;;  %s947_s0 = sshll.u32 %s940_s5, 4  ;;  %s948_s0 = int_to_ptr.vmem [resolvable:$true] %s947_s0 }
  0x58   : > { %s945_s10 = sshll.u32 %s943_s24, 4  ;;  %s957_s15 = scalar_lea.vmem [#allocation17], %s5959_s23  ;;  %s946_s10 = int_to_ptr.hbm [resolvable:$true] %s945_s10 }
  0x59   : > { %s6839_s12 = sld [smem:[#allocation49_spill]]  ;;  %s975_s3 = scalar_lea.vmem [#allocation18], %s5985_s26 }
  0x5a   : > { %s926_s21 = scalar_lea.hbm %s6836_s1, %s5703_s8  ;;  %s983_s24 = sshll.u32 %s975_s3, 4  ;;  %s984_s24 = int_to_ptr.vmem [resolvable:$true] %s983_s24 }
  0x5b   : > { %s928_s2 = sshll.u32 %s926_s21, 4  ;;  %s6841_s13 = sld [smem:[#allocation50_spill]]  ;;  %s929_s2 = int_to_ptr.hbm [resolvable:$true] %s928_s2 }
  0x5c   : > { %4858 = dma.hbm_to_vmem [thread:$0]  (%p5905_p3), %s929_s2, 16, %s931_s17, %s5966_s27  }
  0x5d   : > { %4859 = dma.hbm_to_vmem [thread:$0]  (%p5905_p3), %s946_s10, 16, %s948_s0, %s5966_s27  }
  0x5e   : > { %s960_s21 = scalar_lea.hbm %s6838_s11, %s5703_s8  ;;  %s964_s17 = sshll.u32 %s957_s15, 4  ;;  %s965_s17 = int_to_ptr.vmem [resolvable:$true] %s964_s17 }
  0x5f   : > { %s962_s2 = sshll.u32 %s960_s21, 4  ;;  %s980_s0 = scalar_lea.hbm %s6839_s12, %s5991_s25  ;;  %s963_s2 = int_to_ptr.hbm [resolvable:$true] %s962_s2 }
  0x60   : > { %4860 = dma.hbm_to_vmem [thread:$0]  (%p5905_p3), %s963_s2, 16, %s965_s17, %s5966_s27  }
  0x61   : > { %s981_s5 = sshll.u32 %s980_s0, 4  ;;  %s6840_s10 = smov 64   ;;  %s982_s5 = int_to_ptr.hbm [resolvable:$true] %s981_s5 }
  0x62   : > { %4861 = dma.hbm_to_vmem [thread:$0]  (%p5905_p3), %s982_s5, 1024, %s984_s24, %s5966_s27, %s6840_s10, %s6840_s10, %s6789_s28  }
  0x63   : > { %s999_s21 = scalar_lea.hbm %s6841_s13, %s5703_s8  ;;  %s996_s15 = scalar_lea.vmem [#allocation19], %s5959_s23 }
  0x64   : > { %s1003_s17 = sshll.u32 %s996_s15, 4  ;;  %s1001_s2 = sshll.u32 %s999_s21, 4  ;;  %s1004_s17 = int_to_ptr.vmem [resolvable:$true] %s1003_s17  ;;  %s1002_s2 = int_to_ptr.hbm [resolvable:$true] %s1001_s2 }
  0x65   : > { %s6045_s7 = sshll.u32 %s5959_s23, 7  ;;  %s6051_s19 = sshll.u32 %s5703_s8, 7 }
  0x66   : > { %4862 = dma.hbm_to_vmem [thread:$0]  (%p5905_p3), %s1002_s2, 16, %s1004_s17, %s5966_s27  }
  0x67   : > { %s6842_s14 = sld [smem:[#allocation51_spill]]  ;;  %s1014_s5 = scalar_lea.vmem [#allocation20], %s6045_s7 }
  0x68   : > { %s1022_s9 = sshll.u32 %s1014_s5, 4  ;;  %s5723_s21 = smov 128   ;;  %s1023_s9 = int_to_ptr.vmem [resolvable:$true] %s1022_s9 }
  0x69   : > { %s5724_s15 = smov 8   ;;  %s6843_s16 = sld [smem:[#allocation53_spill]] }
  0x6a   : > { %s1043_s3 = scalar_lea.vmem [#allocation21], %s5985_s26  ;;  %s6845_s18 = sld [smem:[#allocation55_spill]] }
  0x6b   : > { %s1051_s28 = sshll.u32 %s1043_s3, 4  ;;  %s1070_s17 = scalar_lea.vmem [#allocation22], %s5959_s23  ;;  %s1052_s28 = int_to_ptr.vmem [resolvable:$true] %s1051_s28 }
  0x6c   : > { %s6846_s20 = sld [smem:[#allocation57_spill]]  ;;  %s1094_s12 = scalar_lea.vmem [#allocation23], %s6045_s7 }
  0x6d   : > { %s1019_s24 = scalar_lea.hbm %s6842_s14, %s6051_s19  ;;  %s6847_s22 = sld [smem:[#allocation59_spill]] }
  0x6e   : > { %s1020_s1 = sshll.u32 %s1019_s24, 4  ;;  %s6844_s24 = smov 4   ;;  %s1021_s1 = int_to_ptr.hbm [resolvable:$true] %s1020_s1 }
  0x6f   : > { %4863 = dma.hbm_to_vmem [thread:$0]  (%p5905_p3), %s1021_s1, 2048, %s1023_s9, %s5966_s27, %s5723_s21, %s5723_s21, %s5724_s15  }
  0x70   : > { %s1048_s0 = scalar_lea.hbm %s6843_s16, %s5991_s25  ;;  %s1073_s1 = scalar_lea.hbm %s6845_s18, %s5703_s8 }
  0x71   : > { %s1049_s11 = sshll.u32 %s1048_s0, 4  ;;  %s1077_s25 = sshll.u32 %s1070_s17, 4  ;;  %s1050_s11 = int_to_ptr.hbm [resolvable:$true] %s1049_s11  ;;  %s1078_s25 = int_to_ptr.vmem [resolvable:$true] %s1077_s25 }
  0x72   : > { %4864 = dma.hbm_to_vmem [thread:$0]  (%p5905_p3), %s1050_s11, 1024, %s1052_s28, %s5966_s27, %s6840_s10, %s6840_s10, %s6844_s24  }
  0x73   : > { %s1075_s26 = sshll.u32 %s1073_s1, 4  ;;  %s1099_s3 = scalar_lea.hbm %s6846_s20, %s6051_s19  ;;  %s1076_s26 = int_to_ptr.hbm [resolvable:$true] %s1075_s26 }
  0x74   : > { %4865 = dma.hbm_to_vmem [thread:$0]  (%p5905_p3), %s1076_s26, 16, %s1078_s25, %s5966_s27  }
  0x75   : > { %s1102_s11 = sshll.u32 %s1094_s12, 4  ;;  %s1100_s28 = sshll.u32 %s1099_s3, 4  ;;  %s1103_s11 = int_to_ptr.vmem [resolvable:$true] %s1102_s11  ;;  %s1101_s28 = int_to_ptr.hbm [resolvable:$true] %s1100_s28 }
  0x76   : > { %4866 = dma.hbm_to_vmem [thread:$0]  (%p5905_p3), %s1101_s28, 2048, %s1103_s11, %s5966_s27, %s5723_s21, %s5723_s21, %s5724_s15  }
  0x77   : > { %s1128_s9 = scalar_lea.hbm %s6847_s22, %s6051_s19  ;;  %s1123_s1 = scalar_lea.vmem [#allocation24], %s6045_s7 }
  0x78   : > { %s1131_s17 = sshll.u32 %s1123_s1, 4  ;;  %s1129_s13 = sshll.u32 %s1128_s9, 4  ;;  %s1132_s17 = int_to_ptr.vmem [resolvable:$true] %s1131_s17  ;;  %s1130_s13 = int_to_ptr.hbm [resolvable:$true] %s1129_s13 }
  0x79   : > { %4867 = dma.hbm_to_vmem [thread:$0]  (%p5905_p3), %s1130_s13, 2048, %s1132_s17, %s5966_s27, %s6840_s10, %s6840_s10, %s6844_s24  }
  0x7a PF: > { %1149 = sbr.rel (%p5924_p10) target bundleno = 5922 (0x1722), region = 124 }
  0x7f   : > { %5666 = dma.done.wait (%p177_p5), [#allocation4], 256  }
  0x80   : > { %5668 = vsyncadd (%p177_p5), [#allocation4], 4294967040 }
  0x81   : > { %5670 = dma.done.wait (%p177_p5), [#allocation7], 384  }
  0x82   : > { %5672 = vsyncadd (%p177_p5), [#allocation7], 4294966912 }
  0x83   : > { %5674 = dma.done.wait (%p177_p5), [#allocation10], 32  }
  0x84   : > { %5676 = vsyncadd (%p177_p5), [#allocation10], 4294967264  ;;  %s6848_s12 = sld [smem:[#allocation31_spill]]  ;;  %s1171_s30 = sand.u32 1, %s5896_s29  }
  0x85   : > { %s1172_s27 = scalar_lea.sflag [#allocation4], %s1171_s30 }
  0x8a   : > { %s6115_s6 = sand.u32 1, %s6848_s12  }
  0x8b   : > { %5678 = dma.done.wait (%p5916_p8), %s1172_s27, 12400  }
  0x8c   : > { %5680 = vsyncadd (%p5916_p8), %s1172_s27, 4294954896  ;;  %s6850_s7 = sld [smem:[#allocation33_spill]]  ;;  %s4844_s19 = smul.u32 192, %s6115_s6 }
  0x8d   : > { %s4289_s21 = sshll.u32 %s6115_s6, 6  ;;  %s4291_s15 = sshll.u32 %s6115_s6, 7 }
  0x8e   : > { %s6851_s3 = sld [smem:[#allocation52_spill]]  ;;  %s1183_s23 = scalar_lea.vmem [#allocation12], %s6115_s6 }
  0x8f   : > { %s6853_s12 = sld [smem:[#allocation44_spill]]  ;;  %s6159_s5 = scalar_lea.vmem [#allocation13], %s4844_s19 }
  0x90   : > { %s6854_s10 = sld [smem:[#allocation56_spill]]  ;;  %s6161_s9 = scalar_lea.vmem [#allocation14], %s4289_s21 }
  0x91   : > { %s6855_s20 = sld [smem:[#allocation58_spill]]  ;;  %s1221_s1 = scalar_lea.vmem [#allocation16], %s6115_s6 }
  0x92   : > { %p1446_p0 = scmp.lt.s32.totalorder %s6850_s7, 1  ;;  %s6856_s22 = sld [smem:[#allocation60_spill]] }
  0x93   : > { %s1230_s17 = scalar_lea.vmem [#allocation17], %s6115_s6  ;;  %s6169_s30 = scalar_lea.vmem [#allocation20], %s4291_s15 }
  0x94   : > { %s6127_s24 = scalar_select %p1446_p0, %s6850_s7, 1 }
  0x95   : > { %s6171_s16 = scalar_lea.vmem [#allocation21], %s4289_s21  ;;  %s1278_s18 = scalar_lea.vmem [#allocation22], %s6115_s6 }
  0x96   : > { %s4845_s25 = smul.u32 3, %s6127_s24  ;;  %s4295_s26 = sshll.u32 %s6127_s24, 1 }
  0x97   : > { %s6134_s11 = scalar_lea.vmem %s6851_s3, %s4295_s26  ;;  %s1459_s14 = scalar_lea.vmem %s6854_s10, %s6127_s24 }
  0x98   : > { %s6143_s13 = scalar_lea.vmem %s6853_s12, %s4845_s25  ;;  %s6152_s2 = scalar_lea.vmem %s6855_s20, %s4295_s26 }
  0x99   : > { %s1466_s28 = scalar_lea.vmem %s6856_s22, %s6127_s24  ;;  %s1212_s25 = scalar_lea.vmem [#allocation15], %s6115_s6 }
  0x9a   : > { %s6166_s12 = scalar_lea.vmem [#allocation18], %s4289_s21  ;;  %s1249_s10 = scalar_lea.vmem [#allocation19], %s6115_s6 }
  0x9b   : > { %s6174_s20 = scalar_lea.vmem [#allocation23], %s4291_s15  ;;  %s6176_s26 = scalar_lea.vmem [#allocation24], %s4291_s15 }
  0x9c   : > { %p4297_p1 = scmp.ne.s32.totalorder %s6850_s7, 0 }
  0x9e   : > { %1472 = sbr.rel (%p4297_p1) target bundleno = 166 (0xa6), region = 200 }
  0xa3   : > { %v1473_v0 = vld [vmem:[#allocation3] sm:$0xff]  ;;  %v1474_v1 = vld [vmem:[#allocation3 + $0x8] sm:$0xff] }
  0xa4   : > { %1475 = vst [vmem:[#allocation2] sm:$0xff] %v1473_v0 }
  0xa5   : > { %1476 = vst [vmem:[#allocation2 + $0x8] sm:$0xff] %v1474_v1 }
  0xa6 PF: > { %v5725_v4 = vmov 128.0   ;;  %v4384_v19 = vld [vmem:[%s6159_s5 + $0xa8] sm:$0xf]  ;;  %v4767_v20 = vld [vmem:[%s6159_s5 + $0xb0] sm:$0xf0]  ;;  %s6857_s22 = scalar_lea.vmem [#allocation11], %s6115_s6 }
  0xa7   : > { %5000 = vrcp.f32 %v5725_v4  ;;  %v4766_v21 = vld [vmem:[%s6159_s5 + $0xac] sm:$0xf]  ;;  %v4385_v22 = vor.u32 %v4767_v20, %v4384_v19  ;;  %v4386_v23 = vld [vmem:[%s6159_s5 + $0xb4] sm:$0xf0]  ;;  %v4392_v24 = vld [vmem:[%s6159_s5 + $0xb0] sm:$0xf] }
  0xa8   : > { %v4768_v25 = vld [vmem:[%s6159_s5 + $0xb8] sm:$0xf0]  ;;  %v4389_v26 = vor.u32 %v4766_v21, %v4386_v23  ;;  %v4372_v28 = vld [vmem:[%s6159_s5 + $0x90] sm:$0xf]  ;;  %v4763_v30 = vld [vmem:[%s6159_s5 + $0x94] sm:$0xf] }
  0xa9   : > { %v4393_v27 = vor.u32 %v4768_v25, %v4392_v24  ;;  %1713 = vmatpush.bf16.msra.mxu0 %v4385_v22  ;;  %v4764_v29 = vld [vmem:[%s6159_s5 + $0x98] sm:$0xf0]  ;;  %v4374_v32 = vld [vmem:[%s6159_s5 + $0x9c] sm:$0xf0]  ;;  %v4380_v33 = vld [vmem:[%s6159_s5 + $0x98] sm:$0xf] }
  0xaa   : > { %1727 = vmatpush.bf16.msra.mxu1 %v4389_v26  ;;  %v4373_v31 = vor.u32 %v4764_v29, %v4372_v28  ;;  %v4765_v34 = vld [vmem:[%s6159_s5 + $0xa0] sm:$0xf0]  ;;  %v4377_v35 = vor.u32 %v4763_v30, %v4374_v32  ;;  %v4360_v37 = vld [vmem:[%s6159_s5 + $0x78] sm:$0xf]  ;;  %v4760_v39 = vld [vmem:[%s6159_s5 + $0x7c] sm:$0xf] }
  0xab   : > { %v6179_v2 = vld [vmem:[#allocation2] sm:$0xff]  ;;  %1741 = vmatpush.bf16.msra.mxu2 %v4393_v27  ;;  %v4381_v36 = vor.u32 %v4765_v34, %v4380_v33  ;;  %v4762_v43 = vld [vmem:[%s6159_s5 + $0x88] sm:$0xf0]  ;;  %v4350_v49 = vld [vmem:[%s6159_s5 + $0x6c] sm:$0xf0]  ;;  %vm1779_vm5 = vcmask 261120  }
  0xac   : > { %1481 = vadd.xlane.f32.xlu0 %v6179_v2  ;;  %v1478_v3 = vld [vmem:[#allocation2 + $0x8] sm:$0xff]  ;;  %v4761_v38 = vld [vmem:[%s6159_s5 + $0x80] sm:$0xf0]  ;;  %v4368_v42 = vld [vmem:[%s6159_s5 + $0x80] sm:$0xf]  ;;  %s5726_s7 = smov 96  }
  0xad   : > { %v5001_v5 = vpop.eup %5000  ;;  %1714 = vmatpush.bf16.msra.mxu0 %v4373_v31  ;;  %v4361_v40 = vor.u32 %v4761_v38, %v4360_v37  ;;  %v4362_v41 = vld [vmem:[%s6159_s5 + $0x84] sm:$0xf0]  ;;  %v4369_v45 = vor.u32 %v4762_v43, %v4368_v42  ;;  %v4348_v46 = vld [vmem:[%s6159_s5 + $0x60] sm:$0xf]  ;;  %v4758_v47 = vld [vmem:[%s6159_s5 + $0x68] sm:$0xf0] }
  0xae   : > { %v1486_v6 = vmul.f32 128.0, %v5001_v5  ;;  %vm1490_vm0 = vweird.f32 %v5001_v5  ;;  %1728 = vmatpush.bf16.msra.mxu1 %v4377_v35  ;;  %v4365_v44 = vor.u32 %v4760_v39, %v4362_v41  ;;  %v4757_v48 = vld [vmem:[%s6159_s5 + $0x64] sm:$0xf]  ;;  %v4356_v50 = vld [vmem:[%s6159_s5 + $0x68] sm:$0xf]  ;;  %v4349_v52 = vor.u32 %v4758_v47, %v4348_v46  ;;  %s5727_s19 = smov 64  }
  0xaf   : > { %1742 = vmatpush.bf16.msra.mxu2 %v4381_v36  ;;  %v4759_v51 = vld [vmem:[%s6159_s5 + $0x70] sm:$0xf0]  ;;  %v4353_v53 = vor.u32 %v4757_v48, %v4350_v49  ;;  %v4336_v55 = vld [vmem:[%s6159_s5 + $0x48] sm:$0xf]  ;;  %v4754_v57 = vld [vmem:[%s6159_s5 + $0x4c] sm:$0xf] }
  0xb0   : > { %v1487_v7 = vsub.f32 1.0, %v1486_v6  ;;  %v4357_v54 = vor.u32 %v4759_v51, %v4356_v50  ;;  %v4755_v56 = vld [vmem:[%s6159_s5 + $0x50] sm:$0xf0]  ;;  %v4338_v58 = vld [vmem:[%s6159_s5 + $0x54] sm:$0xf0]  ;;  %vm1817_vm6 = vcmask 1043456  }
  0xb1   : > { %1715 = vmatpush.bf16.msra.mxu0 %v4361_v40  ;;  %v4344_v59 = vld [vmem:[%s6159_s5 + $0x50] sm:$0xf]  ;;  %v4756_v60 = vld [vmem:[%s6159_s5 + $0x58] sm:$0xf0]  ;;  %v4337_v61 = vor.u32 %v4755_v56, %v4336_v55  ;;  %v4341_v62 = vor.u32 %v4754_v57, %v4338_v58  ;;  %v4326_v4 = vld [vmem:[%s6159_s5 + $0x3c] sm:$0xf0] }
  0xb2   : > { %v1488_v8 = vmul.f32 %v5001_v5, %v1487_v7  ;;  %1729 = vmatpush.bf16.msra.mxu1 %v4365_v44  ;;  %v4345_v63 = vor.u32 %v4756_v60, %v4344_v59  ;;  %v4324_v0 = vld [vmem:[%s6159_s5 + $0x30] sm:$0xf]  ;;  %v4752_v1 = vld [vmem:[%s6159_s5 + $0x38] sm:$0xf0]  ;;  %v4753_v6 = vld [vmem:[%s6159_s5 + $0x40] sm:$0xf0] }
  0xb3   : > { %1743 = vmatpush.bf16.msra.mxu2 %v4369_v45  ;;  %v4320_v19 = vld [vmem:[%s6159_s5 + $0x20] sm:$0xf]  ;;  %v4750_v20 = vld [vmem:[%s6159_s5 + $0x28] sm:$0xf0]  ;;  %v4745_v26 = vld [vmem:[%s6159_s5 + $0x4] sm:$0xf] }
  0xb4   : > { %1483 = vadd.xlane.f32.xlu0 %v1478_v3  ;;  %v1489_v9 = vadd.f32 %v5001_v5, %v1488_v8  ;;  %v4325_v8 = vor.u32 %v4752_v1, %v4324_v0  ;;  %v4321_v23 = vor.u32 %v4750_v20, %v4320_v19  ;;  %v4300_v24 = vld [vmem:[%s6159_s5] sm:$0xf]  ;;  %v4746_v25 = vld [vmem:[%s6159_s5 + $0x8] sm:$0xf0]  ;;  %v4302_v27 = vld [vmem:[%s6159_s5 + $0xc] sm:$0xf0] }
  0xb5   : > { %1716 = vmatpush.bf16.msra.mxu0 %v4349_v52  ;;  %v4308_v28 = vld [vmem:[%s6159_s5 + $0x8] sm:$0xf]  ;;  %v4747_v29 = vld [vmem:[%s6159_s5 + $0x10] sm:$0xf0]  ;;  %v4301_v31 = vor.u32 %v4746_v25, %v4300_v24  ;;  %v4305_v34 = vor.u32 %v4745_v26, %v4302_v27  ;;  %v4988_v57 = vld [vmem:[%s6857_s22] ss:$0 sm:$0xff] }
  0xb6   : > { %v6182_v10 = vsel %vm1490_vm0, %v5001_v5, %v1489_v9  ;;  %1730 = vmatpush.bf16.msra.mxu1 %v4353_v53  ;;  %v4332_v5 = vld [vmem:[%s6159_s5 + $0x38] sm:$0xf]  ;;  %v4309_v35 = vor.u32 %v4747_v29, %v4308_v28  ;;  %vm1801_vm7 = vcmask 64512   ;;  %s5728_s21 = smov 32  }
  0xb7   : > { %1744 = vmatpush.bf16.msra.mxu2 %v4357_v54  ;;  %v4312_v9 = vld [vmem:[%s6159_s5 + $0x18] sm:$0xf] }
  0xb9   : > { %1717 = vmatpush.bf16.msra.mxu0 %v4337_v61 }
  0xba   : > { %1731 = vmatpush.bf16.msra.mxu1 %v4341_v62  ;;  %v4989_v62 = vld [vmem:[%s1183_s23] ss:$0 sm:$0xff]  ;;  %s6862_s23 = sld [smem:[#allocation33_spill]] }
  0xbb   : > { %1745 = vmatpush.bf16.msra.mxu2 %v4345_v63 }
  0xbd   : > { %1718 = vmatpush.bf16.msra.mxu0 %v4325_v8 }
  0xc0   : > { %p4734_p2 = scmp.ne.s32.totalorder %s6862_s23, 1 }
 0x11f   : > { %v1482_v11 = vpop.xlane.xlu0 %1481 }
 0x120   : > { %v1492_v12 = vmul.f32 %v6182_v10, %v1482_v11 }
 0x122   : > { %v6186_v13 = vsub.f32 %v6179_v2, %v1492_v12 }
 0x124   : > { %v1496_v14 = vmul.f32 %v6186_v13, %v6186_v13  ;;  %v1535_v59 = vmul.f32 %v4988_v57, %v6186_v13 }
 0x126   : > { %1498 = vadd.xlane.f32.xlu1 %v1496_v14  ;;  %v4333_v14 = vor.u32 %v4753_v6, %v4332_v5  ;;  %v6250_v5 = vld [vmem:[%s6143_s13] sm:$0x7] }
 0x127   : > { %v1484_v15 = vpop.xlane.xlu0 %1483  ;;  %v1579_v6 = vperm.slane %v6250_v5, 0 }
 0x128   : > { %v1493_v16 = vmul.f32 %v6182_v10, %v1484_v15  ;;  %v4749_v15 = vld [vmem:[%s6159_s5 + $0x20] sm:$0xf0]  ;;  %1746 = vmatpush.bf16.msra.mxu2 %v4333_v14 }
 0x129   : > { %v4313_v21 = vor.u32 %v4749_v15, %v4312_v9 }
 0x12a   : > { %v6191_v17 = vsub.f32 %v1478_v3, %v1493_v16  ;;  %v4751_v3 = vld [vmem:[%s6159_s5 + $0x34] sm:$0xf]  ;;  %v4748_v16 = vld [vmem:[%s6159_s5 + $0x1c] sm:$0xf] }
 0x12b   : > { %v4329_v12 = vor.u32 %v4751_v3, %v4326_v4  ;;  %1719 = vmatpush.bf16.msra.mxu0 %v4313_v21 }
 0x12c   : > { %v1497_v18 = vmul.f32 %v6191_v17, %v6191_v17  ;;  %1747 = vmatpush.bf16.msra.mxu2 %v4321_v23  ;;  %v1536_v60 = vmul.f32 %v4988_v57, %v6191_v17 }
 0x12d   : > { %1732 = vmatpush.bf16.msra.mxu1 %v4329_v12  ;;  %v1581_v12 = vperm.slane %v6250_v5, 2 }
 0x12e   : > { %1500 = vadd.xlane.f32.xlu1 %v1497_v18  ;;  %v4314_v18 = vld [vmem:[%s6159_s5 + $0x24] sm:$0xf0]  ;;  %s6863_s5 = sld [smem:[#allocation61_spill]] (!%p4734_p2) }
 0x12f   : > { %v4317_v22 = vor.u32 %v4748_v16, %v4314_v18  ;;  %1720 = vmatpush.bf16.msra.mxu0 %v4301_v31 }
 0x130   : > { %1748 = vmatpush.bf16.msra.mxu2 %v4309_v35 }
 0x131   : > { %1733 = vmatpush.bf16.msra.mxu1 %v4317_v22 }
 0x135   : > { %1734 = vmatpush.bf16.msra.mxu1 %v4305_v34 }
 0x199   : > { %v1499_v7 = vpop.xlane.xlu1 %1498 }
 0x19a   : > { %v1502_v11 = vmul.f32 0.007874016, %v1499_v7  ;;  %v1580_v7 = vperm.slane %v6250_v5, 1 }
 0x19c   : > { %5002 = vrsqrt.f32 %v1502_v11  ;;  %vm1511_vm1 = vcmp.eq.f32.partialorder %v1502_v11, inf  ;;  %v1514_v45 = vand.u32 2147483648, %v1502_v11  ;;  %vm1513_vm2 = vcmp.eq.f32.partialorder %v1502_v11, 0.0 }
 0x1a1   : > { %v1501_v30 = vpop.xlane.xlu1 %1500 }
 0x1a2   : > { %v5003_v32 = vpop.eup %5002  ;;  %v1503_v33 = vmul.f32 0.007874016, %v1501_v30 }
 0x1a3   : > { %v1505_v36 = vmul.f32 %v5003_v32, %v1502_v11 }
 0x1a4   : > { %5004 = vrsqrt.f32 %v1503_v33  ;;  %vm1523_vm3 = vcmp.eq.f32.partialorder %v1503_v33, inf  ;;  %v1526_v53 = vand.u32 2147483648, %v1503_v33  ;;  %vm1525_vm4 = vcmp.eq.f32.partialorder %v1503_v33, 0.0 }
 0x1a5   : > { %v1506_v37 = vmul.f32 %v5003_v32, %v1505_v36 }
 0x1a7   : > { %v1507_v38 = vmul.f32 0.5, %v1506_v37 }
 0x1a9   : > { %v1508_v39 = vsub.f32 1.5, %v1507_v38 }
 0x1aa   : > { %v5005_v40 = vpop.eup %5004 }
 0x1ab   : > { %v1517_v41 = vmul.f32 %v5005_v40, %v1503_v33  ;;  %v1509_v42 = vmul.f32 %v5003_v32, %v1508_v39  ;;  %v6274_v32 = vld [vmem:[#allocation8] sm:$0xff] }
 0x1ad   : > { %v1518_v43 = vmul.f32 %v5005_v40, %v1517_v41  ;;  %v1510_v44 = vmul.f32 %v1509_v42, %v1502_v11 }
 0x1af   : > { %v1512_v46 = vsel %vm1511_vm1, %v1502_v11, %v1510_v44  ;;  %v1519_v47 = vmul.f32 0.5, %v1518_v43 }
 0x1b0   : > { %v1515_v48 = vsel %vm1513_vm2, %v1514_v45, %v1512_v46 }
 0x1b1   : > { %v1520_v49 = vsub.f32 1.5, %v1519_v47  ;;  %v1528_v51 = vadd.f32 1e-06, %v1515_v48  ;;  %v6284_v48 = vld [vmem:[%s6161_s9 + $0x8] sm:$0xff] }
 0x1b2   : > { %1948 = vmatpush.bf16.msrb.mxu2 %v6284_v48 }
 0x1b3   : > { %v1521_v50 = vmul.f32 %v5005_v40, %v1520_v49  ;;  %5006 = vrcp.f32 %v1528_v51  ;;  %v6290_v51 = vld [vmem:[%s6161_s9] sm:$0xff] }
 0x1b5   : > { %v1522_v52 = vmul.f32 %v1521_v50, %v1503_v33 }
 0x1b6   : > { %1949 = vmatpush.bf16.msrb.mxu2 %v6290_v51 }
 0x1b7   : > { %v1524_v54 = vsel %vm1523_vm3, %v1503_v33, %v1522_v52 }
 0x1b8   : > { %v1527_v55 = vsel %vm1525_vm4, %v1526_v53, %v1524_v54 }
 0x1b9   : > { %v1529_v56 = vadd.f32 1e-06, %v1527_v55  ;;  %v5007_v58 = vpop.eup %5006 }
 0x1ba   : > { %v1537_v61 = vmul.f32 %v5007_v58, %v1535_v59 }
 0x1bb   : > { %5008 = vrcp.f32 %v1529_v56 }
 0x1bc   : > { %v1542_v1 = vadd.f32 %v4989_v62, %v1537_v61 }
 0x1c1   : > { %v5009_v63 = vpop.eup %5008 }
 0x1c2   : > { %v1538_v0 = vmul.f32 %v5009_v63, %v1536_v60 }
 0x1c4   : > { %v1543_v3 = vadd.f32 %v4989_v62, %v1538_v0 }
 0x1c6   : > { %v1544_v4 = vpack.c.bf16 %v1543_v3, %v1542_v1 }
 0x1c8   : > { %1721 = vmatmul.bf16.vlgmr.msra.gmra.mxu0 %v1544_v4  ;;  %1735 = vmatmul.bf16.vlgmr.msra.gmra.mxu1 %v1544_v4 }
 0x1c9   : > { %1749 = vmatmul.bf16.vlgmr.msra.gmra.mxu2 %v1544_v4 }
 0x245   : > { %v1722_v13 = vpop.f32.mrf.mxu0  ;;  %v1736_v8 = vpop.f32.mrf.mxu1 }
 0x246   : > { %v1723_v17 = vadd.f32 %v1722_v13, %v1579_v6  ;;  %v1737_v9 = vadd.f32 %v1736_v8, %v1580_v7 }
 0x248   : > { %v1755_v11 = vpack.c.bf16 %v1737_v9, %v1723_v17 }
 0x24a   : > { %v1777_v14 = vunpack.c.h.b16 %v1755_v11  ;;  %v1835_v15 = vunpack.c.l.b16 %v1755_v11 }
 0x24c   : > { %v1750_v16 = vpop.f32.mrf.mxu2  ;;  %v6255_v18 = vpack.c.b16 %v1835_v15, %v1835_v15  ;;  %v6257_v19 = vpack.c.b16 %v1777_v14, %v1777_v14 }
 0x24d   : > { %v1751_v20 = vadd.f32 %v1750_v16, %v1581_v12  ;;  %v1724_v21 = vpop.f32.mrf.mxu0  ;;  %v1738_v22 = vpop.f32.mrf.mxu1 }
 0x24e   : > { %v1725_v23 = vadd.f32 %v1724_v21, %v1579_v6  ;;  %v1739_v24 = vadd.f32 %v1738_v22, %v1580_v7  ;;  %1837 = vrot.lane.b32.xlu1 %v6255_v18, %s5726_s7  ;;  %1839 = vrot.lane.b32.xlu0 %v6257_v19, %s5726_s7  ;;  %v1784_v25 = vsel %vm1779_vm5, %v6257_v19, 0 }
 0x24f   : > { %v1756_v26 = vpack.c.bf16 %v1751_v20, %v1751_v20  ;;  %1793 = vmatpush.bf16.xpose.msra.mxu3 %v1784_v25 }
 0x250   : > { %v6267_v27 = vpack.c.bf16 %v1739_v24, %v1725_v23 }
 0x251   : > { %v1819_v28 = vsel %vm1817_vm6, %v1756_v26, 0  ;;  %v1875_v0 = vunpack.c.l.b16 %v1756_v26 }
 0x252   : > { %v2134_v5 = vunpack.c.h.b16 %v6267_v27 }
 0x253   : > { %v6298_v3 = vpack.c.b16 %v1875_v0, %v1875_v0  ;;  %v6344_v0 = vld [vmem:[#allocation8 + $0x8] sm:$0xff] }
 0x254   : > { %v1752_v4 = vpop.f32.mrf.mxu2 }
 0x256   : > { %1955 = vrot.lane.b32.xlu0 %v6255_v18, %s5727_s19  ;;  %4394 = vmatmul.msk.bf16.vlgmr.msra.gmra.mxu3 %vm1779_vm5, %v1755_v11 }
 0x257   : > { %1828 = vmatpush.bf16.msrb.mxu3 %v1819_v28 }
 0x2c0   : > { %v1840_v29 = vpop.permute.xlu0 %1839  ;;  %v1838_v49 = vpop.permute.xlu1 %1837 }
 0x2c1   : > { %v1845_v30 = vsel %vm1779_vm5, %v1840_v29, 0  ;;  %v4772_v29 = vld [vmem:[%s6161_s9 + $0x18] sm:$0xff] }
 0x2c2   : > { %1854 = vmatpush.bf16.xpose.msra.mxu3 %v1845_v30  ;;  %1920 = vmatpush.bf16.msrb.mxu1 %v4772_v29 }
 0x2c8   : > { %v1956_v50 = vpop.permute.xlu0 %1955 }
 0x2d9   : > { %v1795_v31 = vpop.f32.mrf.mxu3 }
 0x2da   : > { %v1799_v33 = vmul.f32 0.17677669, %v1795_v31  ;;  %v4771_v31 = vld [vmem:[%s6161_s9 + $0x10] sm:$0xff] }
 0x2db   : > { %1921 = vmatpush.bf16.msrb.mxu1 %v4771_v31 }
 0x2dc   : > { %v1800_v34 = vadd.f32 %v1799_v33, %v6274_v32 }
 0x2de   : > { %v1802_v35 = vsel %vm1801_vm7, %v1800_v34, -inf }
 0x2df   : > { %1803 = vmax.xlane.f32.xlu2 %v1802_v35 }
 0x2e1   : > { %v1797_v36 = vpop.f32.mrf.mxu3 }
 0x352   : > { %v1804_v37 = vpop.xlane.xlu2 %1803 }
 0x353   : > { %v1805_v38 = vsub.f32 %v1800_v34, %v1804_v37  ;;  %v4774_v34 = vld [vmem:[%s6161_s9 + $0x28] sm:$0xff]  ;;  %v1753_v37 = vadd.f32 %v1752_v4, %v1581_v12  ;;  %v2135_v12 = vpack.c.b16 %v2134_v5, %v2134_v5 }
 0x354   : > { %2035 = vmatpush.bf16.msra.mxu1 %v4774_v34 }
 0x355   : > { %v1806_v39 = vmul.f32 1.442695, %v1805_v38  ;;  %v6321_v38 = vpack.c.bf16 %v1753_v37, %v1753_v37 }
 0x357   : > { %5010 = vpow2.f32 %v1806_v39 }
 0x35d   : > { %v5011_v40 = vpop.eup %5010 }
 0x35e   : > { %v1808_v41 = vsel %vm1801_vm7, %v5011_v40, 0.0 }
 0x35f   : > { %1809 = vadd.xlane.f32.xlu2 %v1808_v41  ;;  %v2173_v41 = vsel %vm1817_vm6, %v6321_v38, 0 }
 0x377   : > { %1957 = vrot.lane.b32.xlu2 %v6257_v19, %s5727_s19 }
 0x3d2   : > { %v1810_v42 = vpop.xlane.xlu2 %1809 }
 0x3d3   : > { %5012 = vrcp.f32 %v1810_v42 }
 0x3d9   : > { %v5013_v43 = vpop.eup %5012 }
 0x3da   : > { %v1812_v44 = vmul.f32 %v5013_v43, %v5011_v40  ;;  %v1958_v45 = vpop.permute.xlu2 %1957  ;;  %v4773_v43 = vld [vmem:[%s6161_s9 + $0x20] sm:$0xff] }
 0x3db   : > { %v1963_v47 = vsel %vm1779_vm5, %v1958_v45, 0  ;;  %2036 = vmatpush.bf16.msra.mxu1 %v4773_v43 }
 0x3dc   : > { %v1813_v46 = vpack.c.bf16 %v1812_v44, %v1812_v44 }
 0x3de   : > { %4395 = vmatmul.msk.bf16.vlgmr.msrb.gmra.mxu3 %vm1801_vm7, %v1813_v46  ;;  %v2140_v46 = vsel %vm1779_vm5, %v2135_v12, 0 }
 0x3df   : > { %1972 = vmatpush.bf16.xpose.msrb.mxu3 %v1963_v47 }
 0x3ee   : > { %4396 = vmatmul.msk.bf16.vlgmr.msra.gmra.mxu3 %vm1779_vm5, %v1838_v49 }
 0x3fe   : > { %4416 = vmatmul.msk.bf16.vlgmr.msrb.gmra.mxu3 %vm1779_vm5, %v1956_v50 }
 0x461   : > { %v1830_v52 = vpop.f32.mrf.mxu3 }
 0x462   : > { %v1834_v53 = vpack.c.bf16 %v1830_v52, %v1830_v52 }
 0x464   : > { %4415 = vmatmul.msk.bf16.vlgmr.msrb.gmra.mxu2 %vm1779_vm5, %v1834_v53 }
 0x469   : > { %v1832_v54 = vpop.f32.mrf.mxu3 }
 0x471   : > { %v1856_v55 = vpop.f32.mrf.mxu3 }
 0x472   : > { %v1860_v56 = vmul.f32 0.17677669, %v1856_v55 }
 0x474   : > { %v1861_v57 = vadd.f32 %v1860_v56, %v6274_v32  ;;  %v2189_v56 = vunpack.c.l.b16 %v6267_v27 }
 0x476   : > { %v1862_v58 = vsel %vm1801_vm7, %v1861_v57, -inf }
 0x477   : > { %1863 = vmax.xlane.f32.xlu2 %v1862_v58 }
 0x479   : > { %v1858_v59 = vpop.f32.mrf.mxu3 }
 0x481   : > { %v1974_v60 = vpop.f32.mrf.mxu3 }
 0x482   : > { %v1978_v61 = vmul.f32 0.17677669, %v1974_v60 }
 0x484   : > { %v1979_v62 = vadd.f32 %v1978_v61, %v6274_v32 }
 0x486   : > { %v1980_v63 = vsel %vm1801_vm7, %v1979_v62, -inf }
 0x487   : > { %1981 = vmax.xlane.f32.xlu1 %v1980_v63 }
 0x489   : > { %v1976_v1 = vpop.f32.mrf.mxu3 }
 0x48f   : > { %1877 = vrot.lane.b32.xlu2 %v6298_v3, %s5726_s7 }
 0x497   : > { %2043 = vrot.lane.b32.xlu2 %v6255_v18, %s5728_s21 }
 0x4e7   : > { %v6304_v6 = vpop.f32.mrf.mxu2 }
 0x4ea   : > { %v1864_v7 = vpop.xlane.xlu2 %1863 }
 0x4eb   : > { %v1865_v13 = vsub.f32 %v1861_v57, %v1864_v7  ;;  %v2190_v57 = vpack.c.b16 %v2189_v56, %v2189_v56 }
 0x4ed   : > { %v1866_v8 = vmul.f32 1.442695, %v1865_v13 }
 0x4ef   : > { %5014 = vpow2.f32 %v1866_v8  ;;  %v1953_v17 = vpop.f32.mrf.mxu2 }
 0x4f2   : > { %v1878_v9 = vpop.permute.xlu2 %1877 }
 0x4f3   : > { %v1883_v11 = vsel %vm1817_vm6, %v1878_v9, 0 }
 0x4f4   : > { %1892 = vmatpush.bf16.msrb.mxu0 %v1883_v11 }
 0x4f5   : > { %v5015_v14 = vpop.eup %5014 }
 0x4f6   : > { %v1868_v15 = vsel %vm1801_vm7, %v5015_v14, 0.0 }
 0x4f7   : > { %1869 = vadd.xlane.f32.xlu0 %v1868_v15 }
 0x4fa   : > { %v1982_v16 = vpop.xlane.xlu1 %1981  ;;  %v2044_v42 = vpop.permute.xlu2 %2043 }
 0x4fb   : > { %v1983_v20 = vsub.f32 %v1979_v62, %v1982_v16 }
 0x4fd   : > { %v1984_v18 = vmul.f32 1.442695, %v1983_v20 }
 0x4ff   : > { %5016 = vpow2.f32 %v1984_v18 }
 0x505   : > { %v5017_v21 = vpop.eup %5016 }
 0x506   : > { %v1986_v22 = vsel %vm1801_vm7, %v5017_v21, 0.0 }
 0x507   : > { %1987 = vadd.xlane.f32.xlu1 %v1986_v22 }
 0x50b   : > { %1992 = vrot.lane.b32.xlu0 %v6298_v3, %s5727_s19 }
 0x520   : > { %2045 = vrot.lane.b32.xlu1 %v6257_v19, %s5728_s21 }
 0x56a   : > { %v1870_v23 = vpop.xlane.xlu0 %1869 }
 0x56b   : > { %5018 = vrcp.f32 %v1870_v23 }
 0x571   : > { %v5019_v24 = vpop.eup %5018 }
 0x572   : > { %v1872_v25 = vmul.f32 %v5019_v24, %v5015_v14 }
 0x574   : > { %v1873_v26 = vpack.c.bf16 %v1872_v25, %v1872_v25 }
 0x576   : > { %4397 = vmatmul.msk.bf16.vlgmr.msrb.gmra.mxu0 %vm1801_vm7, %v1873_v26 }
 0x57a   : > { %v1988_v28 = vpop.xlane.xlu1 %1987 }
 0x57b   : > { %5020 = vrcp.f32 %v1988_v28 }
 0x57d   : > { %v1993_v30 = vpop.permute.xlu0 %1992 }
 0x57e   : > { %v1998_v33 = vsel %vm1817_vm6, %v1993_v30, 0 }
 0x57f   : > { %2007 = vmatpush.bf16.msra.mxu0 %v1998_v33 }
 0x581   : > { %v5021_v35 = vpop.eup %5020 }
 0x582   : > { %v1990_v19 = vmul.f32 %v5021_v35, %v5017_v21  ;;  %v6362_v35 = vld [vmem:[%s6161_s9 + $0x38] sm:$0xff] }
 0x583   : > { %2123 = vmatpush.bf16.msrb.mxu0 %v6362_v35 }
 0x584   : > { %v1991_v36 = vpack.c.bf16 %v1990_v19, %v1990_v19 }
 0x586   : > { %4417 = vmatmul.msk.bf16.vlgmr.msra.gmra.mxu0 %vm1801_vm7, %v1991_v36 }
 0x592   : > { %v2046_v39 = vpop.permute.xlu1 %2045 }
 0x593   : > { %v2051_v40 = vsel %vm1779_vm5, %v2046_v39, 0 }
 0x594   : > { %2060 = vmatpush.bf16.xpose.msra.mxu2 %v2051_v40  ;;  %v6369_v40 = vld [vmem:[%s6161_s9 + $0x30] sm:$0xff]  ;;  %s6858_s9 = sld [smem:[#allocation54_spill]] }
 0x595   : > { %2124 = vmatpush.bf16.msrb.mxu0 %v6369_v40 }
 0x59a   : > { %s6859_s13 = scalar_lea.vmem %s6858_s9, %s6127_s24 }
 0x59b   : > { %4427 = vmatmul.msk.bf16.vlgmr.msra.gmra.mxu2 %vm1779_vm5, %v2044_v42 }
 0x59c   : > { %2182 = vmatpush.bf16.msrb.mxu2 %v2173_v41 }
 0x5a0   : > { %2278 = vmatpush.bf16.msra.mxu2 %v6284_v48 }
 0x5a4   : > { %2279 = vmatpush.bf16.msra.mxu2 %v6290_v51 }
 0x5f3   : > { %v1894_v44 = vpop.f32.mrf.mxu0 }
 0x5f4   : > { %v1898_v45 = vpack.c.bf16 %v1894_v44, %v1894_v44 }
 0x5f6   : > { %4406 = vmatmul.msk.bf16.vlgmr.msrb.gmra.mxu1 %vm1779_vm5, %v1898_v45 }
 0x5f7   : > { %2149 = vmatpush.bf16.xpose.msrb.mxu1 %v2140_v46 }
 0x5fb   : > { %v1896_v47 = vpop.f32.mrf.mxu0 }
 0x603   : > { %v2009_v49 = vpop.f32.mrf.mxu0 }
 0x604   : > { %v2013_v50 = vpack.c.bf16 %v2009_v49, %v2009_v49 }
 0x606   : > { %4426 = vmatmul.msk.bf16.vlgmr.msra.gmra.mxu1 %vm1779_vm5, %v2013_v50 }
 0x607   : > { %2262 = vmatpush.bf16.msra.mxu1 %v4772_v29 }
 0x60b   : > { %v2011_v48 = vpop.f32.mrf.mxu0  ;;  %2263 = vmatpush.bf16.msra.mxu1 %v4771_v31 }
 0x616   : > { %4438 = vmatmul.msk.bf16.vlgmr.msrb.gmra.mxu1 %vm1779_vm5, %v6267_v27 }
 0x617   : > { %2353 = vmatpush.bf16.msrb.mxu1 %v4774_v34 }
 0x61b   : > { %2354 = vmatpush.bf16.msrb.mxu1 %v4773_v43 }
 0x61e   : > { %v2062_v51 = vpop.f32.mrf.mxu2 }
 0x61f   : > { %v2066_v52 = vmul.f32 0.17677669, %v2062_v51 }
 0x621   : > { %v2067_v53 = vadd.f32 %v2066_v52, %v6274_v32 }
 0x623   : > { %v2068_v54 = vsel %vm1801_vm7, %v2067_v53, -inf }
 0x624   : > { %2069 = vmax.xlane.f32.xlu1 %v2068_v54 }
 0x626   : > { %v2064_v55 = vpop.f32.mrf.mxu2 }
 0x63d   : > { %2191 = vrot.lane.b32.xlu1 %v2190_v57, %s5726_s7 }
 0x645   : > { %2361 = vrot.lane.b32.xlu1 %v2190_v57, %s5728_s21 }
 0x673   : > { %v1923_v58 = vpop.f32.mrf.mxu1 }
 0x674   : > { %v1952_v60 = vadd.f32 %v6304_v6, %v1923_v58 }
 0x67b   : > { %v1925_v59 = vpop.f32.mrf.mxu1 }
 0x683   : > { %v2038_v61 = vpop.f32.mrf.mxu1 }
 0x684   : > { %v6342_v62 = vadd.f32 %v2038_v61, %v1952_v60 }
 0x68b   : > { %v2040_v63 = vpop.f32.mrf.mxu1 }
 0x693   : > { %v2151_v32 = vpop.f32.mrf.mxu1 }
 0x694   : > { %v2155_v1 = vmul.f32 0.17677669, %v2151_v32 }
 0x696   : > { %v2156_v4 = vadd.f32 %v2155_v1, %v6344_v0 }
 0x697   : > { %v2070_v27 = vpop.xlane.xlu1 %2069 }
 0x698   : > { %v2071_v7 = vsub.f32 %v2067_v53, %v2070_v27  ;;  %v2157_v13 = vsel %vm1801_vm7, %v2156_v4, -inf }
 0x699   : > { %2158 = vmax.xlane.f32.xlu0 %v2157_v13 }
 0x69a   : > { %v2072_v8 = vmul.f32 1.442695, %v2071_v7 }
 0x69b   : > { %v2153_v17 = vpop.f32.mrf.mxu1 }
 0x69c   : > { %5022 = vpow2.f32 %v2072_v8 }
 0x6a2   : > { %v5023_v9 = vpop.eup %5022 }
 0x6a3   : > { %v2074_v6 = vsel %vm1801_vm7, %v5023_v9, 0.0 }
 0x6a4   : > { %2075 = vadd.xlane.f32.xlu0 %v2074_v6 }
 0x6af   : > { %v2192_v37 = vpop.permute.xlu1 %2191 }
 0x6b7   : > { %v2362_v46 = vpop.permute.xlu1 %2361 }
 0x6b8   : > { %2193 = vrot.lane.b32.xlu0 %v2135_v12, %s5726_s7 }
 0x6c0   : > { %2363 = vrot.lane.b32.xlu0 %v2135_v12, %s5728_s21 }
 0x6c8   : > { %2285 = vrot.lane.b32.xlu0 %v2190_v57, %s5727_s19 }
 0x70c   : > { %v2159_v11 = vpop.xlane.xlu0 %2158 }
 0x70d   : > { %v2160_v14 = vsub.f32 %v2156_v4, %v2159_v11 }
 0x70f   : > { %v2161_v15 = vmul.f32 1.442695, %v2160_v14 }
 0x711   : > { %5024 = vpow2.f32 %v2161_v15  ;;  %v2229_v15 = vunpack.c.l.b16 %v6321_v38 }
 0x717   : > { %v5025_v16 = vpop.eup %5024  ;;  %v2076_v18 = vpop.xlane.xlu0 %2075 }
 0x718   : > { %v2163_v20 = vsel %vm1801_vm7, %v5025_v16, 0.0  ;;  %5026 = vrcp.f32 %v2076_v18 }
 0x719   : > { %2164 = vadd.xlane.f32.xlu2 %v2163_v20  ;;  %v6392_v20 = vld [vmem:[%s1212_s25] ss:$0 sm:$0xff] }
 0x71e   : > { %v5027_v23 = vpop.eup %5026 }
 0x71f   : > { %v2078_v25 = vmul.f32 %v5027_v23, %v5023_v9 }
 0x72a   : > { %v2194_v21 = vpop.permute.xlu0 %2193 }
 0x72b   : > { %v2199_v31 = vsel %vm1779_vm5, %v2194_v21, 0 }
 0x731   : > { %2080 = vrot.lane.b32.xlu2 %v6298_v3, %s5728_s21  ;;  %v2079_v3 = vpack.c.bf16 %v2078_v25, %v2078_v25 }
 0x732   : > { %v2364_v29 = vpop.permute.xlu0 %2363 }
 0x733   : > { %v2369_v34 = vsel %vm1779_vm5, %v2364_v29, 0 }
 0x739   : > { %2287 = vrot.lane.b32.xlu2 %v2135_v12, %s5727_s19 }
 0x73a   : > { %v2286_v39 = vpop.permute.xlu0 %2285 }
 0x78c   : > { %v2165_v22 = vpop.xlane.xlu2 %2164 }
 0x78d   : > { %5028 = vrcp.f32 %v2165_v22 }
 0x793   : > { %v5029_v24 = vpop.eup %5028 }
 0x794   : > { %v2167_v26 = vmul.f32 %v5029_v24, %v5025_v16  ;;  %v2081_v28 = vpop.permute.xlu2 %2080  ;;  %v2230_v16 = vpack.c.b16 %v2229_v15, %v2229_v15 }
 0x795   : > { %v2086_v30 = vsel %vm1817_vm6, %v2081_v28, 0 }
 0x796   : > { %v2168_v33 = vpack.c.bf16 %v2167_v26, %v2167_v26  ;;  %2095 = vmatpush.bf16.msra.mxu3 %v2086_v30 }
 0x798   : > { %4439 = vmatmul.msk.bf16.vlgmr.msrb.gmra.mxu2 %vm1801_vm7, %v2168_v33 }
 0x799   : > { %2378 = vmatpush.bf16.xpose.msrb.mxu2 %v2369_v34  ;;  %4428 = vmatmul.msk.bf16.vlgmr.msra.gmra.mxu3 %vm1801_vm7, %v2079_v3 }
 0x79a   : > { %2208 = vmatpush.bf16.xpose.msrb.mxu3 %v2199_v31 }
 0x79c   : > { %v2288_v19 = vpop.permute.xlu2 %2287 }
 0x79d   : > { %v2293_v36 = vsel %vm1779_vm5, %v2288_v19, 0 }
 0x7a2   : > { %2302 = vmatpush.bf16.xpose.msra.mxu3 %v2293_v36 }
 0x7a9   : > { %4440 = vmatmul.msk.bf16.vlgmr.msrb.gmra.mxu3 %vm1779_vm5, %v2192_v37 }
 0x7b9   : > { %4444 = vmatmul.msk.bf16.vlgmr.msra.gmra.mxu3 %vm1779_vm5, %v2286_v39 }
 0x81b   : > { %v2184_v41 = vpop.f32.mrf.mxu2 }
 0x81c   : > { %v2188_v42 = vpack.c.bf16 %v2184_v41, %v2184_v41  ;;  %v2097_v43 = vpop.f32.mrf.mxu3 }
 0x81d   : > { %v2101_v5 = vpack.c.bf16 %v2097_v43, %v2097_v43 }
 0x81e   : > { %4443 = vmatmul.msk.bf16.vlgmr.msra.gmra.mxu2 %vm1779_vm5, %v2188_v42 }
 0x81f   : > { %4437 = vmatmul.msk.bf16.vlgmr.msrb.gmra.mxu0 %vm1779_vm5, %v2101_v5 }
 0x823   : > { %v2186_v12 = vpop.f32.mrf.mxu2 }
 0x824   : > { %v2099_v44 = vpop.f32.mrf.mxu3 }
 0x82c   : > { %v2210_v45 = vpop.f32.mrf.mxu3 }
 0x82d   : > { %v2214_v47 = vmul.f32 0.17677669, %v2210_v45 }
 0x82e   : > { %4447 = vmatmul.msk.bf16.vlgmr.msrb.gmra.mxu2 %vm1779_vm5, %v2362_v46 }
 0x82f   : > { %v2215_v49 = vadd.f32 %v2214_v47, %v6344_v0 }
 0x831   : > { %v2216_v50 = vsel %vm1801_vm7, %v2215_v49, -inf }
 0x832   : > { %2217 = vmax.xlane.f32.xlu2 %v2216_v50 }
 0x834   : > { %v2212_v48 = vpop.f32.mrf.mxu3 }
 0x83c   : > { %v2304_v51 = vpop.f32.mrf.mxu3 }
 0x83d   : > { %v2308_v52 = vmul.f32 0.17677669, %v2304_v51 }
 0x83f   : > { %v2309_v53 = vadd.f32 %v2308_v52, %v6344_v0 }
 0x841   : > { %v2310_v54 = vsel %vm1801_vm7, %v2309_v53, -inf }
 0x842   : > { %2311 = vmax.xlane.f32.xlu0 %v2310_v54 }
 0x844   : > { %v2306_v55 = vpop.f32.mrf.mxu3 }
 0x89c   : > { %v2126_v56 = vpop.f32.mrf.mxu0 }
 0x89d   : > { %v2130_v57 = vadd.f32 %v2126_v56, %v6342_v62 }
 0x8a1   : > { %v6380_v58 = vpop.f32.mrf.mxu2 }
 0x8a4   : > { %v2128_v59 = vpop.f32.mrf.mxu0 }
 0x8a5   : > { %v2218_v60 = vpop.xlane.xlu2 %2217 }
 0x8a6   : > { %v2219_v61 = vsub.f32 %v2215_v49, %v2218_v60 }
 0x8a8   : > { %v2220_v63 = vmul.f32 1.442695, %v2219_v61 }
 0x8a9   : > { %v2283_v32 = vpop.f32.mrf.mxu2 }
 0x8aa   : > { %5030 = vpow2.f32 %v2220_v63  ;;  %v5090_v32 = vld [vmem:[#allocation2 + $0x8] sm:$0xff] }
 0x8b0   : > { %v5031_v1 = vpop.eup %5030 }
 0x8b1   : > { %v2380_v4 = vpop.f32.mrf.mxu2  ;;  %v2222_v27 = vsel %vm1801_vm7, %v5031_v1, 0.0 }
 0x8b2   : > { %v2384_v7 = vmul.f32 0.17677669, %v2380_v4  ;;  %2223 = vadd.xlane.f32.xlu2 %v2222_v27 }
 0x8b4   : > { %v2385_v13 = vadd.f32 %v2384_v7, %v6344_v0  ;;  %v2437_v0 = vadd.f32 %v2130_v57, %v6179_v2  ;;  %v4801_v7 = vld [vmem:[%s6169_s30 + $0x74] sm:$0xf0] }
 0x8b5   : > { %v2312_v8 = vpop.xlane.xlu0 %2311 }
 0x8b6   : > { %v2313_v17 = vsub.f32 %v2309_v53, %v2312_v8  ;;  %v2386_v62 = vsel %vm1801_vm7, %v2385_v13, -inf  ;;  %v6395_v18 = vadd.f32 %v6392_v20, %v2437_v0  ;;  %v4528_v0 = vld [vmem:[%s6169_s30 + $0x50] sm:$0xf] }
 0x8b7   : > { %2387 = vmax.xlane.f32.xlu1 %v2386_v62  ;;  %v4536_v62 = vld [vmem:[%s6169_s30 + $0x60] sm:$0xf] }
 0x8b8   : > { %v2314_v9 = vmul.f32 1.442695, %v2313_v17  ;;  %v4546_v17 = vld [vmem:[%s6169_s30 + $0x78] sm:$0xf0] }
 0x8b9   : > { %v2382_v6 = vpop.f32.mrf.mxu2 }
 0x8ba   : > { %5032 = vpow2.f32 %v2314_v9  ;;  %v4799_v9 = vld [vmem:[%s6169_s30 + $0x64] sm:$0xf0] }
 0x8bb   : > { %v4537_v15 = vor.u32 %v4799_v9, %v4536_v62  ;;  %v4778_v62 = vld [vmem:[%s6166_s12 + $0x8] sm:$0xff] }
 0x8c0   : > { %v5033_v11 = vpop.eup %5032 }
 0x8c1   : > { %v2316_v14 = vsel %vm1801_vm7, %v5033_v11, 0.0 }
 0x8c2   : > { %2317 = vadd.xlane.f32.xlu2 %v2316_v14  ;;  %v4538_v14 = vld [vmem:[%s6169_s30 + $0x68] sm:$0xf0] }
 0x8d0   : > { %2231 = vrot.lane.b32.xlu1 %v2230_v16, %s5726_s7 }
 0x8da   : > { %2322 = vrot.lane.b32.xlu2 %v2230_v16, %s5727_s19 }
 0x8fa   : > { %2447 = vadd.xlane.f32.xlu1 %v6395_v18 }
 0x925   : > { %v2224_v24 = vpop.xlane.xlu2 %2223 }
 0x92a   : > { %v2388_v21 = vpop.xlane.xlu1 %2387 }
 0x92b   : > { %v2389_v22 = vsub.f32 %v2385_v13, %v2388_v21  ;;  %v4800_v13 = vld [vmem:[%s6169_s30 + $0x74] sm:$0xf] }
 0x92c   : > { %v4549_v6 = vor.u32 %v4800_v13, %v4546_v17  ;;  %v4796_v21 = vld [vmem:[%s6169_s30 + $0x54] sm:$0xf] }
 0x92d   : > { %v2390_v23 = vmul.f32 1.442695, %v2389_v22  ;;  %v4530_v22 = vld [vmem:[%s6169_s30 + $0x58] sm:$0xf0] }
 0x92f   : > { %5034 = vpow2.f32 %v2390_v23 }
 0x930   : > { %5036 = vrcp.f32 %v2224_v24  ;;  %v4533_v24 = vor.u32 %v4796_v21, %v4530_v22 }
 0x935   : > { %v5035_v38 = vpop.eup %5034  ;;  %v2318_v26 = vpop.xlane.xlu2 %2317 }
 0x936   : > { %v2392_v25 = vsel %vm1801_vm7, %v5035_v38, 0.0  ;;  %v5037_v2 = vpop.eup %5036  ;;  %5038 = vrcp.f32 %v2318_v26  ;;  %v4794_v26 = vld [vmem:[%s6169_s30 + $0x44] sm:$0xf] }
 0x937   : > { %2393 = vadd.xlane.f32.xlu0 %v2392_v25  ;;  %v2226_v28 = vmul.f32 %v5037_v2, %v5031_v1  ;;  %v4795_v25 = vld [vmem:[%s6169_s30 + $0x44] sm:$0xf0]  ;;  %v4522_v2 = vld [vmem:[%s6169_s30 + $0x48] sm:$0xf0] }
 0x939   : > { %v2227_v3 = vpack.c.bf16 %v2226_v28, %v2226_v28 }
 0x93c   : > { %v5039_v34 = vpop.eup %5038 }
 0x93d   : > { %v2323_v29 = vpop.permute.xlu2 %2322  ;;  %v2320_v19 = vmul.f32 %v5039_v34, %v5033_v11  ;;  %v4798_v11 = vld [vmem:[%s6169_s30 + $0x64] sm:$0xf] }
 0x93e   : > { %v2328_v33 = vsel %vm1817_vm6, %v2323_v29, 0  ;;  %v4525_v29 = vor.u32 %v4794_v26, %v4522_v2 }
 0x93f   : > { %v2321_v36 = vpack.c.bf16 %v2320_v19, %v2320_v19 }
 0x942   : > { %v2232_v30 = vpop.permute.xlu1 %2231 }
 0x943   : > { %v2237_v31 = vsel %vm1817_vm6, %v2232_v30, 0  ;;  %v4512_v30 = vld [vmem:[%s6169_s30 + $0x30] sm:$0xf] }
 0x944   : > { %2246 = vmatpush.bf16.msra.mxu0 %v2237_v31  ;;  %v4793_v31 = vld [vmem:[%s6169_s30 + $0x34] sm:$0xf0] }
 0x945   : > { %v4513_v34 = vor.u32 %v4793_v31, %v4512_v30 }
 0x947   : > { %4441 = vmatmul.msk.bf16.vlgmr.msra.gmra.mxu0 %vm1801_vm7, %v2227_v3  ;;  %v4514_v3 = vld [vmem:[%s6169_s30 + $0x38] sm:$0xf0] }
 0x948   : > { %2337 = vmatpush.bf16.msrb.mxu0 %v2328_v33  ;;  %v4792_v33 = vld [vmem:[%s6169_s30 + $0x34] sm:$0xf] }
 0x949   : > { %v4517_v19 = vor.u32 %v4792_v33, %v4514_v3 }
 0x94b   : > { %2398 = vrot.lane.b32.xlu0 %v2230_v16, %s5728_s21  ;;  %v4541_v16 = vor.u32 %v4798_v11, %v4538_v14  ;;  %v4777_v14 = vld [vmem:[%s6166_s12] sm:$0xff] }
 0x94c   : > { %2429 = vmatpush.bf16.msra.mxu0 %v6362_v35 }
 0x950   : > { %2430 = vmatpush.bf16.msra.mxu0 %v6369_v40 }
 0x957   : > { %4445 = vmatmul.msk.bf16.vlgmr.msrb.gmra.mxu0 %vm1801_vm7, %v2321_v36  ;;  %v4504_v36 = vld [vmem:[%s6169_s30 + $0x20] sm:$0xf] }
 0x96d   : > { %v2448_v37 = vpop.xlane.xlu1 %2447 }
 0x96e   : > { %v2451_v39 = vmul.f32 %v2448_v37, %v6182_v10  ;;  %v4791_v37 = vld [vmem:[%s6169_s30 + $0x24] sm:$0xf0] }
 0x970   : > { %v6408_v41 = vsub.f32 %v6395_v18, %v2451_v39  ;;  %v4790_v39 = vld [vmem:[%s6169_s30 + $0x24] sm:$0xf] }
 0x972   : > { %v2455_v42 = vmul.f32 %v6408_v41, %v6408_v41 }
 0x974   : > { %2457 = vadd.xlane.f32.xlu2 %v2455_v42  ;;  %v4506_v42 = vld [vmem:[%s6169_s30 + $0x28] sm:$0xf0] }
 0x9aa   : > { %v2394_v35 = vpop.xlane.xlu0 %2393 }
 0x9ab   : > { %5040 = vrcp.f32 %v2394_v35  ;;  %v4505_v35 = vor.u32 %v4791_v37, %v4504_v36 }
 0x9b1   : > { %v5041_v43 = vpop.eup %5040 }
 0x9b2   : > { %v2396_v5 = vmul.f32 %v5041_v43, %v5035_v38  ;;  %v4520_v38 = vld [vmem:[%s6169_s30 + $0x40] sm:$0xf]  ;;  %v4509_v43 = vor.u32 %v4790_v39, %v4506_v42 }
 0x9b3   : > { %v4521_v28 = vor.u32 %v4795_v25, %v4520_v38 }
 0x9b4   : > { %v2397_v44 = vpack.c.bf16 %v2396_v5, %v2396_v5  ;;  %v4496_v5 = vld [vmem:[%s6169_s30 + $0x10] sm:$0xf] }
 0x9bd   : > { %v2399_v40 = vpop.permute.xlu0 %2398 }
 0x9be   : > { %v2404_v12 = vsel %vm1817_vm6, %v2399_v40, 0  ;;  %v4789_v40 = vld [vmem:[%s6169_s30 + $0x14] sm:$0xf0] }
 0x9bf   : > { %2413 = vmatpush.bf16.msrb.mxu3 %v2404_v12  ;;  %v4788_v12 = vld [vmem:[%s6169_s30 + $0x14] sm:$0xf] }
 0x9c2   : > { %4448 = vmatmul.msk.bf16.vlgmr.msrb.gmra.mxu3 %vm1801_vm7, %v2397_v44  ;;  %v4498_v44 = vld [vmem:[%s6169_s30 + $0x18] sm:$0xf0] }
 0x9c3   : > { %2712 = vmatpush.bf16.msra.mxu3 %v4549_v6 }
 0x9c4   : > { %v2248_v45 = vpop.f32.mrf.mxu0 }
 0x9c5   : > { %v2252_v46 = vpack.c.bf16 %v2248_v45, %v2248_v45  ;;  %v4497_v45 = vor.u32 %v4789_v40, %v4496_v5  ;;  %v4991_v40 = vld [vmem:[%s1221_s1] ss:$0 sm:$0xff] }
 0x9c7   : > { %4442 = vmatmul.msk.bf16.vlgmr.msra.gmra.mxu1 %vm1779_vm5, %v2252_v46  ;;  %2713 = vmatpush.bf16.msra.mxu3 %v4541_v16  ;;  %v4501_v46 = vor.u32 %v4788_v12, %v4498_v44 }
 0x9cb   : > { %2714 = vmatpush.bf16.msra.mxu3 %v4533_v24 }
 0x9cc   : > { %v2250_v47 = vpop.f32.mrf.mxu0 }
 0x9cd   : > { %v4488_v47 = vld [vmem:[%s6169_s30] sm:$0xf] }
 0x9cf   : > { %2715 = vmatpush.bf16.msra.mxu3 %v4525_v29 }
 0x9d3   : > { %2716 = vmatpush.bf16.msra.mxu3 %v4517_v19 }
 0x9d4   : > { %v2339_v49 = vpop.f32.mrf.mxu0 }
 0x9d5   : > { %v2343_v50 = vpack.c.bf16 %v2339_v49, %v2339_v49  ;;  %v4787_v49 = vld [vmem:[%s6169_s30 + $0x4] sm:$0xf0] }
 0x9d7   : > { %4446 = vmatmul.msk.bf16.vlgmr.msrb.gmra.mxu1 %vm1779_vm5, %v2343_v50  ;;  %2717 = vmatpush.bf16.msra.mxu3 %v4509_v43 }
 0x9db   : > { %2718 = vmatpush.bf16.msra.mxu3 %v4501_v46 }
 0x9dc   : > { %v2341_v48 = vpop.f32.mrf.mxu0 }
 0x9dd   : > { %v4786_v48 = vld [vmem:[%s6169_s30 + $0x4] sm:$0xf] }
 0xa44   : > { %v2265_v51 = vpop.f32.mrf.mxu1 }
 0xa45   : > { %v2415_v52 = vpop.f32.mrf.mxu3  ;;  %v2282_v56 = vadd.f32 %v6380_v58, %v2265_v51  ;;  %v4544_v58 = vld [vmem:[%s6169_s30 + $0x70] sm:$0xf]  ;;  %v4490_v51 = vld [vmem:[%s6169_s30 + $0x8] sm:$0xf0] }
 0xa46   : > { %v2419_v53 = vpack.c.bf16 %v2415_v52, %v2415_v52  ;;  %v4545_v8 = vor.u32 %v4801_v7, %v4544_v58  ;;  %v4780_v7 = vld [vmem:[%s6166_s12 + $0x18] sm:$0xff] }
 0xa48   : > { %4449 = vmatmul.msk.bf16.vlgmr.msra.gmra.mxu0 %vm1779_vm5, %v2419_v53  ;;  %2698 = vmatpush.bf16.msra.mxu2 %v4545_v8  ;;  %v4489_v53 = vor.u32 %v4787_v49, %v4488_v47  ;;  %v4779_v8 = vld [vmem:[%s6166_s12 + $0x10] sm:$0xff] }
 0xa4c   : > { %v2267_v54 = vpop.f32.mrf.mxu1  ;;  %2699 = vmatpush.bf16.msra.mxu2 %v4537_v15 }
 0xa4d   : > { %v2417_v55 = vpop.f32.mrf.mxu3 }
 0xa4e   : > { %v4493_v55 = vor.u32 %v4786_v48, %v4490_v51 }
 0xa50   : > { %2719 = vmatpush.bf16.msra.mxu3 %v4493_v55 }
 0xa54   : > { %v2356_v57 = vpop.f32.mrf.mxu1 }
 0xa55   : > { %v2360_v59 = vadd.f32 %v2356_v57, %v2282_v56  ;;  %v4785_v57 = vld [vmem:[#allocation6] sm:$0xff] }
 0xa56   : > { %2720 = vmatmul.bf16.vlgmr.msra.gmra.mxu3 %v4785_v57 }
 0xa5c   : > { %v2358_v60 = vpop.f32.mrf.mxu1 }
 0xac5   : > { %v2432_v61 = vpop.f32.mrf.mxu0 }
 0xac6   : > { %v2436_v63 = vadd.f32 %v2432_v61, %v2360_v59  ;;  %v2458_v59 = vpop.xlane.xlu2 %2457  ;;  %v4784_v61 = vld [vmem:[%s6166_s12 + $0x38] sm:$0xff] }
 0xac7   : > { %v2461_v60 = vmul.f32 0.007874016, %v2458_v59  ;;  %2572 = vmatpush.bf16.msra.mxu1 %v4784_v61 }
 0xac8   : > { %v2438_v1 = vadd.f32 %v5090_v32, %v2436_v63  ;;  %v4783_v63 = vld [vmem:[%s6166_s12 + $0x30] sm:$0xff]  ;;  %v4782_v32 = vld [vmem:[%s6166_s12 + $0x28] sm:$0xff] }
 0xac9   : > { %5042 = vrsqrt.f32 %v2461_v60  ;;  %vm2470_vm8 = vcmp.eq.f32.partialorder %v2461_v60, inf  ;;  %v2473_v24 = vand.u32 2147483648, %v2461_v60  ;;  %vm2472_vm9 = vcmp.eq.f32.partialorder %v2461_v60, 0.0 }
 0xaca   : > { %v6419_v4 = vadd.f32 %v6392_v20, %v2438_v1  ;;  %v4797_v20 = vld [vmem:[%s6169_s30 + $0x54] sm:$0xf0] }
 0xacb   : > { %v4529_v23 = vor.u32 %v4797_v20, %v4528_v0  ;;  %2573 = vmatpush.bf16.msra.mxu1 %v4783_v63 }
 0xacc   : > { %2449 = vadd.xlane.f32.xlu0 %v6419_v4 }
 0xacd   : > { %v2434_v27 = vpop.f32.mrf.mxu0  ;;  %2700 = vmatpush.bf16.msra.mxu2 %v4529_v23  ;;  %v2606_v23 = vld [vmem:[%s6134_s11] sm:$0x3] }
 0xace   : > { %v4781_v27 = vld [vmem:[%s6166_s12 + $0x20] sm:$0xff]  ;;  %v2608_v26 = vperm.slane %v2606_v23, 0 }
 0xacf   : > { %v5043_v1 = vpop.eup %5042  ;;  %2574 = vmatpush.bf16.msra.mxu1 %v4782_v32 }
 0xad0   : > { %v2464_v58 = vmul.f32 %v5043_v1, %v2461_v60 }
 0xad1   : > { %2701 = vmatpush.bf16.msra.mxu2 %v4521_v28  ;;  %v2609_v28 = vperm.slane %v2606_v23, 1 }
 0xad2   : > { %v2465_v13 = vmul.f32 %v5043_v1, %v2464_v58  ;;  %v6488_v58 = vld [vmem:[%s1249_s10] ss:$0 sm:$0xff] }
 0xad3   : > { %2575 = vmatpush.bf16.msra.mxu1 %v4781_v27 }
 0xad4   : > { %v2466_v17 = vmul.f32 0.5, %v2465_v13 }
 0xad5   : > { %2702 = vmatpush.bf16.msra.mxu2 %v4513_v34 }
 0xad6   : > { %v2467_v9 = vsub.f32 1.5, %v2466_v17 }
 0xad7   : > { %2576 = vmatpush.bf16.msra.mxu1 %v4780_v7 }
 0xad8   : > { %v2468_v15 = vmul.f32 %v5043_v1, %v2467_v9 }
 0xad9   : > { %2703 = vmatpush.bf16.msra.mxu2 %v4505_v35  ;;  %v2721_v3 = vpop.f32.mrf.mxu3 }
 0xada   : > { %v2469_v16 = vmul.f32 %v2468_v15, %v2461_v60  ;;  %v2722_v19 = vadd.f32 %v2721_v3, %v2609_v28 }
 0xadb   : > { %2577 = vmatpush.bf16.msra.mxu1 %v4779_v8 }
 0xadc   : > { %v2471_v22 = vsel %vm2470_vm8, %v2461_v60, %v2469_v16 }
 0xadd   : > { %2704 = vmatpush.bf16.msra.mxu2 %v4497_v45  ;;  %v2474_v25 = vsel %vm2472_vm9, %v2473_v24, %v2471_v22 }
 0xade   : > { %v2487_v30 = vadd.f32 1e-06, %v2474_v25 }
 0xadf   : > { %2578 = vmatpush.bf16.msra.mxu1 %v4778_v62 }
 0xae1   : > { %2705 = vmatpush.bf16.msra.mxu2 %v4489_v53  ;;  %v2723_v46 = vpop.f32.mrf.mxu3  ;;  %v4992_v53 = vld [vmem:[%s1230_s17] ss:$0 sm:$0xff]  ;;  %s6864_s17 = sld [smem:[#allocation62_spill]] (!%p4734_p2) }
 0xae2   : > { %v2724_v49 = vadd.f32 %v2723_v46, %v2609_v28 }
 0xae3   : > { %2579 = vmatpush.bf16.msra.mxu1 %v4777_v14 }
 0xae4   : > { %2706 = vmatmul.bf16.vlgmr.msra.gmra.mxu2 %v4785_v57 }
 0xb3f   : > { %v2450_v50 = vpop.xlane.xlu0 %2449 }
 0xb40   : > { %v2452_v52 = vmul.f32 %v2450_v50, %v6182_v10  ;;  %v2494_v50 = vmul.f32 %v4991_v40, %v6408_v41 }
 0xb42   : > { %v6456_v54 = vsub.f32 %v6419_v4, %v2452_v52 }
 0xb44   : > { %v2456_v56 = vmul.f32 %v6456_v54, %v6456_v54  ;;  %v2495_v51 = vmul.f32 %v4991_v40, %v6456_v54 }
 0xb46   : > { %2459 = vadd.xlane.f32.xlu1 %v2456_v56 }
 0xb67   : > { %v2707_v31 = vpop.f32.mrf.mxu2 }
 0xb68   : > { %v2708_v33 = vadd.f32 %v2707_v31, %v2608_v26 }
 0xb6a   : > { %v2726_v39 = vpack.c.bf16 %v2722_v19, %v2708_v33 }
 0xb6c   : > { %v2809_v43 = vunpack.c.l.b16 %v2726_v39  ;;  %v2749_v5 = vsel %vm1779_vm5, %v2726_v39, 0  ;;  %v2782_v61 = vunpack.c.h.b16 %v2726_v39 }
 0xb6d   : > { %2758 = vmatpush.bf16.xpose.msrb.mxu0 %v2749_v5 }
 0xb6e   : > { %v2810_v12 = vpack.c.b16 %v2809_v43, %v2809_v43  ;;  %v6480_v63 = vpack.c.b16 %v2782_v61, %v2782_v61 }
 0xb6f   : > { %v2709_v44 = vpop.f32.mrf.mxu2 }
 0xb70   : > { %v2710_v45 = vadd.f32 %v2709_v44, %v2608_v26  ;;  %2811 = vrot.lane.b32.xlu0 %v2810_v12, %s5726_s7  ;;  %2926 = vrot.lane.b32.xlu2 %v2810_v12, %s5727_s19  ;;  %v2788_v41 = vsel %vm1817_vm6, %v6480_v63, 0 }
 0xb72   : > { %v6475_v48 = vpack.c.bf16 %v2724_v49, %v2710_v45 }
 0xb75   : > { %2797 = vmatpush.bf16.msra.mxu0 %v2788_v41 }
 0xbb9   : > { %v2460_v6 = vpop.xlane.xlu1 %2459 }
 0xbba   : > { %v2462_v11 = vmul.f32 0.007874016, %v2460_v6 }
 0xbbc   : > { %5044 = vrsqrt.f32 %v2462_v11  ;;  %vm2482_vm10 = vcmp.eq.f32.partialorder %v2462_v11, inf  ;;  %v2485_v36 = vand.u32 2147483648, %v2462_v11  ;;  %vm2484_vm11 = vcmp.eq.f32.partialorder %v2462_v11, 0.0 }
 0xbbd   : > { %5046 = vrcp.f32 %v2487_v30 }
 0xbc2   : > { %v5045_v0 = vpop.eup %5044 }
 0xbc3   : > { %v2476_v20 = vmul.f32 %v5045_v0, %v2462_v11  ;;  %v5047_v47 = vpop.eup %5046 }
 0xbc4   : > { %v2496_v52 = vmul.f32 %v5047_v47, %v2494_v50 }
 0xbc5   : > { %v2477_v21 = vmul.f32 %v5045_v0, %v2476_v20  ;;  %v6502_v20 = vld [vmem:[#allocation9] ss:$0 sm:$0xff] }
 0xbc6   : > { %v2501_v57 = vadd.f32 %v4992_v53, %v2496_v52 }
 0xbc7   : > { %v2478_v38 = vmul.f32 0.5, %v2477_v21 }
 0xbc9   : > { %v2479_v2 = vsub.f32 1.5, %v2478_v38 }
 0xbca   : > { %v2927_v1 = vpop.permute.xlu2 %2926 }
 0xbcb   : > { %v2480_v29 = vmul.f32 %v5045_v0, %v2479_v2  ;;  %v2932_v27 = vsel %vm1779_vm5, %v2927_v1, 0  ;;  %v4803_v1 = vld [vmem:[%s6171_s16 + $0x8] sm:$0xff] }
 0xbcd   : > { %v2481_v34 = vmul.f32 %v2480_v29, %v2462_v11 }
 0xbcf   : > { %v2483_v37 = vsel %vm2482_vm10, %v2462_v11, %v2481_v34 }
 0xbd0   : > { %v2486_v42 = vsel %vm2484_vm11, %v2485_v36, %v2483_v37 }
 0xbd1   : > { %v2488_v35 = vadd.f32 1e-06, %v2486_v42 }
 0xbd3   : > { %5048 = vrcp.f32 %v2488_v35 }
 0xbd9   : > { %v5049_v55 = vpop.eup %5048 }
 0xbda   : > { %v2497_v56 = vmul.f32 %v5049_v55, %v2495_v51  ;;  %v4805_v55 = vld [vmem:[%s6171_s16 + $0x18] sm:$0xff] }
 0xbdb   : > { %2889 = vmatpush.bf16.msrb.mxu3 %v4805_v55 }
 0xbdc   : > { %v2502_v59 = vadd.f32 %v4992_v53, %v2497_v56 }
 0xbde   : > { %v2503_v60 = vpack.c.bf16 %v2502_v59, %v2501_v57  ;;  %v4804_v59 = vld [vmem:[%s6171_s16 + $0x10] sm:$0xff] }
 0xbdf   : > { %2890 = vmatpush.bf16.msrb.mxu3 %v4804_v59 }
 0xbe0   : > { %2580 = vmatmul.bf16.vlgmr.msra.gmra.mxu1 %v2503_v60  ;;  %v4807_v60 = vld [vmem:[%s6171_s16 + $0x28] sm:$0xff] }
 0xbe2   : > { %v2812_v32 = vpop.permute.xlu0 %2811 }
 0xbe3   : > { %v2817_v54 = vsel %vm1779_vm5, %v2812_v32, 0  ;;  %3004 = vmatpush.bf16.msra.mxu3 %v4807_v60  ;;  %v4806_v32 = vld [vmem:[%s6171_s16 + $0x20] sm:$0xff] }
 0xbe4   : > { %2826 = vmatpush.bf16.xpose.msrb.mxu1 %v2817_v54  ;;  %v4802_v54 = vld [vmem:[%s6171_s16] sm:$0xff] }
 0xbe7   : > { %3005 = vmatpush.bf16.msra.mxu3 %v4806_v32 }
 0xbec   : > { %2941 = vmatpush.bf16.xpose.msra.mxu1 %v2932_v27 }
 0xc5d   : > { %v2581_v7 = vpop.f32.mrf.mxu1 }
 0xc5e   : > { %v2582_v13 = vadd.f32 %v6488_v58, %v2581_v7 }
 0xc60   : > { %v2586_v8 = vpack.c.bf16 %v2582_v13, %v2582_v13  ;;  %v3106_v13 = vsel %vm1779_vm5, %v6475_v48, 0 }
 0xc62   : > { %v2805_v17 = vunpack.c.l.b16 %v2586_v8  ;;  %4550 = vmatmul.msk.bf16.vlgmr.msrb.gmra.mxu0 %vm1779_vm5, %v2586_v8 }
 0xc63   : > { %2917 = vmatpush.bf16.msrb.mxu0 %v4803_v1 }
 0xc64   : > { %v6492_v62 = vpack.c.b16 %v2805_v17, %v2805_v17 }
 0xc65   : > { %v6500_v15 = vpop.f32.mrf.mxu1 }
 0xc66   : > { %2807 = vrot.lane.b32.xlu1 %v6492_v62, %s5726_s7  ;;  %2924 = vrot.lane.b32.xlu0 %v6492_v62, %s5727_s19 }
 0xc67   : > { %2918 = vmatpush.bf16.msrb.mxu0 %v4802_v54 }
 0xcd8   : > { %v2808_v9 = vpop.permute.xlu1 %2807  ;;  %v2925_v14 = vpop.permute.xlu0 %2924 }
 0xcd9   : > { %4552 = vmatmul.msk.bf16.vlgmr.msrb.gmra.mxu1 %vm1779_vm5, %v2808_v9 }
 0xcdf   : > { %v2760_v6 = vpop.f32.mrf.mxu0 }
 0xce0   : > { %v2764_v42 = vmul.f32 0.17677669, %v2760_v6 }
 0xce2   : > { %v2768_v43 = vadd.f32 %v6502_v20, %v2764_v42 }
 0xce4   : > { %v2769_v5 = vsel %vm1801_vm7, %v2768_v43, -inf }
 0xce7   : > { %v2762_v11 = vpop.f32.mrf.mxu0 }
 0xce9   : > { %4572 = vmatmul.msk.bf16.vlgmr.msra.gmra.mxu1 %vm1779_vm5, %v2925_v14 }
 0xd56   : > { %v2828_v16 = vpop.f32.mrf.mxu1 }
 0xd57   : > { %v2832_v0 = vmul.f32 0.17677669, %v2828_v16 }
 0xd59   : > { %v2833_v21 = vadd.f32 %v6502_v20, %v2832_v0 }
 0xd5b   : > { %v2834_v22 = vsel %vm1801_vm7, %v2833_v21, -inf }
 0xd5c   : > { %2835 = vmax.xlane.f32.xlu0 %v2834_v22  ;;  %v2584_v22 = vadd.f32 %v6488_v58, %v6500_v15 }
 0xd5e   : > { %v2830_v23 = vpop.f32.mrf.mxu1 }
 0xd5f   : > { %v2587_v23 = vpack.c.bf16 %v2584_v22, %v2584_v22 }
 0xd66   : > { %v2943_v24 = vpop.f32.mrf.mxu1 }
 0xd67   : > { %v2947_v38 = vmul.f32 0.17677669, %v2943_v24 }
 0xd69   : > { %v2948_v25 = vadd.f32 %v6502_v20, %v2947_v38  ;;  %v3139_v38 = vunpack.c.h.b16 %v6475_v48 }
 0xd6b   : > { %v2949_v26 = vsel %vm1801_vm7, %v2948_v25, -inf }
 0xd6c   : > { %2950 = vmax.xlane.f32.xlu2 %v2949_v26  ;;  %v6542_v26 = vpack.c.b16 %v3139_v38, %v3139_v38  ;;  %v6584_v38 = vld [vmem:[%s6171_s16 + $0x30] sm:$0xff] }
 0xd6e   : > { %v2945_v2 = vpop.f32.mrf.mxu1 }
 0xd84   : > { %2846 = vrot.lane.b32.xlu2 %v6480_v63, %s5726_s7 }
 0xd8c   : > { %3014 = vrot.lane.b32.xlu2 %v2810_v12, %s5728_s21 }
 0xdcf   : > { %v2836_v28 = vpop.xlane.xlu0 %2835 }
 0xdd0   : > { %v2837_v29 = vsub.f32 %v2833_v21, %v2836_v28 }
 0xdd2   : > { %v2838_v30 = vmul.f32 1.442695, %v2837_v29  ;;  %v3145_v29 = vsel %vm1817_vm6, %v6542_v26, 0 }
 0xdd4   : > { %5050 = vpow2.f32 %v2838_v30 }
 0xdda   : > { %v5051_v31 = vpop.eup %5050 }
 0xddb   : > { %v2840_v33 = vsel %vm1801_vm7, %v5051_v31, 0.0 }
 0xddc   : > { %2841 = vadd.xlane.f32.xlu1 %v2840_v33  ;;  %v6550_v33 = vld [vmem:[#allocation9 + $0x1] ss:$0 sm:$0xff] }
 0xddf   : > { %v2951_v3 = vpop.xlane.xlu2 %2950 }
 0xde0   : > { %v2952_v34 = vsub.f32 %v2948_v25, %v2951_v3 }
 0xde2   : > { %v2953_v19 = vmul.f32 1.442695, %v2952_v34 }
 0xde4   : > { %5052 = vpow2.f32 %v2953_v19 }
 0xde7   : > { %v2847_v36 = vpop.permute.xlu2 %2846 }
 0xde8   : > { %v2852_v37 = vsel %vm1817_vm6, %v2847_v36, 0 }
 0xde9   : > { %2861 = vmatpush.bf16.msrb.mxu2 %v2852_v37 }
 0xdea   : > { %v5053_v39 = vpop.eup %5052 }
 0xdeb   : > { %v2955_v35 = vsel %vm1801_vm7, %v5053_v39, 0.0 }
 0xdec   : > { %2956 = vadd.xlane.f32.xlu0 %v2955_v35 }
 0xdef   : > { %v3015_v11 = vpop.permute.xlu2 %3014 }
 0xdf0   : > { %v3020_v0 = vsel %vm1779_vm5, %v3015_v11, 0 }
 0xdf4   : > { %2770 = vmax.xlane.f32.xlu0 %v2769_v5 }
 0xdf5   : > { %2961 = vrot.lane.b32.xlu1 %v6480_v63, %s5727_s19 }
 0xe4f   : > { %v2842_v40 = vpop.xlane.xlu1 %2841 }
 0xe50   : > { %5054 = vrcp.f32 %v2842_v40 }
 0xe56   : > { %v5055_v12 = vpop.eup %5054 }
 0xe57   : > { %v2844_v44 = vmul.f32 %v5055_v12, %v5051_v31 }
 0xe59   : > { %v2845_v45 = vpack.c.bf16 %v2844_v44, %v2844_v44 }
 0xe5b   : > { %4553 = vmatmul.msk.bf16.vlgmr.msrb.gmra.mxu2 %vm1801_vm7, %v2845_v45 }
 0xe5f   : > { %v2957_v46 = vpop.xlane.xlu0 %2956 }
 0xe60   : > { %5056 = vrcp.f32 %v2957_v46 }
 0xe66   : > { %v5057_v47 = vpop.eup %5056 }
 0xe67   : > { %v2959_v49 = vmul.f32 %v5057_v47, %v5053_v39  ;;  %v2962_v50 = vpop.permute.xlu1 %2961  ;;  %v2771_v51 = vpop.xlane.xlu0 %2770 }
 0xe68   : > { %v2967_v52 = vsel %vm1817_vm6, %v2962_v50, 0  ;;  %v2772_v53 = vsub.f32 %v2768_v43, %v2771_v51  ;;  %v3162_v50 = vunpack.c.l.b16 %v2587_v23 }
 0xe69   : > { %v2960_v56 = vpack.c.bf16 %v2959_v49, %v2959_v49  ;;  %2976 = vmatpush.bf16.msra.mxu2 %v2967_v52  ;;  %v3166_v52 = vunpack.c.l.b16 %v6475_v48 }
 0xe6a   : > { %v2773_v57 = vmul.f32 1.442695, %v2772_v53  ;;  %v3163_v51 = vpack.c.b16 %v3162_v50, %v3162_v50 }
 0xe6c   : > { %5058 = vpow2.f32 %v2773_v57  ;;  %4573 = vmatmul.msk.bf16.vlgmr.msra.gmra.mxu2 %vm1801_vm7, %v2960_v56 }
 0xe72   : > { %v5059_v61 = vpop.eup %5058 }
 0xe73   : > { %v2775_v41 = vsel %vm1801_vm7, %v5059_v61, 0.0 }
 0xe74   : > { %2776 = vadd.xlane.f32.xlu0 %v2775_v41 }
 0xe88   : > { %3012 = vrot.lane.b32.xlu0 %v6492_v62, %s5728_s21 }
 0xede   : > { %v2863_v27 = vpop.f32.mrf.mxu2 }
 0xedf   : > { %v2867_v7 = vpack.c.bf16 %v2863_v27, %v2863_v27 }
 0xee1   : > { %4562 = vmatmul.msk.bf16.vlgmr.msrb.gmra.mxu3 %vm1779_vm5, %v2867_v7 }
 0xee2   : > { %3115 = vmatpush.bf16.xpose.msrb.mxu3 %v3106_v13 }
 0xee6   : > { %v2865_v8 = vpop.f32.mrf.mxu2 }
 0xee7   : > { %v2777_v17 = vpop.xlane.xlu0 %2776 }
 0xee8   : > { %5060 = vrcp.f32 %v2777_v17 }
 0xeee   : > { %v5061_v9 = vpop.eup %5060 }
 0xeef   : > { %v2779_v6 = vmul.f32 %v5061_v9, %v5059_v61  ;;  %v2978_v62 = vpop.f32.mrf.mxu2 }
 0xef0   : > { %v2982_v14 = vpack.c.bf16 %v2978_v62, %v2978_v62  ;;  %v6575_v62 = vld [vmem:[%s6171_s16 + $0x38] sm:$0xff] }
 0xef1   : > { %v2780_v16 = vpack.c.bf16 %v2779_v6, %v2779_v6  ;;  %3092 = vmatpush.bf16.msrb.mxu2 %v6575_v62 }
 0xef2   : > { %4582 = vmatmul.msk.bf16.vlgmr.msra.gmra.mxu3 %vm1779_vm5, %v2982_v14 }
 0xef3   : > { %4551 = vmatmul.msk.bf16.vlgmr.msra.gmra.mxu0 %vm1801_vm7, %v2780_v16  ;;  %3234 = vmatpush.bf16.msra.mxu3 %v4805_v55 }
 0xef4   : > { %3029 = vmatpush.bf16.xpose.msra.mxu0 %v3020_v0 }
 0xef5   : > { %3093 = vmatpush.bf16.msrb.mxu2 %v6584_v38 }
 0xef7   : > { %v2980_v21 = vpop.f32.mrf.mxu2  ;;  %3235 = vmatpush.bf16.msra.mxu3 %v4804_v59 }
 0xefa   : > { %v3013_v31 = vpop.permute.xlu0 %3012 }
 0xf02   : > { %4594 = vmatmul.msk.bf16.vlgmr.msrb.gmra.mxu3 %vm1779_vm5, %v2587_v23 }
 0xf03   : > { %3325 = vmatpush.bf16.msrb.mxu3 %v4807_v60 }
 0xf07   : > { %3326 = vmatpush.bf16.msrb.mxu3 %v4806_v32 }
 0xf64   : > { %v6539_v24 = vpop.f32.mrf.mxu3 }
 0xf6c   : > { %v2894_v25 = vpop.f32.mrf.mxu3 }
 0xf70   : > { %v2799_v2 = vpop.f32.mrf.mxu0 }
 0xf71   : > { %v2803_v28 = vpack.c.bf16 %v2799_v2, %v2799_v2 }
 0xf73   : > { %4571 = vmatmul.msk.bf16.vlgmr.msrb.gmra.mxu0 %vm1779_vm5, %v2803_v28 }
 0xf74   : > { %3154 = vmatpush.bf16.msrb.mxu0 %v3145_v29 }
 0xf75   : > { %v6547_v58 = vpop.f32.mrf.mxu3 }
 0xf78   : > { %v2801_v15 = vpop.f32.mrf.mxu0 }
 0xf7d   : > { %v3009_v30 = vpop.f32.mrf.mxu3 }
 0xf83   : > { %4583 = vmatmul.msk.bf16.vlgmr.msra.gmra.mxu0 %vm1779_vm5, %v3013_v31 }
 0xf84   : > { %3250 = vmatpush.bf16.msra.mxu0 %v4803_v1 }
 0xf85   : > { %v3117_v3 = vpop.f32.mrf.mxu3 }
 0xf86   : > { %v3121_v34 = vmul.f32 0.17677669, %v3117_v3 }
 0xf88   : > { %v3125_v19 = vadd.f32 %v6550_v33, %v3121_v34  ;;  %3251 = vmatpush.bf16.msra.mxu0 %v4802_v54 }
 0xf8a   : > { %v3126_v36 = vsel %vm1801_vm7, %v3125_v19, -inf }
 0xf8b   : > { %3127 = vmax.xlane.f32.xlu1 %v3126_v36 }
 0xf8d   : > { %v3119_v37 = vpop.f32.mrf.mxu3 }
 0xff0   : > { %v6554_v39 = vpop.f32.mrf.mxu0 }
 0xff8   : > { %v2922_v42 = vpop.f32.mrf.mxu0 }
 0xffe   : > { %v3128_v35 = vpop.xlane.xlu1 %3127 }
 0xfff   : > { %v3129_v43 = vsub.f32 %v3125_v19, %v3128_v35 }
0x1000   : > { %v3031_v5 = vpop.f32.mrf.mxu0 }
0x1001   : > { %v3130_v40 = vmul.f32 1.442695, %v3129_v43  ;;  %v3035_v12 = vmul.f32 0.17677669, %v3031_v5 }
0x1003   : > { %5062 = vpow2.f32 %v3130_v40  ;;  %v3036_v44 = vadd.f32 %v6502_v20, %v3035_v12  ;;  %v3167_v20 = vpack.c.b16 %v3166_v52, %v3166_v52 }
0x1005   : > { %v3037_v45 = vsel %vm1801_vm7, %v3036_v44, -inf }
0x1006   : > { %3038 = vmax.xlane.f32.xlu0 %v3037_v45 }
0x1008   : > { %v3033_v46 = vpop.f32.mrf.mxu0 }
0x1009   : > { %v5063_v47 = vpop.eup %5062  ;;  %v2921_v46 = vadd.f32 %v6554_v39, %v6539_v24 }
0x100a   : > { %v3132_v49 = vsel %vm1801_vm7, %v5063_v47, 0.0 }
0x100b   : > { %3133 = vadd.xlane.f32.xlu2 %v3132_v49 }
0x101a   : > { %3164 = vrot.lane.b32.xlu0 %v3163_v51, %s5726_s7 }
0x1022   : > { %3333 = vrot.lane.b32.xlu0 %v3163_v51, %s5728_s21 }
0x1023   : > { %3049 = vrot.lane.b32.xlu2 %v6480_v63, %s5728_s21 }
0x102b   : > { %3259 = vrot.lane.b32.xlu2 %v3167_v20, %s5727_s19 }
0x1033   : > { %3335 = vrot.lane.b32.xlu2 %v3167_v20, %s5728_s21 }
0x1079   : > { %v3039_v53 = vpop.xlane.xlu0 %3038 }
0x107a   : > { %v3040_v55 = vsub.f32 %v3036_v44, %v3039_v53 }
0x107c   : > { %v3041_v56 = vmul.f32 1.442695, %v3040_v55 }
0x107e   : > { %5064 = vpow2.f32 %v3041_v56  ;;  %v3134_v57 = vpop.xlane.xlu2 %3133 }
0x107f   : > { %5066 = vrcp.f32 %v3134_v57 }
0x1084   : > { %v5065_v59 = vpop.eup %5064 }
0x1085   : > { %v5067_v60 = vpop.eup %5066  ;;  %v3043_v61 = vsel %vm1801_vm7, %v5065_v59, 0.0 }
0x1086   : > { %v3136_v41 = vmul.f32 %v5067_v60, %v5063_v47  ;;  %v3050_v32 = vpop.permute.xlu2 %3049  ;;  %3044 = vadd.xlane.f32.xlu1 %v3043_v61  ;;  %v3011_v47 = vadd.f32 %v6547_v58, %v2921_v46 }
0x1087   : > { %v3055_v48 = vsel %vm1817_vm6, %v3050_v32, 0 }
0x1088   : > { %v3137_v63 = vpack.c.bf16 %v3136_v41, %v3136_v41  ;;  %3064 = vmatpush.bf16.msrb.mxu1 %v3055_v48 }
0x108a   : > { %4595 = vmatmul.msk.bf16.vlgmr.msrb.gmra.mxu0 %vm1801_vm7, %v3137_v63 }
0x108c   : > { %v3165_v11 = vpop.permute.xlu0 %3164 }
0x108e   : > { %v3260_v1 = vpop.permute.xlu2 %3259 }
0x108f   : > { %v3265_v21 = vsel %vm1779_vm5, %v3260_v1, 0 }
0x1094   : > { %v3334_v22 = vpop.permute.xlu0 %3333 }
0x1096   : > { %v3336_v54 = vpop.permute.xlu2 %3335 }
0x1097   : > { %v3341_v27 = vsel %vm1779_vm5, %v3336_v54, 0 }
0x1098   : > { %3350 = vmatpush.bf16.xpose.msrb.mxu0 %v3341_v27 }
0x109f   : > { %3168 = vrot.lane.b32.xlu1 %v3167_v20, %s5726_s7 }
0x10a7   : > { %3257 = vrot.lane.b32.xlu1 %v3163_v51, %s5727_s19  ;;  %v6606_v51 = vld [vmem:[%s6859_s13] ss:$0 sm:$0xff] }
0x10f9   : > { %v3045_v7 = vpop.xlane.xlu1 %3044 }
0x10fa   : > { %5068 = vrcp.f32 %v3045_v7 }
0x1100   : > { %v5069_v13 = vpop.eup %5068 }
0x1101   : > { %v3047_v8 = vmul.f32 %v5069_v13, %v5065_v59 }
0x1103   : > { %v3048_v17 = vpack.c.bf16 %v3047_v8, %v3047_v8 }
0x1105   : > { %4584 = vmatmul.msk.bf16.vlgmr.msrb.gmra.mxu1 %vm1801_vm7, %v3048_v17 }
0x1107   : > { %v3156_v9 = vpop.f32.mrf.mxu0 }
0x1108   : > { %v3160_v6 = vpack.c.bf16 %v3156_v9, %v3156_v9 }
0x110a   : > { %4599 = vmatmul.msk.bf16.vlgmr.msra.gmra.mxu0 %vm1779_vm5, %v3160_v6 }
0x110f   : > { %v3158_v14 = vpop.f32.mrf.mxu0 }
0x1111   : > { %v3169_v16 = vpop.permute.xlu1 %3168 }
0x1112   : > { %v3174_v0 = vsel %vm1779_vm5, %v3169_v16, 0 }
0x1113   : > { %3183 = vmatpush.bf16.xpose.msra.mxu1 %v3174_v0 }
0x1119   : > { %v3258_v23 = vpop.permute.xlu1 %3257 }
0x111a   : > { %4596 = vmatmul.msk.bf16.vlgmr.msra.gmra.mxu1 %vm1779_vm5, %v3165_v11  ;;  %4603 = vmatmul.msk.bf16.vlgmr.msrb.gmra.mxu0 %vm1779_vm5, %v3334_v22 }
0x111b   : > { %3274 = vmatpush.bf16.xpose.msrb.mxu1 %v3265_v21 }
0x112a   : > { %4600 = vmatmul.msk.bf16.vlgmr.msrb.gmra.mxu1 %vm1779_vm5, %v3258_v23 }
0x1182   : > { %v3066_v25 = vpop.f32.mrf.mxu1 }
0x1183   : > { %v3070_v2 = vpack.c.bf16 %v3066_v25, %v3066_v25 }
0x1185   : > { %4593 = vmatmul.msk.bf16.vlgmr.msrb.gmra.mxu2 %vm1779_vm5, %v3070_v2 }
0x1187   : > { %v6588_v28 = vpop.f32.mrf.mxu0 }
0x118a   : > { %v3068_v29 = vpop.f32.mrf.mxu1 }
0x118f   : > { %v3255_v15 = vpop.f32.mrf.mxu0 }
0x1197   : > { %v3185_v30 = vpop.f32.mrf.mxu1  ;;  %v3352_v31 = vpop.f32.mrf.mxu0 }
0x1198   : > { %v3189_v3 = vmul.f32 0.17677669, %v3185_v30  ;;  %v3356_v34 = vmul.f32 0.17677669, %v3352_v31 }
0x119a   : > { %v3190_v19 = vadd.f32 %v6550_v33, %v3189_v3  ;;  %v3357_v36 = vadd.f32 %v6550_v33, %v3356_v34 }
0x119c   : > { %v3191_v37 = vsel %vm1801_vm7, %v3190_v19, -inf  ;;  %v3358_v42 = vsel %vm1801_vm7, %v3357_v36, -inf }
0x119d   : > { %3192 = vmax.xlane.f32.xlu1 %v3191_v37  ;;  %3359 = vmax.xlane.f32.xlu0 %v3358_v42 }
0x119f   : > { %v3187_v35 = vpop.f32.mrf.mxu1  ;;  %v3354_v43 = vpop.f32.mrf.mxu0 }
0x11a7   : > { %v3276_v5 = vpop.f32.mrf.mxu1 }
0x11a8   : > { %v3280_v40 = vmul.f32 0.17677669, %v3276_v5 }
0x11aa   : > { %v3281_v12 = vadd.f32 %v6550_v33, %v3280_v40 }
0x11ac   : > { %v3282_v44 = vsel %vm1801_vm7, %v3281_v12, -inf }
0x11ad   : > { %3283 = vmax.xlane.f32.xlu2 %v3282_v44 }
0x11af   : > { %v3278_v45 = vpop.f32.mrf.mxu1 }
0x11c5   : > { %3203 = vrot.lane.b32.xlu2 %v6542_v26, %s5726_s7 }
0x1208   : > { %v3095_v49 = vpop.f32.mrf.mxu2 }
0x1209   : > { %v3099_v50 = vadd.f32 %v3095_v49, %v3011_v47 }
0x120b   : > { %v3409_v33 = vadd.f32 %v3099_v50, %v6395_v18 }
0x120d   : > { %v6610_v52 = vadd.f32 %v6606_v51, %v3409_v33 }
0x120f   : > { %3419 = vadd.xlane.f32.xlu2 %v6610_v52 }
0x1210   : > { %v3097_v20 = vpop.f32.mrf.mxu2  ;;  %v3193_v53 = vpop.xlane.xlu1 %3192 }
0x1211   : > { %v3194_v24 = vsub.f32 %v3190_v19, %v3193_v53  ;;  %v3360_v56 = vpop.xlane.xlu0 %3359 }
0x1212   : > { %v3361_v60 = vsub.f32 %v3357_v36, %v3360_v56  ;;  %v4666_v56 = vld [vmem:[%s6174_s20 + $0x78] sm:$0xf0] }
0x1213   : > { %v3195_v39 = vmul.f32 1.442695, %v3194_v24  ;;  %v4825_v24 = vld [vmem:[%s6174_s20 + $0x74] sm:$0xf0] }
0x1214   : > { %v3362_v18 = vmul.f32 1.442695, %v3361_v60  ;;  %v4823_v60 = vld [vmem:[%s6174_s20 + $0x64] sm:$0xf0] }
0x1215   : > { %5070 = vpow2.f32 %v3195_v39  ;;  %v4824_v39 = vld [vmem:[%s6174_s20 + $0x74] sm:$0xf] }
0x121b   : > { %v5071_v58 = vpop.eup %5070 }
0x121c   : > { %v3197_v55 = vsel %vm1801_vm7, %v5071_v58, 0.0 }
0x121d   : > { %3198 = vadd.xlane.f32.xlu1 %v3197_v55 }
0x1220   : > { %v3284_v57 = vpop.xlane.xlu2 %3283 }
0x1221   : > { %v3285_v59 = vsub.f32 %v3281_v12, %v3284_v57  ;;  %v4669_v57 = vor.u32 %v4824_v39, %v4666_v56  ;;  %v4840_v39 = vld [vmem:[%s6176_s26 + $0x70] sm:$0xff] }
0x1223   : > { %v3286_v61 = vmul.f32 1.442695, %v3285_v59  ;;  %3592 = vmatpush.bf16.msra.mxu0 %v4669_v57  ;;  %v4656_v59 = vld [vmem:[%s6174_s20 + $0x60] sm:$0xf] }
0x1225   : > { %5072 = vpow2.f32 %v3286_v61  ;;  %v4822_v61 = vld [vmem:[%s6174_s20 + $0x64] sm:$0xf] }
0x1226   : > { %5074 = vpow2.f32 %v3362_v18  ;;  %v4657_v18 = vor.u32 %v4823_v60, %v4656_v59 }
0x1228   : > { %v3204_v41 = vpop.permute.xlu2 %3203 }
0x1229   : > { %v3209_v32 = vsel %vm1817_vm6, %v3204_v41, 0  ;;  %v4658_v41 = vld [vmem:[%s6174_s20 + $0x68] sm:$0xf0] }
0x122a   : > { %3218 = vmatpush.bf16.msra.mxu2 %v3209_v32  ;;  %v4661_v32 = vor.u32 %v4822_v61, %v4658_v41  ;;  %v4839_v61 = vld [vmem:[%s6176_s26 + $0x68] sm:$0xff] }
0x122b   : > { %v5073_v48 = vpop.eup %5072 }
0x122c   : > { %v3288_v63 = vsel %vm1801_vm7, %v5073_v48, 0.0  ;;  %v5075_v1 = vpop.eup %5074  ;;  %3593 = vmatpush.bf16.msra.mxu0 %v4661_v32 }
0x122d   : > { %3289 = vadd.xlane.f32.xlu0 %v3288_v63  ;;  %v3364_v54 = vsel %vm1801_vm7, %v5075_v1, 0.0  ;;  %v4821_v63 = vld [vmem:[%s6174_s20 + $0x54] sm:$0xf0] }
0x1235   : > { %3365 = vadd.xlane.f32.xlu0 %v3364_v54 }
0x1236   : > { %3294 = vrot.lane.b32.xlu1 %v6542_v26, %s5727_s19 }
0x1249   : > { %3370 = vrot.lane.b32.xlu0 %v6542_v26, %s5728_s21 }
0x1282   : > { %v3420_v27 = vpop.xlane.xlu2 %3419 }
0x1283   : > { %v3423_v7 = vmul.f32 %v3420_v27, %v6182_v10  ;;  %v4650_v27 = vld [vmem:[%s6174_s20 + $0x58] sm:$0xf0] }
0x1285   : > { %v6623_v13 = vsub.f32 %v6610_v52, %v3423_v7 }
0x1287   : > { %v3427_v8 = vmul.f32 %v6623_v13, %v6623_v13 }
0x1289   : > { %3429 = vadd.xlane.f32.xlu0 %v3427_v8 }
0x1290   : > { %v3199_v17 = vpop.xlane.xlu1 %3198 }
0x1291   : > { %5076 = vrcp.f32 %v3199_v17  ;;  %v4640_v17 = vld [vmem:[%s6174_s20 + $0x40] sm:$0xf] }
0x1297   : > { %v5077_v9 = vpop.eup %5076 }
0x1298   : > { %v3201_v6 = vmul.f32 %v5077_v9, %v5071_v58  ;;  %v4819_v9 = vld [vmem:[%s6174_s20 + $0x44] sm:$0xf0] }
0x129a   : > { %v3202_v11 = vpack.c.bf16 %v3201_v6, %v3201_v6  ;;  %v4818_v6 = vld [vmem:[%s6174_s20 + $0x44] sm:$0xf] }
0x129c   : > { %4597 = vmatmul.msk.bf16.vlgmr.msra.gmra.mxu2 %vm1801_vm7, %v3202_v11  ;;  %v4641_v11 = vor.u32 %v4819_v9, %v4640_v17  ;;  %v4997_v9 = vld [vmem:[%s1278_s18] ss:$0 sm:$0xff] }
0x12a0   : > { %v3290_v14 = vpop.xlane.xlu0 %3289 }
0x12a1   : > { %5078 = vrcp.f32 %v3290_v14  ;;  %v4642_v14 = vld [vmem:[%s6174_s20 + $0x48] sm:$0xf0] }
0x12a7   : > { %v5079_v26 = vpop.eup %5078 }
0x12a8   : > { %v3292_v16 = vmul.f32 %v5079_v26, %v5073_v48  ;;  %v3295_v0 = vpop.permute.xlu1 %3294  ;;  %v3366_v23 = vpop.xlane.xlu0 %3365  ;;  %v4648_v48 = vld [vmem:[%s6174_s20 + $0x50] sm:$0xf] }
0x12a9   : > { %v3300_v21 = vsel %vm1817_vm6, %v3295_v0, 0  ;;  %5080 = vrcp.f32 %v3366_v23  ;;  %v4649_v54 = vor.u32 %v4821_v63, %v4648_v48  ;;  %v4632_v0 = vld [vmem:[%s6174_s20 + $0x30] sm:$0xf]  ;;  %v4838_v63 = vld [vmem:[%s6176_s26 + $0x60] sm:$0xff] }
0x12aa   : > { %v3293_v22 = vpack.c.bf16 %v3292_v16, %v3292_v16  ;;  %3309 = vmatpush.bf16.msrb.mxu2 %v3300_v21  ;;  %v4645_v16 = vor.u32 %v4818_v6, %v4642_v14  ;;  %v4817_v21 = vld [vmem:[%s6174_s20 + $0x34] sm:$0xf0] }
0x12ab   : > { %v4633_v23 = vor.u32 %v4817_v21, %v4632_v0 }
0x12ad   : > { %4601 = vmatmul.msk.bf16.vlgmr.msrb.gmra.mxu2 %vm1801_vm7, %v3293_v22  ;;  %v4816_v22 = vld [vmem:[%s6174_s20 + $0x34] sm:$0xf] }
0x12ae   : > { %3401 = vmatpush.bf16.msra.mxu2 %v6575_v62 }
0x12af   : > { %v5081_v25 = vpop.eup %5080 }
0x12b0   : > { %v3368_v2 = vmul.f32 %v5081_v25, %v5075_v1  ;;  %v4820_v1 = vld [vmem:[%s6174_s20 + $0x54] sm:$0xf]  ;;  %v4634_v25 = vld [vmem:[%s6174_s20 + $0x38] sm:$0xf0] }
0x12b1   : > { %v4653_v7 = vor.u32 %v4820_v1, %v4650_v27 }
0x12b2   : > { %3402 = vmatpush.bf16.msra.mxu2 %v6584_v38  ;;  %v3369_v30 = vpack.c.bf16 %v3368_v2, %v3368_v2  ;;  %v4624_v2 = vld [vmem:[%s6174_s20 + $0x20] sm:$0xf] }
0x12b3   : > { %3594 = vmatpush.bf16.msra.mxu0 %v4653_v7 }
0x12b7   : > { %3595 = vmatpush.bf16.msra.mxu0 %v4645_v16  ;;  %v4998_v16 = vld [vmem:[%s1459_s14] ss:$0 sm:$0xff] }
0x12bb   : > { %v3371_v29 = vpop.permute.xlu0 %3370 }
0x12bc   : > { %v3376_v15 = vsel %vm1817_vm6, %v3371_v29, 0  ;;  %v4815_v29 = vld [vmem:[%s6174_s20 + $0x24] sm:$0xf0] }
0x12bd   : > { %3385 = vmatpush.bf16.msra.mxu1 %v3376_v15 }
0x12c0   : > { %4604 = vmatmul.msk.bf16.vlgmr.msra.gmra.mxu1 %vm1801_vm7, %v3369_v30  ;;  %v4637_v30 = vor.u32 %v4816_v22, %v4634_v25 }
0x12c2   : > { %3596 = vmatpush.bf16.msra.mxu0 %v4637_v30  ;;  %v4828_v30 = vld [vmem:[%s6176_s26 + $0x10] sm:$0xff] }
0x131f   : > { %v3220_v31 = vpop.f32.mrf.mxu2 }
0x1320   : > { %v3224_v3 = vpack.c.bf16 %v3220_v31, %v3220_v31  ;;  %v4814_v31 = vld [vmem:[%s6174_s20 + $0x24] sm:$0xf] }
0x1322   : > { %4598 = vmatmul.msk.bf16.vlgmr.msra.gmra.mxu3 %vm1779_vm5, %v3224_v3  ;;  %v4626_v3 = vld [vmem:[%s6174_s20 + $0x28] sm:$0xf0] }
0x1327   : > { %v3222_v62 = vpop.f32.mrf.mxu2 }
0x1328   : > { %v4625_v62 = vor.u32 %v4815_v29, %v4624_v2  ;;  %v4836_v2 = vld [vmem:[%s6176_s26 + $0x50] sm:$0xff]  ;;  %v4829_v29 = vld [vmem:[%s6176_s26 + $0x18] sm:$0xff] }
0x1330   : > { %v3311_v34 = vpop.f32.mrf.mxu2 }
0x1331   : > { %v3315_v19 = vpack.c.bf16 %v3311_v34, %v3311_v34  ;;  %v4629_v34 = vor.u32 %v4814_v31, %v4626_v3  ;;  %v4834_v31 = vld [vmem:[%s6176_s26 + $0x40] sm:$0xff]  ;;  %v4827_v3 = vld [vmem:[%s6176_s26 + $0x8] sm:$0xff] }
0x1333   : > { %4602 = vmatmul.msk.bf16.vlgmr.msrb.gmra.mxu3 %vm1779_vm5, %v3315_v19  ;;  %v4616_v19 = vld [vmem:[%s6174_s20 + $0x10] sm:$0xf]  ;;  %3597 = vmatpush.bf16.msra.mxu0 %v4629_v34  ;;  %v3492_v34 = vld [vmem:[%s6152_s2] sm:$0x3] }
0x1338   : > { %v3313_v38 = vpop.f32.mrf.mxu2 }
0x1339   : > { %v4813_v38 = vld [vmem:[%s6174_s20 + $0x14] sm:$0xf0] }
0x133d   : > { %v3387_v36 = vpop.f32.mrf.mxu1 }
0x133e   : > { %v3391_v37 = vpack.c.bf16 %v3387_v36, %v3387_v36  ;;  %v4812_v36 = vld [vmem:[%s6174_s20 + $0x14] sm:$0xf] }
0x1340   : > { %4605 = vmatmul.msk.bf16.vlgmr.msra.gmra.mxu2 %vm1779_vm5, %v3391_v37  ;;  %v4618_v37 = vld [vmem:[%s6174_s20 + $0x18] sm:$0xf0] }
0x1345   : > { %v3389_v42 = vpop.f32.mrf.mxu1 }
0x13a5   : > { %v3237_v35 = vpop.f32.mrf.mxu3 }
0x13a6   : > { %v3254_v12 = vadd.f32 %v6588_v28, %v3237_v35  ;;  %v4617_v35 = vor.u32 %v4813_v38, %v4616_v19  ;;  %v3495_v38 = vperm.slane %v3492_v34, 1 }
0x13ad   : > { %v3239_v43 = vpop.f32.mrf.mxu3 }
0x13ae   : > { %v4621_v43 = vor.u32 %v4812_v36, %v4618_v37 }
0x13b0   : > { %3598 = vmatpush.bf16.msra.mxu0 %v4621_v43 }
0x13b6   : > { %v3328_v5 = vpop.f32.mrf.mxu3 }
0x13b7   : > { %v3332_v44 = vadd.f32 %v3328_v5, %v3254_v12  ;;  %v4608_v5 = vld [vmem:[%s6174_s20] sm:$0xf]  ;;  %v4810_v12 = vld [vmem:[%s6174_s20 + $0x4] sm:$0xf] }
0x13be   : > { %v3330_v40 = vpop.f32.mrf.mxu3 }
0x13bf   : > { %v4811_v40 = vld [vmem:[%s6174_s20 + $0x4] sm:$0xf0] }
0x13c3   : > { %v3404_v45 = vpop.f32.mrf.mxu2 }
0x13c4   : > { %v3408_v46 = vadd.f32 %v3404_v45, %v3332_v44  ;;  %v4610_v44 = vld [vmem:[%s6174_s20 + $0x8] sm:$0xf0] }
0x13c6   : > { %v3410_v47 = vadd.f32 %v3408_v46, %v6419_v4  ;;  %v3430_v4 = vpop.xlane.xlu0 %3429 }
0x13c7   : > { %v6652_v58 = vmul.f32 0.007874016, %v3430_v4  ;;  %v4833_v4 = vld [vmem:[%s6176_s26 + $0x38] sm:$0xff] }
0x13c8   : > { %v6640_v49 = vadd.f32 %v6606_v51, %v3410_v47  ;;  %v4664_v51 = vld [vmem:[%s6174_s20 + $0x70] sm:$0xf]  ;;  %3740 = vmatpush.bf16.msrb.mxu1 %v4833_v4 }
0x13c9   : > { %v4665_v55 = vor.u32 %v4825_v24, %v4664_v51  ;;  %5082 = vrsqrt.f32 %v6652_v58  ;;  %vm3442_vm12 = vcmp.eq.f32.partialorder %v6652_v58, inf  ;;  %v3445_v60 = vand.u32 2147483648, %v6652_v58 }
0x13ca   : > { %3421 = vadd.xlane.f32.xlu1 %v6640_v49  ;;  %vm3444_vm13 = vcmp.eq.f32.partialorder %v6652_v58, 0.0 }
0x13cb   : > { %v3406_v50 = vpop.f32.mrf.mxu2  ;;  %3578 = vmatpush.bf16.msra.mxu3 %v4665_v55  ;;  %v4832_v55 = vld [vmem:[%s6176_s26 + $0x30] sm:$0xff] }
0x13cc   : > { %v4609_v50 = vor.u32 %v4811_v40, %v4608_v5  ;;  %3741 = vmatpush.bf16.msrb.mxu1 %v4832_v55 }
0x13cf   : > { %3579 = vmatpush.bf16.msra.mxu3 %v4657_v18  ;;  %v5083_v8 = vpop.eup %5082  ;;  %v4831_v18 = vld [vmem:[%s6176_s26 + $0x28] sm:$0xff] }
0x13d0   : > { %v3436_v26 = vmul.f32 %v5083_v8, %v6652_v58  ;;  %3742 = vmatpush.bf16.msrb.mxu1 %v4831_v18 }
0x13d2   : > { %v3437_v15 = vmul.f32 %v5083_v8, %v3436_v26 }
0x13d3   : > { %3580 = vmatpush.bf16.msra.mxu3 %v4649_v54 }
0x13d4   : > { %v3438_v42 = vmul.f32 0.5, %v3437_v15  ;;  %v4835_v15 = vld [vmem:[%s6176_s26 + $0x48] sm:$0xff] }
0x13d6   : > { %v3439_v45 = vsub.f32 1.5, %v3438_v42 }
0x13d7   : > { %3581 = vmatpush.bf16.msra.mxu3 %v4641_v11  ;;  %v3466_v11 = vmul.f32 %v4997_v9, %v6623_v13  ;;  %v4837_v13 = vld [vmem:[%s6176_s26 + $0x58] sm:$0xff] }
0x13db   : > { %3582 = vmatpush.bf16.msra.mxu3 %v4633_v23 }
0x13df   : > { %3583 = vmatpush.bf16.msra.mxu3 %v4625_v62  ;;  %v4826_v62 = vld [vmem:[%s6176_s26] sm:$0xff] }
0x13e3   : > { %3584 = vmatpush.bf16.msra.mxu3 %v4617_v35  ;;  %v3494_v35 = vperm.slane %v3492_v34, 0 }
0x13e7   : > { %3585 = vmatpush.bf16.msra.mxu3 %v4609_v50 }
0x143d   : > { %v3422_v33 = vpop.xlane.xlu1 %3421 }
0x143e   : > { %v3424_v20 = vmul.f32 %v3422_v33, %v6182_v10  ;;  %v4613_v33 = vor.u32 %v4810_v12, %v4610_v44 }
0x1440   : > { %v6645_v28 = vsub.f32 %v6640_v49, %v3424_v20  ;;  %v3440_v20 = vmul.f32 %v5083_v8, %v3439_v45  ;;  %3599 = vmatpush.bf16.msra.mxu0 %v4613_v33 }
0x1442   : > { %v3428_v53 = vmul.f32 %v6645_v28, %v6645_v28  ;;  %v3441_v51 = vmul.f32 %v3440_v20, %v6652_v58  ;;  %v3467_v14 = vmul.f32 %v4997_v9, %v6645_v28  ;;  %v4830_v28 = vld [vmem:[%s6176_s26 + $0x20] sm:$0xff] }
0x1443   : > { %3743 = vmatpush.bf16.msrb.mxu1 %v4830_v28 }
0x1444   : > { %3431 = vadd.xlane.f32.xlu2 %v3428_v53  ;;  %v4841_v53 = vld [vmem:[%s6176_s26 + $0x78] sm:$0xff]  ;;  %v3443_v57 = vsel %vm3442_vm12, %v6652_v58, %v3441_v51 }
0x1445   : > { %3754 = vmatpush.bf16.msrb.mxu2 %v4841_v53  ;;  %v3446_v32 = vsel %vm3444_vm13, %v3445_v60, %v3443_v57  ;;  %v4999_v51 = vld [vmem:[%s1466_s28] ss:$0 sm:$0xff] }
0x1446   : > { %v3459_v54 = vadd.f32 1e-06, %v3446_v32 }
0x1447   : > { %3744 = vmatpush.bf16.msrb.mxu1 %v4829_v29 }
0x1449   : > { %3755 = vmatpush.bf16.msrb.mxu2 %v4840_v39 }
0x144b   : > { %3745 = vmatpush.bf16.msrb.mxu1 %v4828_v30 }
0x144d   : > { %3756 = vmatpush.bf16.msrb.mxu2 %v4839_v61 }
0x144f   : > { %3746 = vmatpush.bf16.msrb.mxu1 %v4827_v3 }
0x1451   : > { %3757 = vmatpush.bf16.msrb.mxu2 %v4838_v63 }
0x1453   : > { %3747 = vmatpush.bf16.msrb.mxu1 %v4826_v62 }
0x1455   : > { %3758 = vmatpush.bf16.msrb.mxu2 %v4837_v13 }
0x1459   : > { %3759 = vmatpush.bf16.msrb.mxu2 %v4836_v2 }
0x145d   : > { %3760 = vmatpush.bf16.msrb.mxu2 %v4835_v15 }
0x1461   : > { %3761 = vmatpush.bf16.msrb.mxu2 %v4834_v31 }
0x14b7   : > { %v3432_v46 = vpop.xlane.xlu2 %3431 }
0x14b8   : > { %v3434_v47 = vmul.f32 0.007874016, %v3432_v46 }
0x14ba   : > { %5084 = vrsqrt.f32 %v3434_v47  ;;  %vm3454_vm14 = vcmp.eq.f32.partialorder %v3434_v47, inf  ;;  %v3457_v7 = vand.u32 2147483648, %v3434_v47  ;;  %vm3456_vm15 = vcmp.eq.f32.partialorder %v3434_v47, 0.0 }
0x14bb   : > { %5086 = vrcp.f32 %v3459_v54 }
0x14c0   : > { %v5085_v24 = vpop.eup %5084 }
0x14c1   : > { %v3448_v56 = vmul.f32 %v5085_v24, %v3434_v47  ;;  %v5087_v6 = vpop.eup %5086 }
0x14c2   : > { %v3468_v26 = vmul.f32 %v5087_v6, %v3466_v11 }
0x14c3   : > { %v3449_v59 = vmul.f32 %v5085_v24, %v3448_v56 }
0x14c4   : > { %v3473_v22 = vadd.f32 %v4998_v16, %v3468_v26 }
0x14c5   : > { %v3450_v41 = vmul.f32 0.5, %v3449_v59 }
0x14c7   : > { %v3451_v48 = vsub.f32 1.5, %v3450_v41 }
0x14c9   : > { %v3452_v1 = vmul.f32 %v5085_v24, %v3451_v48 }
0x14cb   : > { %v3453_v27 = vmul.f32 %v3452_v1, %v3434_v47 }
0x14cd   : > { %v3455_v8 = vsel %vm3454_vm14, %v3434_v47, %v3453_v27 }
0x14ce   : > { %v3458_v17 = vsel %vm3456_vm15, %v3457_v7, %v3455_v8 }
0x14cf   : > { %v3460_v58 = vadd.f32 1e-06, %v3458_v17 }
0x14d1   : > { %5088 = vrcp.f32 %v3460_v58 }
0x14d7   : > { %v5089_v0 = vpop.eup %5088 }
0x14d8   : > { %v3469_v21 = vmul.f32 %v5089_v0, %v3467_v14 }
0x14da   : > { %v3474_v23 = vadd.f32 %v4998_v16, %v3469_v21 }
0x14dc   : > { %v3475_v25 = vpack.c.bf16 %v3474_v23, %v3473_v22 }
0x14de   : > { %3586 = vmatmul.bf16.vlgmr.msra.gmra.mxu3 %v3475_v25  ;;  %3600 = vmatmul.bf16.vlgmr.msra.gmra.mxu0 %v3475_v25 }
0x155b   : > { %v3601_v19 = vpop.f32.mrf.mxu0 }
0x155c   : > { %v3602_v37 = vadd.f32 %v3601_v19, %v3495_v38 }
0x155e   : > { %v3607_v5 = vmax.f32 %v3602_v37, 0.0 }
0x1561   : > { %v3587_v36 = vpop.f32.mrf.mxu3 }
0x1562   : > { %v3588_v12 = vadd.f32 %v3587_v36, %v3494_v35 }
0x1563   : > { %v3603_v42 = vpop.f32.mrf.mxu0 }
0x1564   : > { %v3604_v43 = vadd.f32 %v3603_v42, %v3495_v38  ;;  %v3606_v47 = vmax.f32 %v3588_v12, 0.0 }
0x1566   : > { %v3609_v40 = vmax.f32 %v3604_v43, 0.0 }
0x1568   : > { %v3611_v44 = vpack.c.bf16 %v3609_v40, %v3607_v5 }
0x1569   : > { %v3589_v45 = vpop.f32.mrf.mxu3 }
0x156a   : > { %v3590_v46 = vadd.f32 %v3589_v45, %v3494_v35  ;;  %3762 = vmatmul.bf16.vlgmr.msrb.gmra.mxu2 %v3611_v44 }
0x156c   : > { %v3608_v50 = vmax.f32 %v3590_v46, 0.0 }
0x156e   : > { %v3610_v33 = vpack.c.bf16 %v3608_v50, %v3606_v47 }
0x1570   : > { %3748 = vmatmul.bf16.vlgmr.msrb.gmra.mxu1 %v3610_v33 }
0x15ed   : > { %v3749_v20 = vpop.f32.mrf.mxu1  ;;  %v3763_v53 = vpop.f32.mrf.mxu2 }
0x15ee   : > { %v3764_v4 = vadd.f32 %v3763_v53, %v3749_v20 }
0x15f0   : > { %v3768_v24 = vadd.f32 %v3764_v4, %v6610_v52 }
0x15f2   : > { %v3774_v39 = vadd.f32 %v4999_v51, %v3768_v24 }
0x15f4   : > { %3776 = vst [vmem:[#allocation2] sm:$0xff] %v3774_v39 }
0x15f5   : > { %v3751_v55 = vpop.f32.mrf.mxu1  ;;  %v3765_v56 = vpop.f32.mrf.mxu2 }
0x15f6   : > { %v3766_v57 = vadd.f32 %v3765_v56, %v3751_v55 }
0x15f8   : > { %v3769_v59 = vadd.f32 %v3766_v57, %v6640_v49  ;;  %3781 = sbr.rel (%p4734_p2) target bundleno = 5912 (0x1718), region = 204 }
0x15fa   : > { %v3775_v60 = vadd.f32 %v4999_v51, %v3769_v59 }
0x15fc   : > { %3777 = vst [vmem:[#allocation2 + $0x8] sm:$0xff] %v3775_v60 }
0x15fd   : > { %3784 = vadd.xlane.f32.xlu0 %v3774_v39  ;;  %v5091_v2 = vld [vmem:[%s6863_s5] ss:$0 sm:$0xff] }
0x15fe   : > { %v5092_v3 = vld [vmem:[%s6864_s17] ss:$0 sm:$0xff] }
0x1605   : > { %3786 = vadd.xlane.f32.xlu0 %v3775_v60 }
0x1670   : > { %v3785_v61 = vpop.xlane.xlu0 %3784 }
0x1671   : > { %v3788_v18 = vmul.f32 %v3785_v61, %v6182_v10 }
0x1673   : > { %v3790_v41 = vsub.f32 %v3774_v39, %v3788_v18 }
0x1675   : > { %v3792_v32 = vmul.f32 %v3790_v41, %v3790_v41  ;;  %v3831_v31 = vmul.f32 %v5091_v2, %v3790_v41 }
0x1677   : > { %3794 = vadd.xlane.f32.xlu1 %v3792_v32 }
0x1678   : > { %v3787_v52 = vpop.xlane.xlu0 %3786 }
0x1679   : > { %v3789_v48 = vmul.f32 %v3787_v52, %v6182_v10 }
0x167b   : > { %v3791_v63 = vsub.f32 %v3775_v60, %v3789_v48 }
0x167d   : > { %v3793_v1 = vmul.f32 %v3791_v63, %v3791_v63  ;;  %v3832_v37 = vmul.f32 %v5091_v2, %v3791_v63 }
0x167f   : > { %3796 = vadd.xlane.f32.xlu1 %v3793_v1 }
0x16ea   : > { %v3795_v49 = vpop.xlane.xlu1 %3794 }
0x16eb   : > { %v3798_v54 = vmul.f32 0.007874016, %v3795_v49 }
0x16ed   : > { %5093 = vrsqrt.f32 %v3798_v54  ;;  %vm3807_vm0 = vcmp.eq.f32.partialorder %v3798_v54, inf  ;;  %v3810_v10 = vand.u32 2147483648, %v3798_v54  ;;  %vm3809_vm1 = vcmp.eq.f32.partialorder %v3798_v54, 0.0 }
0x16f2   : > { %v3797_v27 = vpop.xlane.xlu1 %3796 }
0x16f3   : > { %v5094_v7 = vpop.eup %5093  ;;  %v3799_v8 = vmul.f32 0.007874016, %v3797_v27 }
0x16f4   : > { %v3801_v17 = vmul.f32 %v5094_v7, %v3798_v54 }
0x16f5   : > { %5095 = vrsqrt.f32 %v3799_v8  ;;  %vm3819_vm2 = vcmp.eq.f32.partialorder %v3799_v8, inf  ;;  %v3822_v15 = vand.u32 2147483648, %v3799_v8  ;;  %vm3821_vm3 = vcmp.eq.f32.partialorder %v3799_v8, 0.0 }
0x16f6   : > { %v3802_v58 = vmul.f32 %v5094_v7, %v3801_v17 }
0x16f8   : > { %v3803_v9 = vmul.f32 0.5, %v3802_v58 }
0x16fa   : > { %v3804_v6 = vsub.f32 1.5, %v3803_v9 }
0x16fb   : > { %v5096_v11 = vpop.eup %5095 }
0x16fc   : > { %v3805_v14 = vmul.f32 %v5094_v7, %v3804_v6  ;;  %v3813_v26 = vmul.f32 %v5096_v11, %v3799_v8 }
0x16fe   : > { %v3806_v16 = vmul.f32 %v3805_v14, %v3798_v54  ;;  %v3814_v0 = vmul.f32 %v5096_v11, %v3813_v26 }
0x1700   : > { %v3808_v21 = vsel %vm3807_vm0, %v3798_v54, %v3806_v16  ;;  %v3815_v22 = vmul.f32 0.5, %v3814_v0 }
0x1701   : > { %v3811_v23 = vsel %vm3809_vm1, %v3810_v10, %v3808_v21 }
0x1702   : > { %v3824_v25 = vadd.f32 1e-06, %v3811_v23  ;;  %v3816_v13 = vsub.f32 1.5, %v3815_v22 }
0x1704   : > { %5097 = vrcp.f32 %v3824_v25  ;;  %v3817_v28 = vmul.f32 %v5096_v11, %v3816_v13 }
0x1706   : > { %v3818_v29 = vmul.f32 %v3817_v28, %v3799_v8 }
0x1708   : > { %v3820_v30 = vsel %vm3819_vm2, %v3799_v8, %v3818_v29 }
0x1709   : > { %v3823_v62 = vsel %vm3821_vm3, %v3822_v15, %v3820_v30 }
0x170a   : > { %v5098_v34 = vpop.eup %5097  ;;  %v3825_v19 = vadd.f32 1e-06, %v3823_v62 }
0x170b   : > { %v3833_v38 = vmul.f32 %v5098_v34, %v3831_v31 }
0x170c   : > { %5099 = vrcp.f32 %v3825_v19 }
0x170d   : > { %v3838_v36 = vadd.f32 %v5092_v3, %v3833_v38 }
0x170f   : > { %3840 = vst [vmem:[#allocation25] sm:$0xff] %v3838_v36 }
0x1712   : > { %v5100_v42 = vpop.eup %5099 }
0x1713   : > { %v3834_v35 = vmul.f32 %v5100_v42, %v3832_v37 }
0x1715   : > { %v3839_v43 = vadd.f32 %v5092_v3, %v3834_v35 }
0x1717   : > { %3841 = vst [vmem:[#allocation25 + $0x8] sm:$0xff] %v3839_v43 }
0x1718 PF: > { %p4915_p3 = scmp.eq.s32.totalorder %s5896_s29, 1  ;;  %s6865_s30 = sld [smem:[#allocation63_spill]] }
0x1719   : > { %s5729_s18 = smov [#allocation25]   ;;  %s5730_s26 = smov 128  }
0x171a   : > { %s3850_s20 = sshll.u32 %s5729_s18, 4  ;;  %s5731_s22 = smov 8   ;;  %s3851_s20 = int_to_ptr.vmem [resolvable:$true] %s3850_s20 }
0x171e   : > { %s3852_s16 = sshll.u32 %s6865_s30, 4  ;;  %s3853_s16 = int_to_ptr.hbm [resolvable:$true] %s3852_s16 }
0x171f   : > { %4891 = dma.vmem_to_hbm [thread:$0]  (%p4915_p3), %s3851_s20, 256, %s3853_s16, [#allocation5], %s5730_s26, %s5730_s26, %s5731_s22  }
0x1720   : > { %5682 = dma.done.wait (%p4915_p3), [#allocation5], 256  }
0x1721   : > { %5684 = vsyncadd (%p4915_p3), [#allocation5], 4294967040 }
0x1722 PF: > { %s40_s4 = sadd.s32 1, %s5707_s4   ;;  %s6866_s27 = sld [smem:[#allocation31_spill]] }
0x1723   : > { %p37_p4 = scmp.ge.s32.totalorder %s40_s4, 4   ;;  %s6867_s3 = sld [smem:[#allocation32_spill]] }
0x1724   : > { %s6868_s7 = sld [smem:[#allocation36_spill]]  ;;  %s6870_s28 = smov %s5703_s8 }
0x1725   : > { %s6869_s29 = sld [smem:[#allocation34_spill]] }
0x1727   :  { %39 = sbr.rel (!%p37_p4) target bundleno = 34 (0x22), region = 352 }
0x172b   : > { %s6871_s8 = smov %s6869_s29 }
0x172c   :  { %3869 = vsyncpa [#allocation4], 1 }
0x172d   :  { %3871 = vsyncpa [#allocation4 + $0x1], 1 }
0x172e   :  { %3872 = vsyncpa [#allocation7], 1 }
0x172f   :  { %3873 = vsyncpa [#allocation10], 1 }
0x1730   :  { %3874 = vsyncpa [#allocation5], 1 }
0x1731   :  { %3876 = vsyncpa [#allocation5 + $0x1], 1 }

</bundles_post_ra>
